<compile_context>
chip_gen: v7x
topology: tpu7x:2x2x1
jax: 0.10.0
libtpu: 0.0.40
codegen_flags: <defaults>
</compile_context>

<pallas_src>
import math
import jax
import jax.numpy as jnp
from jax import lax
from jax.experimental import pallas as pl
from jax.experimental.pallas import tpu as pltpu

# ----------------------------- small ViT config ------------------------------
BATCH     = 2
CHANNELS  = 3
IMG       = 16          # image_size = (16, 16)
PATCH     = 4           # patch_size
D_MODEL   = 32
N_HEADS   = 4
HEAD_DIM  = D_MODEL // N_HEADS
N_LAYERS  = 2
D_FF      = 4 * D_MODEL
GRID_HW   = IMG // PATCH
N_PATCH   = GRID_HW * GRID_HW          # 16
N_TOK     = N_PATCH + 1                # +1 cls token (distilled=False)
N_ALL     = BATCH * N_TOK              # 34 — all tokens of all images, flattened
D_PATCH   = CHANNELS * PATCH * PATCH   # 48
LN_EPS    = 1e-5
NEG_BIG   = -1e9                       # block-diagonal attention bias


# ------------------------------ in-kernel math -------------------------------
def _layernorm(x, w, b):
    # matches nn.LayerNorm (biased variance, eps=1e-5); w, b broadcast as (1, D)
    mu = jnp.mean(x, axis=-1, keepdims=True)
    xc = x - mu
    var = jnp.mean(xc * xc, axis=-1, keepdims=True)
    return xc * lax.rsqrt(var + LN_EPS) * w + b


def _erf(x):
    # Abramowitz & Stegun 7.1.26 rational approximation (max abs err ~1.5e-7,
    # i.e. exact at float32 precision) -- nn.GELU() is the exact erf-based GELU.
    a1, a2, a3, a4, a5 = 0.254829592, -0.284496736, 1.421413741, -1.453152027, 1.061405429
    p = 0.3275911
    s = jnp.where(x < 0.0, -1.0, 1.0)
    ax = jnp.abs(x)
    t = 1.0 / (1.0 + p * ax)
    poly = ((((a5 * t + a4) * t + a3) * t + a2) * t + a1) * t
    return s * (1.0 - poly * jnp.exp(-ax * ax))


def _gelu(x):
    return 0.5 * x * (1.0 + _erf(x * (1.0 / math.sqrt(2.0))))


def _mm(a, b):
    return jnp.dot(a, b, preferred_element_type=jnp.float32)


# --------------------------------- kernel ------------------------------------
def vit_kernel(patches_ref, pW_ref, addend_ref, mask_ref, sel_ref,
               ln1w_ref, ln1b_ref, ln2w_ref, ln2b_ref,
               qkvW_ref, qkvb_ref, projW_ref, projb_ref,
               fc1W_ref, fc1b_ref, fc2W_ref, fc2b_ref,
               normw_ref, normb_ref, out_ref):
    scale = 1.0 / math.sqrt(HEAD_DIM)

    # ---- patch embedding for ALL images at once -------------------------------
    # patches_ref is (B*N_TOK, C*P*P) with an all-zero row at every cls slot, so
    # a single matmul embeds every token; `addend` carries conv-bias + positional
    # embedding (and the cls token value for the zero rows).  Exactly equal to
    # Conv2d(P, stride=P) -> cat(cls, tokens) -> + pos_embed.
    x = _mm(patches_ref[...], pW_ref[...]) + addend_ref[...]          # (N_ALL, D)

    mask = mask_ref[...]                                              # (N_ALL, N_ALL)

    for l in range(N_LAYERS):                                         # static unroll
        # ---------------- multi-head self-attention ----------------------------
        y = _layernorm(x, ln1w_ref[l], ln1b_ref[l])                   # (N_ALL, D)
        qkv = _mm(y, qkvW_ref[l]) + qkvb_ref[l]                       # (N_ALL, 3D)
        # Batch the heads into one leading dim; fold 1/sqrt(hd) into Q (smaller
        # tile than the score matrix).
        q = jnp.stack([qkv[:, h * HEAD_DIM:(h + 1) * HEAD_DIM]
                       for h in range(N_HEADS)], axis=0) * scale                 # (H, N_ALL, hd)
        k = jnp.stack([qkv[:, D_MODEL + h * HEAD_DIM:D_MODEL + (h + 1) * HEAD_DIM]
                       for h in range(N_HEADS)], axis=0)                          # (H, N_ALL, hd)
        v = jnp.stack([qkv[:, 2 * D_MODEL + h * HEAD_DIM:2 * D_MODEL + (h + 1) * HEAD_DIM]
                       for h in range(N_HEADS)], axis=0)                          # (H, N_ALL, hd)
        # Single score matmul over all images; block-diagonal bias keeps images
        # independent (off-block entries -> exp underflows to exactly 0).
        s = jnp.einsum('htd,hsd->hts', q, k,
                       preferred_element_type=jnp.float32) + mask                # (H, N_ALL, N_ALL)
        s = s - jnp.max(s, axis=-1, keepdims=True)
        p = jnp.exp(s)
        p = p * pl.reciprocal(jnp.sum(p, axis=-1, keepdims=True), approx=True)
        o = jnp.einsum('hts,hsd->htd', p, v,
                       preferred_element_type=jnp.float32)                       # (H, N_ALL, hd)
        # Head concat folded into the output projection: projW is (L, H, hd, D),
        # so each head multiplies its own slice and the per-head results are
        # summed — no lane concat, no VMEM scratch.
        ph = jnp.einsum('htd,hde->hte', o, projW_ref[l],
                        preferred_element_type=jnp.float32)                      # (H, N_ALL, D)
        x = x + jnp.sum(ph, axis=0) + projb_ref[l]                               # residual 1

        # ------------------------------ MLP -------------------------------------
        z = _layernorm(x, ln2w_ref[l], ln2b_ref[l])
        h1 = _gelu(_mm(z, fc1W_ref[l]) + fc1b_ref[l])                            # (N_ALL, D_FF)
        x = x + (_mm(h1, fc2W_ref[l]) + fc2b_ref[l])                             # residual 2

    # ---- final norm; pick each image's cls row via a one-hot matmul -----------
    x = _layernorm(x, normw_ref[...], normb_ref[...])
    out_ref[...] = _mm(sel_ref[...], x)                                          # (B, D)


# --------------------------------- wrapper ------------------------------------
def vit_forward(im, params):
    B, C, H, W = im.shape
    gh, gw = H // PATCH, W // PATCH
    npatch, ntok = gh * gw, gh * gw + 1

    # Host-side glue: pure layout + parameter folding (no per-pixel math).
    # Conv2d(P, stride=P) == matmul on (c, kh, kw)-flattened patches.
    patches = im.reshape(B, C, gh, PATCH, gw, PATCH)
    patches = patches.transpose(0, 2, 4, 1, 3, 5).reshape(B, npatch, C * PATCH * PATCH)
    patches = patches.astype(jnp.float32)
    # Zero row at every cls slot -> the kernel embeds all tokens with ONE matmul.
    patches_aug = jnp.concatenate(
        [jnp.zeros((B, 1, C * PATCH * PATCH), jnp.float32), patches], axis=1
    ).reshape(B * ntok, C * PATCH * PATCH)
    # Fold conv bias + cls token + positional embedding into one per-row addend.
    row_add = jnp.concatenate(
        [params["cls"], jnp.broadcast_to(params["pb"], (npatch, D_MODEL))], axis=0
    ) + params["pos"]                                              # (ntok, D)
    addend = jnp.tile(row_add, (B, 1))                             # (B*ntok, D)
    # Block-diagonal attention bias (0 within an image, -1e9 across images).
    tok_img = jnp.arange(B * ntok, dtype=jnp.int32) // ntok
    mask = jnp.where(tok_img[:, None] == tok_img[None, :], 0.0, NEG_BIG).astype(jnp.float32)
    # One-hot selector extracting each image's cls row with a tiny matmul.
    sel = jax.nn.one_hot(jnp.arange(B) * ntok, B * ntok, dtype=jnp.float32)      # (B, B*ntok)
    # Head-major split of the projection weight (fold head-concat into the proj).
    projW = params["projW"].reshape(N_LAYERS, N_HEADS, HEAD_DIM, D_MODEL)

    ins = (patches_aug, params["pW"], addend, mask, sel,
           params["ln1w"], params["ln1b"], params["ln2w"], params["ln2b"],
           params["qkvW"], params["qkvb"], projW, params["projb"],
           params["fc1W"], params["fc1b"], params["fc2W"], params["fc2b"],
           params["normw"], params["normb"])

    vmem = pl.BlockSpec(memory_space=pltpu.MemorySpace.VMEM)
    return pl.pallas_call(
        vit_kernel,
        out_shape=jax.ShapeDtypeStruct((B, D_MODEL), jnp.float32),
        in_specs=[vmem] * len(ins),
        out_specs=vmem,
    )(*ins)


# ----------------------------- parameter init ---------------------------------
def _trunc_normal(key, shape, std=0.02):
    # trunc_normal_(std=0.02): standard normal truncated to (-2, 2) * std
    return (std * jax.random.truncated_normal(key, -2.0, 2.0, shape)).astype(jnp.float32)


def init_params(key):
    keys = iter(jax.random.split(key, 64))

    # PatchEmbedding.proj : Conv2d(C, D, P, stride=P)
    conv_w = 0.02 * jax.random.normal(next(keys), (D_MODEL, CHANNELS, PATCH, PATCH),
                                      dtype=jnp.float32)
    conv_b = 0.02 * jax.random.normal(next(keys), (D_MODEL,), dtype=jnp.float32)
    pW = conv_w.reshape(D_MODEL, D_PATCH).T            # (C*P*P, D)
    pb = conv_b.reshape(1, D_MODEL)

    cls = _trunc_normal(next(keys), (1, D_MODEL))
    pos = _trunc_normal(next(keys), (N_TOK, D_MODEL))

    ln1w, ln1b, ln2w, ln2b = [], [], [], []
    qkvW, qkvb, projW, projb = [], [], [], []
    fc1W, fc1b, fc2W, fc2b = [], [], [], []
    for _ in range(N_LAYERS):
        ln1w.append(jnp.ones((1, D_MODEL), jnp.float32))
        ln1b.append(jnp.zeros((1, D_MODEL), jnp.float32))
        ln2w.append(jnp.ones((1, D_MODEL), jnp.float32))
        ln2b.append(jnp.zeros((1, D_MODEL), jnp.float32))
        # nn.Linear: weight trunc_normal(0.02), bias 0 (init_weights)
        qkvW.append(_trunc_normal(next(keys), (D_MODEL, 3 * D_MODEL)))
        qkvb.append(jnp.zeros((1, 3 * D_MODEL), jnp.float32))
        projW.append(_trunc_normal(next(keys), (D_MODEL, D_MODEL)))
        projb.append(jnp.zeros((1, D_MODEL), jnp.float32))
        fc1W.append(_trunc_normal(next(keys), (D_MODEL, D_FF)))
        fc1b.append(jnp.zeros((1, D_FF), jnp.float32))
        fc2W.append(_trunc_normal(next(keys), (D_FF, D_MODEL)))
        fc2b.append(jnp.zeros((1, D_MODEL), jnp.float32))

    return dict(
        pW=pW, pb=pb, cls=cls, pos=pos,
        ln1w=jnp.stack(ln1w), ln1b=jnp.stack(ln1b),
        ln2w=jnp.stack(ln2w), ln2b=jnp.stack(ln2b),
        qkvW=jnp.stack(qkvW), qkvb=jnp.stack(qkvb),
        projW=jnp.stack(projW), projb=jnp.stack(projb),
        fc1W=jnp.stack(fc1W), fc1b=jnp.stack(fc1b),
        fc2W=jnp.stack(fc2W), fc2b=jnp.stack(fc2b),
        normw=jnp.ones((1, D_MODEL), jnp.float32),
        normb=jnp.zeros((1, D_MODEL), jnp.float32),
    )


# ----------------------------------- main --------------------------------------
if __name__ == "__main__":
    key = jax.random.PRNGKey(0)
    k_im, k_par = jax.random.split(key)
    im = jax.random.normal(k_im, (BATCH, CHANNELS, IMG, IMG), dtype=jnp.float32)
    params = init_params(k_par)

    v = vit_forward(im, params)          # (B, d_model) cls feature (eval path)
    v = jax.block_until_ready(v)
    assert v.shape == (BATCH, D_MODEL)
    assert bool(jnp.all(jnp.isfinite(v)))
    print("KERNEL_OK")
</pallas_src>

<mosaic_0001>
module attributes {stable_mosaic.version = 11 : i64} {
  func.func @vit_kernel(%arg0: memref<34x48xf32, #tpu.memory_space<vmem>>, %arg1: memref<48x32xf32, #tpu.memory_space<vmem>>, %arg2: memref<34x32xf32, #tpu.memory_space<vmem>>, %arg3: memref<34x34xf32, #tpu.memory_space<vmem>>, %arg4: memref<2x34xf32, #tpu.memory_space<vmem>>, %arg5: memref<2x1x32xf32, #tpu.memory_space<vmem>>, %arg6: memref<2x1x32xf32, #tpu.memory_space<vmem>>, %arg7: memref<2x1x32xf32, #tpu.memory_space<vmem>>, %arg8: memref<2x1x32xf32, #tpu.memory_space<vmem>>, %arg9: memref<2x32x96xf32, #tpu.memory_space<vmem>>, %arg10: memref<2x1x96xf32, #tpu.memory_space<vmem>>, %arg11: memref<2x4x8x32xf32, #tpu.memory_space<vmem>>, %arg12: memref<2x1x32xf32, #tpu.memory_space<vmem>>, %arg13: memref<2x32x128xf32, #tpu.memory_space<vmem>>, %arg14: memref<2x1x128xf32, #tpu.memory_space<vmem>>, %arg15: memref<2x128x32xf32, #tpu.memory_space<vmem>>, %arg16: memref<2x1x32xf32, #tpu.memory_space<vmem>>, %arg17: memref<1x32xf32, #tpu.memory_space<vmem>>, %arg18: memref<1x32xf32, #tpu.memory_space<vmem>>, %arg19: memref<2x32xf32, #tpu.memory_space<vmem>>) attributes {dimension_semantics = [], scalar_prefetch = 0 : i64, scratch_operands = 0 : i64, tpu.core_type = #tpu.core_type<tc>} {
    %c0 = arith.constant 0 : index
    %c0_0 = arith.constant 0 : index
    %0 = vector.load %arg0[%c0, %c0_0] : memref<34x48xf32, #tpu.memory_space<vmem>>, vector<34x48xf32>
    %c0_1 = arith.constant 0 : index
    %c0_2 = arith.constant 0 : index
    %1 = vector.load %arg1[%c0_1, %c0_2] : memref<48x32xf32, #tpu.memory_space<vmem>>, vector<48x32xf32>
    %cst = arith.constant dense<0.000000e+00> : vector<34x32xf32>
    %2 = tpu.matmul %0, %1, %cst {dimension_numbers = #tpu.dot_dimension_numbers<[1], [0], [0], [1], [0, 0, 1, 1], [], []>} : vector<34x48xf32>, vector<48x32xf32>, vector<34x32xf32> -> vector<34x32xf32>
    %c0_3 = arith.constant 0 : index
    %c0_4 = arith.constant 0 : index
    %3 = vector.load %arg2[%c0_3, %c0_4] : memref<34x32xf32, #tpu.memory_space<vmem>>, vector<34x32xf32>
    %4 = arith.addf %2, %3 : vector<34x32xf32>
    %c0_5 = arith.constant 0 : index
    %c0_6 = arith.constant 0 : index
    %5 = vector.load %arg3[%c0_5, %c0_6] : memref<34x34xf32, #tpu.memory_space<vmem>>, vector<34x34xf32>
    %c0_7 = arith.constant 0 : index
    %c0_8 = arith.constant 0 : index
    %c0_9 = arith.constant 0 : index
    %6 = vector.load %arg5[%c0_7, %c0_8, %c0_9] : memref<2x1x32xf32, #tpu.memory_space<vmem>>, vector<1x1x32xf32>
    %7 = vector.shape_cast %6 : vector<1x1x32xf32> to vector<1x32xf32>
    %c0_10 = arith.constant 0 : index
    %c0_11 = arith.constant 0 : index
    %c0_12 = arith.constant 0 : index
    %8 = vector.load %arg6[%c0_10, %c0_11, %c0_12] : memref<2x1x32xf32, #tpu.memory_space<vmem>>, vector<1x1x32xf32>
    %9 = vector.shape_cast %8 : vector<1x1x32xf32> to vector<1x32xf32>
    %cst_13 = arith.constant dense<0.000000e+00> : vector<34xf32>
    %10 = vector.multi_reduction <add>, %4, %cst_13 [1] : vector<34x32xf32> to vector<34xf32>
    %11 = vector.shape_cast %10 : vector<34xf32> to vector<34x1xf32>
    %cst_14 = arith.constant 3.200000e+01 : f32
    %12 = vector.broadcast %cst_14 : f32 to vector<34x1xf32>
    %13 = arith.divf %11, %12 : vector<34x1xf32>
    %14 = vector.broadcast %13 : vector<34x1xf32> to vector<34x32xf32>
    %15 = arith.subf %4, %14 : vector<34x32xf32>
    %16 = arith.mulf %15, %15 : vector<34x32xf32>
    %cst_15 = arith.constant dense<0.000000e+00> : vector<34xf32>
    %17 = vector.multi_reduction <add>, %16, %cst_15 [1] : vector<34x32xf32> to vector<34xf32>
    %18 = vector.shape_cast %17 : vector<34xf32> to vector<34x1xf32>
    %cst_16 = arith.constant 3.200000e+01 : f32
    %19 = vector.broadcast %cst_16 : f32 to vector<34x1xf32>
    %20 = arith.divf %18, %19 : vector<34x1xf32>
    %cst_17 = arith.constant 9.99999974E-6 : f32
    %21 = vector.broadcast %cst_17 : f32 to vector<34x1xf32>
    %22 = arith.addf %20, %21 : vector<34x1xf32>
    %23 = math.rsqrt %22 : vector<34x1xf32>
    %24 = vector.broadcast %23 : vector<34x1xf32> to vector<34x32xf32>
    %25 = arith.mulf %15, %24 : vector<34x32xf32>
    %26 = vector.broadcast %7 : vector<1x32xf32> to vector<34x32xf32>
    %27 = arith.mulf %25, %26 : vector<34x32xf32>
    %28 = vector.broadcast %9 : vector<1x32xf32> to vector<34x32xf32>
    %29 = arith.addf %27, %28 : vector<34x32xf32>
    %c0_18 = arith.constant 0 : index
    %c0_19 = arith.constant 0 : index
    %c0_20 = arith.constant 0 : index
    %30 = vector.load %arg9[%c0_18, %c0_19, %c0_20] : memref<2x32x96xf32, #tpu.memory_space<vmem>>, vector<1x32x96xf32>
    %31 = vector.shape_cast %30 : vector<1x32x96xf32> to vector<32x96xf32>
    %cst_21 = arith.constant dense<0.000000e+00> : vector<34x96xf32>
    %32 = tpu.matmul %29, %31, %cst_21 {dimension_numbers = #tpu.dot_dimension_numbers<[1], [0], [0], [1], [0, 0, 1, 1], [], []>} : vector<34x32xf32>, vector<32x96xf32>, vector<34x96xf32> -> vector<34x96xf32>
    %c0_22 = arith.constant 0 : index
    %c0_23 = arith.constant 0 : index
    %c0_24 = arith.constant 0 : index
    %33 = vector.load %arg10[%c0_22, %c0_23, %c0_24] : memref<2x1x96xf32, #tpu.memory_space<vmem>>, vector<1x1x96xf32>
    %34 = vector.shape_cast %33 : vector<1x1x96xf32> to vector<1x96xf32>
    %35 = vector.broadcast %34 : vector<1x96xf32> to vector<34x96xf32>
    %36 = arith.addf %32, %35 : vector<34x96xf32>
    %37 = vector.extract_strided_slice %36 {offsets = [0, 0], sizes = [34, 8], strides = [1, 1]} : vector<34x96xf32> to vector<34x8xf32>
    %38 = vector.extract_strided_slice %36 {offsets = [0, 8], sizes = [34, 8], strides = [1, 1]} : vector<34x96xf32> to vector<34x8xf32>
    %39 = vector.extract_strided_slice %36 {offsets = [0, 16], sizes = [34, 8], strides = [1, 1]} : vector<34x96xf32> to vector<34x8xf32>
    %40 = vector.extract_strided_slice %36 {offsets = [0, 24], sizes = [34, 8], strides = [1, 1]} : vector<34x96xf32> to vector<34x8xf32>
    %41 = vector.shape_cast %37 : vector<34x8xf32> to vector<1x34x8xf32>
    %42 = vector.shape_cast %38 : vector<34x8xf32> to vector<1x34x8xf32>
    %43 = vector.shape_cast %39 : vector<34x8xf32> to vector<1x34x8xf32>
    %44 = vector.shape_cast %40 : vector<34x8xf32> to vector<1x34x8xf32>
    %45 = tpu.concatenate %41, %42, %43, %44 in 0 : vector<1x34x8xf32>, vector<1x34x8xf32>, vector<1x34x8xf32>, vector<1x34x8xf32> -> vector<4x34x8xf32>
    %cst_25 = arith.constant 0.353553385 : f32
    %46 = vector.broadcast %cst_25 : f32 to vector<4x34x8xf32>
    %47 = arith.mulf %45, %46 : vector<4x34x8xf32>
    %48 = vector.extract_strided_slice %36 {offsets = [0, 32], sizes = [34, 8], strides = [1, 1]} : vector<34x96xf32> to vector<34x8xf32>
    %49 = vector.extract_strided_slice %36 {offsets = [0, 40], sizes = [34, 8], strides = [1, 1]} : vector<34x96xf32> to vector<34x8xf32>
    %50 = vector.extract_strided_slice %36 {offsets = [0, 48], sizes = [34, 8], strides = [1, 1]} : vector<34x96xf32> to vector<34x8xf32>
    %51 = vector.extract_strided_slice %36 {offsets = [0, 56], sizes = [34, 8], strides = [1, 1]} : vector<34x96xf32> to vector<34x8xf32>
    %52 = vector.shape_cast %48 : vector<34x8xf32> to vector<1x34x8xf32>
    %53 = vector.shape_cast %49 : vector<34x8xf32> to vector<1x34x8xf32>
    %54 = vector.shape_cast %50 : vector<34x8xf32> to vector<1x34x8xf32>
    %55 = vector.shape_cast %51 : vector<34x8xf32> to vector<1x34x8xf32>
    %56 = tpu.concatenate %52, %53, %54, %55 in 0 : vector<1x34x8xf32>, vector<1x34x8xf32>, vector<1x34x8xf32>, vector<1x34x8xf32> -> vector<4x34x8xf32>
    %57 = vector.extract_strided_slice %36 {offsets = [0, 64], sizes = [34, 8], strides = [1, 1]} : vector<34x96xf32> to vector<34x8xf32>
    %58 = vector.extract_strided_slice %36 {offsets = [0, 72], sizes = [34, 8], strides = [1, 1]} : vector<34x96xf32> to vector<34x8xf32>
    %59 = vector.extract_strided_slice %36 {offsets = [0, 80], sizes = [34, 8], strides = [1, 1]} : vector<34x96xf32> to vector<34x8xf32>
    %60 = vector.extract_strided_slice %36 {offsets = [0, 88], sizes = [34, 8], strides = [1, 1]} : vector<34x96xf32> to vector<34x8xf32>
    %61 = vector.shape_cast %57 : vector<34x8xf32> to vector<1x34x8xf32>
    %62 = vector.shape_cast %58 : vector<34x8xf32> to vector<1x34x8xf32>
    %63 = vector.shape_cast %59 : vector<34x8xf32> to vector<1x34x8xf32>
    %64 = vector.shape_cast %60 : vector<34x8xf32> to vector<1x34x8xf32>
    %65 = tpu.concatenate %61, %62, %63, %64 in 0 : vector<1x34x8xf32>, vector<1x34x8xf32>, vector<1x34x8xf32>, vector<1x34x8xf32> -> vector<4x34x8xf32>
    "tpu.trace_start"() <{level = 10 : i32, message = "htd,hsd->hts"}> : () -> ()
    %cst_26 = arith.constant dense<0.000000e+00> : vector<4x34x34xf32>
    %66 = tpu.matmul %47, %56, %cst_26 {dimension_numbers = #tpu.dot_dimension_numbers<[2], [2], [1], [1], [0, 0, 0, 1, 1, 1], [0], [0]>} : vector<4x34x8xf32>, vector<4x34x8xf32>, vector<4x34x34xf32> -> vector<4x34x34xf32>
    "tpu.trace_stop"() : () -> ()
    %67 = vector.shape_cast %5 : vector<34x34xf32> to vector<1x34x34xf32>
    %68 = vector.broadcast %67 : vector<1x34x34xf32> to vector<4x34x34xf32>
    %69 = arith.addf %66, %68 : vector<4x34x34xf32>
    %cst_27 = arith.constant dense<0xFF800000> : vector<4x34xf32>
    %70 = vector.multi_reduction <maximumf>, %69, %cst_27 [2] : vector<4x34x34xf32> to vector<4x34xf32>
    %71 = vector.shape_cast %70 : vector<4x34xf32> to vector<4x34x1xf32>
    %72 = vector.broadcast %71 : vector<4x34x1xf32> to vector<4x34x34xf32>
    %73 = arith.subf %69, %72 : vector<4x34x34xf32>
    %74 = math.exp %73 : vector<4x34x34xf32>
    %cst_28 = arith.constant dense<0.000000e+00> : vector<4x34xf32>
    %75 = vector.multi_reduction <add>, %74, %cst_28 [2] : vector<4x34x34xf32> to vector<4x34xf32>
    %76 = vector.shape_cast %75 : vector<4x34xf32> to vector<4x34x1xf32>
    %77 = tpu.reciprocal %76 {approx = true} : vector<4x34x1xf32> -> vector<4x34x1xf32>
    %78 = vector.broadcast %77 : vector<4x34x1xf32> to vector<4x34x34xf32>
    %79 = arith.mulf %74, %78 : vector<4x34x34xf32>
    "tpu.trace_start"() <{level = 10 : i32, message = "hts,hsd->htd"}> : () -> ()
    %cst_29 = arith.constant dense<0.000000e+00> : vector<4x34x8xf32>
    %80 = tpu.matmul %79, %65, %cst_29 {dimension_numbers = #tpu.dot_dimension_numbers<[2], [1], [1], [2], [0, 0, 0, 1, 1, 2], [0], [0]>} : vector<4x34x34xf32>, vector<4x34x8xf32>, vector<4x34x8xf32> -> vector<4x34x8xf32>
    "tpu.trace_stop"() : () -> ()
    %c0_30 = arith.constant 0 : index
    %c0_31 = arith.constant 0 : index
    %c0_32 = arith.constant 0 : index
    %c0_33 = arith.constant 0 : index
    %81 = vector.load %arg11[%c0_30, %c0_31, %c0_32, %c0_33] : memref<2x4x8x32xf32, #tpu.memory_space<vmem>>, vector<1x4x8x32xf32>
    %82 = vector.shape_cast %81 : vector<1x4x8x32xf32> to vector<4x8x32xf32>
    "tpu.trace_start"() <{level = 10 : i32, message = "htd,hde->hte"}> : () -> ()
    %cst_34 = arith.constant dense<0.000000e+00> : vector<4x34x32xf32>
    %83 = tpu.matmul %80, %82, %cst_34 {dimension_numbers = #tpu.dot_dimension_numbers<[2], [1], [1], [2], [0, 0, 0, 1, 1, 2], [0], [0]>} : vector<4x34x8xf32>, vector<4x8x32xf32>, vector<4x34x32xf32> -> vector<4x34x32xf32>
    "tpu.trace_stop"() : () -> ()
    %cst_35 = arith.constant dense<0.000000e+00> : vector<34x32xf32>
    %84 = vector.multi_reduction <add>, %83, %cst_35 [0] : vector<4x34x32xf32> to vector<34x32xf32>
    %85 = arith.addf %4, %84 : vector<34x32xf32>
    %c0_36 = arith.constant 0 : index
    %c0_37 = arith.constant 0 : index
    %c0_38 = arith.constant 0 : index
    %86 = vector.load %arg12[%c0_36, %c0_37, %c0_38] : memref<2x1x32xf32, #tpu.memory_space<vmem>>, vector<1x1x32xf32>
    %87 = vector.shape_cast %86 : vector<1x1x32xf32> to vector<1x32xf32>
    %88 = vector.broadcast %87 : vector<1x32xf32> to vector<34x32xf32>
    %89 = arith.addf %85, %88 : vector<34x32xf32>
    %c0_39 = arith.constant 0 : index
    %c0_40 = arith.constant 0 : index
    %c0_41 = arith.constant 0 : index
    %90 = vector.load %arg7[%c0_39, %c0_40, %c0_41] : memref<2x1x32xf32, #tpu.memory_space<vmem>>, vector<1x1x32xf32>
    %91 = vector.shape_cast %90 : vector<1x1x32xf32> to vector<1x32xf32>
    %c0_42 = arith.constant 0 : index
    %c0_43 = arith.constant 0 : index
    %c0_44 = arith.constant 0 : index
    %92 = vector.load %arg8[%c0_42, %c0_43, %c0_44] : memref<2x1x32xf32, #tpu.memory_space<vmem>>, vector<1x1x32xf32>
    %93 = vector.shape_cast %92 : vector<1x1x32xf32> to vector<1x32xf32>
    %cst_45 = arith.constant dense<0.000000e+00> : vector<34xf32>
    %94 = vector.multi_reduction <add>, %89, %cst_45 [1] : vector<34x32xf32> to vector<34xf32>
    %95 = vector.shape_cast %94 : vector<34xf32> to vector<34x1xf32>
    %cst_46 = arith.constant 3.200000e+01 : f32
    %96 = vector.broadcast %cst_46 : f32 to vector<34x1xf32>
    %97 = arith.divf %95, %96 : vector<34x1xf32>
    %98 = vector.broadcast %97 : vector<34x1xf32> to vector<34x32xf32>
    %99 = arith.subf %89, %98 : vector<34x32xf32>
    %100 = arith.mulf %99, %99 : vector<34x32xf32>
    %cst_47 = arith.constant dense<0.000000e+00> : vector<34xf32>
    %101 = vector.multi_reduction <add>, %100, %cst_47 [1] : vector<34x32xf32> to vector<34xf32>
    %102 = vector.shape_cast %101 : vector<34xf32> to vector<34x1xf32>
    %cst_48 = arith.constant 3.200000e+01 : f32
    %103 = vector.broadcast %cst_48 : f32 to vector<34x1xf32>
    %104 = arith.divf %102, %103 : vector<34x1xf32>
    %cst_49 = arith.constant 9.99999974E-6 : f32
    %105 = vector.broadcast %cst_49 : f32 to vector<34x1xf32>
    %106 = arith.addf %104, %105 : vector<34x1xf32>
    %107 = math.rsqrt %106 : vector<34x1xf32>
    %108 = vector.broadcast %107 : vector<34x1xf32> to vector<34x32xf32>
    %109 = arith.mulf %99, %108 : vector<34x32xf32>
    %110 = vector.broadcast %91 : vector<1x32xf32> to vector<34x32xf32>
    %111 = arith.mulf %109, %110 : vector<34x32xf32>
    %112 = vector.broadcast %93 : vector<1x32xf32> to vector<34x32xf32>
    %113 = arith.addf %111, %112 : vector<34x32xf32>
    %c0_50 = arith.constant 0 : index
    %c0_51 = arith.constant 0 : index
    %c0_52 = arith.constant 0 : index
    %114 = vector.load %arg13[%c0_50, %c0_51, %c0_52] : memref<2x32x128xf32, #tpu.memory_space<vmem>>, vector<1x32x128xf32>
    %115 = vector.shape_cast %114 : vector<1x32x128xf32> to vector<32x128xf32>
    %cst_53 = arith.constant dense<0.000000e+00> : vector<34x128xf32>
    %116 = tpu.matmul %113, %115, %cst_53 {dimension_numbers = #tpu.dot_dimension_numbers<[1], [0], [0], [1], [0, 0, 1, 1], [], []>} : vector<34x32xf32>, vector<32x128xf32>, vector<34x128xf32> -> vector<34x128xf32>
    %c0_54 = arith.constant 0 : index
    %c0_55 = arith.constant 0 : index
    %c0_56 = arith.constant 0 : index
    %117 = vector.load %arg14[%c0_54, %c0_55, %c0_56] : memref<2x1x128xf32, #tpu.memory_space<vmem>>, vector<1x1x128xf32>
    %118 = vector.shape_cast %117 : vector<1x1x128xf32> to vector<1x128xf32>
    %119 = vector.broadcast %118 : vector<1x128xf32> to vector<34x128xf32>
    %120 = arith.addf %116, %119 : vector<34x128xf32>
    %cst_57 = arith.constant 5.000000e-01 : f32
    %121 = vector.broadcast %cst_57 : f32 to vector<34x128xf32>
    %122 = arith.mulf %121, %120 : vector<34x128xf32>
    %cst_58 = arith.constant 0.707106769 : f32
    %123 = vector.broadcast %cst_58 : f32 to vector<34x128xf32>
    %124 = arith.mulf %120, %123 : vector<34x128xf32>
    %cst_59 = arith.constant 0.000000e+00 : f32
    %125 = vector.broadcast %cst_59 : f32 to vector<34x128xf32>
    %126 = arith.cmpf olt, %124, %125 : vector<34x128xf32>
    %cst_60 = arith.constant -1.000000e+00 : f32
    %cst_61 = arith.constant 1.000000e+00 : f32
    %127 = vector.broadcast %cst_60 : f32 to vector<34x128xf32>
    %128 = vector.broadcast %cst_61 : f32 to vector<34x128xf32>
    %129 = arith.select %126, %127, %128 : vector<34x128xi1>, vector<34x128xf32>
    %130 = math.absf %124 : vector<34x128xf32>
    %cst_62 = arith.constant 0.327591091 : f32
    %131 = vector.broadcast %cst_62 : f32 to vector<34x128xf32>
    %132 = arith.mulf %131, %130 : vector<34x128xf32>
    %cst_63 = arith.constant 1.000000e+00 : f32
    %133 = vector.broadcast %cst_63 : f32 to vector<34x128xf32>
    %134 = arith.addf %133, %132 : vector<34x128xf32>
    %cst_64 = arith.constant 1.000000e+00 : f32
    %135 = vector.broadcast %cst_64 : f32 to vector<34x128xf32>
    %136 = arith.divf %135, %134 : vector<34x128xf32>
    %cst_65 = arith.constant 1.06140542 : f32
    %137 = vector.broadcast %cst_65 : f32 to vector<34x128xf32>
    %138 = arith.mulf %137, %136 : vector<34x128xf32>
    %cst_66 = arith.constant -1.45315206 : f32
    %139 = vector.broadcast %cst_66 : f32 to vector<34x128xf32>
    %140 = arith.addf %138, %139 : vector<34x128xf32>
    %141 = arith.mulf %140, %136 : vector<34x128xf32>
    %cst_67 = arith.constant 1.42141378 : f32
    %142 = vector.broadcast %cst_67 : f32 to vector<34x128xf32>
    %143 = arith.addf %141, %142 : vector<34x128xf32>
    %144 = arith.mulf %143, %136 : vector<34x128xf32>
    %cst_68 = arith.constant -0.284496725 : f32
    %145 = vector.broadcast %cst_68 : f32 to vector<34x128xf32>
    %146 = arith.addf %144, %145 : vector<34x128xf32>
    %147 = arith.mulf %146, %136 : vector<34x128xf32>
    %cst_69 = arith.constant 0.254829586 : f32
    %148 = vector.broadcast %cst_69 : f32 to vector<34x128xf32>
    %149 = arith.addf %147, %148 : vector<34x128xf32>
    %150 = arith.mulf %149, %136 : vector<34x128xf32>
    %cst_70 = arith.constant 0.000000e+00 : f32
    %151 = vector.broadcast %cst_70 : f32 to vector<34x128xf32>
    %152 = arith.subf %151, %130 : vector<34x128xf32>
    %153 = arith.mulf %152, %130 : vector<34x128xf32>
    %154 = math.exp %153 : vector<34x128xf32>
    %155 = arith.mulf %150, %154 : vector<34x128xf32>
    %cst_71 = arith.constant 1.000000e+00 : f32
    %156 = vector.broadcast %cst_71 : f32 to vector<34x128xf32>
    %157 = arith.subf %156, %155 : vector<34x128xf32>
    %158 = arith.mulf %129, %157 : vector<34x128xf32>
    %cst_72 = arith.constant 1.000000e+00 : f32
    %159 = vector.broadcast %cst_72 : f32 to vector<34x128xf32>
    %160 = arith.addf %159, %158 : vector<34x128xf32>
    %161 = arith.mulf %122, %160 : vector<34x128xf32>
    %c0_73 = arith.constant 0 : index
    %c0_74 = arith.constant 0 : index
    %c0_75 = arith.constant 0 : index
    %162 = vector.load %arg15[%c0_73, %c0_74, %c0_75] : memref<2x128x32xf32, #tpu.memory_space<vmem>>, vector<1x128x32xf32>
    %163 = vector.shape_cast %162 : vector<1x128x32xf32> to vector<128x32xf32>
    %cst_76 = arith.constant dense<0.000000e+00> : vector<34x32xf32>
    %164 = tpu.matmul %161, %163, %cst_76 {dimension_numbers = #tpu.dot_dimension_numbers<[1], [0], [0], [1], [0, 0, 1, 1], [], []>} : vector<34x128xf32>, vector<128x32xf32>, vector<34x32xf32> -> vector<34x32xf32>
    %c0_77 = arith.constant 0 : index
    %c0_78 = arith.constant 0 : index
    %c0_79 = arith.constant 0 : index
    %165 = vector.load %arg16[%c0_77, %c0_78, %c0_79] : memref<2x1x32xf32, #tpu.memory_space<vmem>>, vector<1x1x32xf32>
    %166 = vector.shape_cast %165 : vector<1x1x32xf32> to vector<1x32xf32>
    %167 = vector.broadcast %166 : vector<1x32xf32> to vector<34x32xf32>
    %168 = arith.addf %164, %167 : vector<34x32xf32>
    %169 = arith.addf %89, %168 : vector<34x32xf32>
    %c1 = arith.constant 1 : index
    %c0_80 = arith.constant 0 : index
    %c0_81 = arith.constant 0 : index
    %170 = vector.load %arg5[%c1, %c0_80, %c0_81] : memref<2x1x32xf32, #tpu.memory_space<vmem>>, vector<1x1x32xf32>
    %171 = vector.shape_cast %170 : vector<1x1x32xf32> to vector<1x32xf32>
    %c1_82 = arith.constant 1 : index
    %c0_83 = arith.constant 0 : index
    %c0_84 = arith.constant 0 : index
    %172 = vector.load %arg6[%c1_82, %c0_83, %c0_84] : memref<2x1x32xf32, #tpu.memory_space<vmem>>, vector<1x1x32xf32>
    %173 = vector.shape_cast %172 : vector<1x1x32xf32> to vector<1x32xf32>
    %cst_85 = arith.constant dense<0.000000e+00> : vector<34xf32>
    %174 = vector.multi_reduction <add>, %169, %cst_85 [1] : vector<34x32xf32> to vector<34xf32>
    %175 = vector.shape_cast %174 : vector<34xf32> to vector<34x1xf32>
    %cst_86 = arith.constant 3.200000e+01 : f32
    %176 = vector.broadcast %cst_86 : f32 to vector<34x1xf32>
    %177 = arith.divf %175, %176 : vector<34x1xf32>
    %178 = vector.broadcast %177 : vector<34x1xf32> to vector<34x32xf32>
    %179 = arith.subf %169, %178 : vector<34x32xf32>
    %180 = arith.mulf %179, %179 : vector<34x32xf32>
    %cst_87 = arith.constant dense<0.000000e+00> : vector<34xf32>
    %181 = vector.multi_reduction <add>, %180, %cst_87 [1] : vector<34x32xf32> to vector<34xf32>
    %182 = vector.shape_cast %181 : vector<34xf32> to vector<34x1xf32>
    %cst_88 = arith.constant 3.200000e+01 : f32
    %183 = vector.broadcast %cst_88 : f32 to vector<34x1xf32>
    %184 = arith.divf %182, %183 : vector<34x1xf32>
    %cst_89 = arith.constant 9.99999974E-6 : f32
    %185 = vector.broadcast %cst_89 : f32 to vector<34x1xf32>
    %186 = arith.addf %184, %185 : vector<34x1xf32>
    %187 = math.rsqrt %186 : vector<34x1xf32>
    %188 = vector.broadcast %187 : vector<34x1xf32> to vector<34x32xf32>
    %189 = arith.mulf %179, %188 : vector<34x32xf32>
    %190 = vector.broadcast %171 : vector<1x32xf32> to vector<34x32xf32>
    %191 = arith.mulf %189, %190 : vector<34x32xf32>
    %192 = vector.broadcast %173 : vector<1x32xf32> to vector<34x32xf32>
    %193 = arith.addf %191, %192 : vector<34x32xf32>
    %c1_90 = arith.constant 1 : index
    %c0_91 = arith.constant 0 : index
    %c0_92 = arith.constant 0 : index
    %194 = vector.load %arg9[%c1_90, %c0_91, %c0_92] : memref<2x32x96xf32, #tpu.memory_space<vmem>>, vector<1x32x96xf32>
    %195 = vector.shape_cast %194 : vector<1x32x96xf32> to vector<32x96xf32>
    %cst_93 = arith.constant dense<0.000000e+00> : vector<34x96xf32>
    %196 = tpu.matmul %193, %195, %cst_93 {dimension_numbers = #tpu.dot_dimension_numbers<[1], [0], [0], [1], [0, 0, 1, 1], [], []>} : vector<34x32xf32>, vector<32x96xf32>, vector<34x96xf32> -> vector<34x96xf32>
    %c1_94 = arith.constant 1 : index
    %c0_95 = arith.constant 0 : index
    %c0_96 = arith.constant 0 : index
    %197 = vector.load %arg10[%c1_94, %c0_95, %c0_96] : memref<2x1x96xf32, #tpu.memory_space<vmem>>, vector<1x1x96xf32>
    %198 = vector.shape_cast %197 : vector<1x1x96xf32> to vector<1x96xf32>
    %199 = vector.broadcast %198 : vector<1x96xf32> to vector<34x96xf32>
    %200 = arith.addf %196, %199 : vector<34x96xf32>
    %201 = vector.extract_strided_slice %200 {offsets = [0, 0], sizes = [34, 8], strides = [1, 1]} : vector<34x96xf32> to vector<34x8xf32>
    %202 = vector.extract_strided_slice %200 {offsets = [0, 8], sizes = [34, 8], strides = [1, 1]} : vector<34x96xf32> to vector<34x8xf32>
    %203 = vector.extract_strided_slice %200 {offsets = [0, 16], sizes = [34, 8], strides = [1, 1]} : vector<34x96xf32> to vector<34x8xf32>
    %204 = vector.extract_strided_slice %200 {offsets = [0, 24], sizes = [34, 8], strides = [1, 1]} : vector<34x96xf32> to vector<34x8xf32>
    %205 = vector.shape_cast %201 : vector<34x8xf32> to vector<1x34x8xf32>
    %206 = vector.shape_cast %202 : vector<34x8xf32> to vector<1x34x8xf32>
    %207 = vector.shape_cast %203 : vector<34x8xf32> to vector<1x34x8xf32>
    %208 = vector.shape_cast %204 : vector<34x8xf32> to vector<1x34x8xf32>
    %209 = tpu.concatenate %205, %206, %207, %208 in 0 : vector<1x34x8xf32>, vector<1x34x8xf32>, vector<1x34x8xf32>, vector<1x34x8xf32> -> vector<4x34x8xf32>
    %cst_97 = arith.constant 0.353553385 : f32
    %210 = vector.broadcast %cst_97 : f32 to vector<4x34x8xf32>
    %211 = arith.mulf %209, %210 : vector<4x34x8xf32>
    %212 = vector.extract_strided_slice %200 {offsets = [0, 32], sizes = [34, 8], strides = [1, 1]} : vector<34x96xf32> to vector<34x8xf32>
    %213 = vector.extract_strided_slice %200 {offsets = [0, 40], sizes = [34, 8], strides = [1, 1]} : vector<34x96xf32> to vector<34x8xf32>
    %214 = vector.extract_strided_slice %200 {offsets = [0, 48], sizes = [34, 8], strides = [1, 1]} : vector<34x96xf32> to vector<34x8xf32>
    %215 = vector.extract_strided_slice %200 {offsets = [0, 56], sizes = [34, 8], strides = [1, 1]} : vector<34x96xf32> to vector<34x8xf32>
    %216 = vector.shape_cast %212 : vector<34x8xf32> to vector<1x34x8xf32>
    %217 = vector.shape_cast %213 : vector<34x8xf32> to vector<1x34x8xf32>
    %218 = vector.shape_cast %214 : vector<34x8xf32> to vector<1x34x8xf32>
    %219 = vector.shape_cast %215 : vector<34x8xf32> to vector<1x34x8xf32>
    %220 = tpu.concatenate %216, %217, %218, %219 in 0 : vector<1x34x8xf32>, vector<1x34x8xf32>, vector<1x34x8xf32>, vector<1x34x8xf32> -> vector<4x34x8xf32>
    %221 = vector.extract_strided_slice %200 {offsets = [0, 64], sizes = [34, 8], strides = [1, 1]} : vector<34x96xf32> to vector<34x8xf32>
    %222 = vector.extract_strided_slice %200 {offsets = [0, 72], sizes = [34, 8], strides = [1, 1]} : vector<34x96xf32> to vector<34x8xf32>
    %223 = vector.extract_strided_slice %200 {offsets = [0, 80], sizes = [34, 8], strides = [1, 1]} : vector<34x96xf32> to vector<34x8xf32>
    %224 = vector.extract_strided_slice %200 {offsets = [0, 88], sizes = [34, 8], strides = [1, 1]} : vector<34x96xf32> to vector<34x8xf32>
    %225 = vector.shape_cast %221 : vector<34x8xf32> to vector<1x34x8xf32>
    %226 = vector.shape_cast %222 : vector<34x8xf32> to vector<1x34x8xf32>
    %227 = vector.shape_cast %223 : vector<34x8xf32> to vector<1x34x8xf32>
    %228 = vector.shape_cast %224 : vector<34x8xf32> to vector<1x34x8xf32>
    %229 = tpu.concatenate %225, %226, %227, %228 in 0 : vector<1x34x8xf32>, vector<1x34x8xf32>, vector<1x34x8xf32>, vector<1x34x8xf32> -> vector<4x34x8xf32>
    "tpu.trace_start"() <{level = 10 : i32, message = "htd,hsd->hts"}> : () -> ()
    %cst_98 = arith.constant dense<0.000000e+00> : vector<4x34x34xf32>
    %230 = tpu.matmul %211, %220, %cst_98 {dimension_numbers = #tpu.dot_dimension_numbers<[2], [2], [1], [1], [0, 0, 0, 1, 1, 1], [0], [0]>} : vector<4x34x8xf32>, vector<4x34x8xf32>, vector<4x34x34xf32> -> vector<4x34x34xf32>
    "tpu.trace_stop"() : () -> ()
    %231 = vector.shape_cast %5 : vector<34x34xf32> to vector<1x34x34xf32>
    %232 = vector.broadcast %231 : vector<1x34x34xf32> to vector<4x34x34xf32>
    %233 = arith.addf %230, %232 : vector<4x34x34xf32>
    %cst_99 = arith.constant dense<0xFF800000> : vector<4x34xf32>
    %234 = vector.multi_reduction <maximumf>, %233, %cst_99 [2] : vector<4x34x34xf32> to vector<4x34xf32>
    %235 = vector.shape_cast %234 : vector<4x34xf32> to vector<4x34x1xf32>
    %236 = vector.broadcast %235 : vector<4x34x1xf32> to vector<4x34x34xf32>
    %237 = arith.subf %233, %236 : vector<4x34x34xf32>
    %238 = math.exp %237 : vector<4x34x34xf32>
    %cst_100 = arith.constant dense<0.000000e+00> : vector<4x34xf32>
    %239 = vector.multi_reduction <add>, %238, %cst_100 [2] : vector<4x34x34xf32> to vector<4x34xf32>
    %240 = vector.shape_cast %239 : vector<4x34xf32> to vector<4x34x1xf32>
    %241 = tpu.reciprocal %240 {approx = true} : vector<4x34x1xf32> -> vector<4x34x1xf32>
    %242 = vector.broadcast %241 : vector<4x34x1xf32> to vector<4x34x34xf32>
    %243 = arith.mulf %238, %242 : vector<4x34x34xf32>
    "tpu.trace_start"() <{level = 10 : i32, message = "hts,hsd->htd"}> : () -> ()
    %cst_101 = arith.constant dense<0.000000e+00> : vector<4x34x8xf32>
    %244 = tpu.matmul %243, %229, %cst_101 {dimension_numbers = #tpu.dot_dimension_numbers<[2], [1], [1], [2], [0, 0, 0, 1, 1, 2], [0], [0]>} : vector<4x34x34xf32>, vector<4x34x8xf32>, vector<4x34x8xf32> -> vector<4x34x8xf32>
    "tpu.trace_stop"() : () -> ()
    %c1_102 = arith.constant 1 : index
    %c0_103 = arith.constant 0 : index
    %c0_104 = arith.constant 0 : index
    %c0_105 = arith.constant 0 : index
    %245 = vector.load %arg11[%c1_102, %c0_103, %c0_104, %c0_105] : memref<2x4x8x32xf32, #tpu.memory_space<vmem>>, vector<1x4x8x32xf32>
    %246 = vector.shape_cast %245 : vector<1x4x8x32xf32> to vector<4x8x32xf32>
    "tpu.trace_start"() <{level = 10 : i32, message = "htd,hde->hte"}> : () -> ()
    %cst_106 = arith.constant dense<0.000000e+00> : vector<4x34x32xf32>
    %247 = tpu.matmul %244, %246, %cst_106 {dimension_numbers = #tpu.dot_dimension_numbers<[2], [1], [1], [2], [0, 0, 0, 1, 1, 2], [0], [0]>} : vector<4x34x8xf32>, vector<4x8x32xf32>, vector<4x34x32xf32> -> vector<4x34x32xf32>
    "tpu.trace_stop"() : () -> ()
    %cst_107 = arith.constant dense<0.000000e+00> : vector<34x32xf32>
    %248 = vector.multi_reduction <add>, %247, %cst_107 [0] : vector<4x34x32xf32> to vector<34x32xf32>
    %249 = arith.addf %169, %248 : vector<34x32xf32>
    %c1_108 = arith.constant 1 : index
    %c0_109 = arith.constant 0 : index
    %c0_110 = arith.constant 0 : index
    %250 = vector.load %arg12[%c1_108, %c0_109, %c0_110] : memref<2x1x32xf32, #tpu.memory_space<vmem>>, vector<1x1x32xf32>
    %251 = vector.shape_cast %250 : vector<1x1x32xf32> to vector<1x32xf32>
    %252 = vector.broadcast %251 : vector<1x32xf32> to vector<34x32xf32>
    %253 = arith.addf %249, %252 : vector<34x32xf32>
    %c1_111 = arith.constant 1 : index
    %c0_112 = arith.constant 0 : index
    %c0_113 = arith.constant 0 : index
    %254 = vector.load %arg7[%c1_111, %c0_112, %c0_113] : memref<2x1x32xf32, #tpu.memory_space<vmem>>, vector<1x1x32xf32>
    %255 = vector.shape_cast %254 : vector<1x1x32xf32> to vector<1x32xf32>
    %c1_114 = arith.constant 1 : index
    %c0_115 = arith.constant 0 : index
    %c0_116 = arith.constant 0 : index
    %256 = vector.load %arg8[%c1_114, %c0_115, %c0_116] : memref<2x1x32xf32, #tpu.memory_space<vmem>>, vector<1x1x32xf32>
    %257 = vector.shape_cast %256 : vector<1x1x32xf32> to vector<1x32xf32>
    %cst_117 = arith.constant dense<0.000000e+00> : vector<34xf32>
    %258 = vector.multi_reduction <add>, %253, %cst_117 [1] : vector<34x32xf32> to vector<34xf32>
    %259 = vector.shape_cast %258 : vector<34xf32> to vector<34x1xf32>
    %cst_118 = arith.constant 3.200000e+01 : f32
    %260 = vector.broadcast %cst_118 : f32 to vector<34x1xf32>
    %261 = arith.divf %259, %260 : vector<34x1xf32>
    %262 = vector.broadcast %261 : vector<34x1xf32> to vector<34x32xf32>
    %263 = arith.subf %253, %262 : vector<34x32xf32>
    %264 = arith.mulf %263, %263 : vector<34x32xf32>
    %cst_119 = arith.constant dense<0.000000e+00> : vector<34xf32>
    %265 = vector.multi_reduction <add>, %264, %cst_119 [1] : vector<34x32xf32> to vector<34xf32>
    %266 = vector.shape_cast %265 : vector<34xf32> to vector<34x1xf32>
    %cst_120 = arith.constant 3.200000e+01 : f32
    %267 = vector.broadcast %cst_120 : f32 to vector<34x1xf32>
    %268 = arith.divf %266, %267 : vector<34x1xf32>
    %cst_121 = arith.constant 9.99999974E-6 : f32
    %269 = vector.broadcast %cst_121 : f32 to vector<34x1xf32>
    %270 = arith.addf %268, %269 : vector<34x1xf32>
    %271 = math.rsqrt %270 : vector<34x1xf32>
    %272 = vector.broadcast %271 : vector<34x1xf32> to vector<34x32xf32>
    %273 = arith.mulf %263, %272 : vector<34x32xf32>
    %274 = vector.broadcast %255 : vector<1x32xf32> to vector<34x32xf32>
    %275 = arith.mulf %273, %274 : vector<34x32xf32>
    %276 = vector.broadcast %257 : vector<1x32xf32> to vector<34x32xf32>
    %277 = arith.addf %275, %276 : vector<34x32xf32>
    %c1_122 = arith.constant 1 : index
    %c0_123 = arith.constant 0 : index
    %c0_124 = arith.constant 0 : index
    %278 = vector.load %arg13[%c1_122, %c0_123, %c0_124] : memref<2x32x128xf32, #tpu.memory_space<vmem>>, vector<1x32x128xf32>
    %279 = vector.shape_cast %278 : vector<1x32x128xf32> to vector<32x128xf32>
    %cst_125 = arith.constant dense<0.000000e+00> : vector<34x128xf32>
    %280 = tpu.matmul %277, %279, %cst_125 {dimension_numbers = #tpu.dot_dimension_numbers<[1], [0], [0], [1], [0, 0, 1, 1], [], []>} : vector<34x32xf32>, vector<32x128xf32>, vector<34x128xf32> -> vector<34x128xf32>
    %c1_126 = arith.constant 1 : index
    %c0_127 = arith.constant 0 : index
    %c0_128 = arith.constant 0 : index
    %281 = vector.load %arg14[%c1_126, %c0_127, %c0_128] : memref<2x1x128xf32, #tpu.memory_space<vmem>>, vector<1x1x128xf32>
    %282 = vector.shape_cast %281 : vector<1x1x128xf32> to vector<1x128xf32>
    %283 = vector.broadcast %282 : vector<1x128xf32> to vector<34x128xf32>
    %284 = arith.addf %280, %283 : vector<34x128xf32>
    %cst_129 = arith.constant 5.000000e-01 : f32
    %285 = vector.broadcast %cst_129 : f32 to vector<34x128xf32>
    %286 = arith.mulf %285, %284 : vector<34x128xf32>
    %cst_130 = arith.constant 0.707106769 : f32
    %287 = vector.broadcast %cst_130 : f32 to vector<34x128xf32>
    %288 = arith.mulf %284, %287 : vector<34x128xf32>
    %cst_131 = arith.constant 0.000000e+00 : f32
    %289 = vector.broadcast %cst_131 : f32 to vector<34x128xf32>
    %290 = arith.cmpf olt, %288, %289 : vector<34x128xf32>
    %cst_132 = arith.constant -1.000000e+00 : f32
    %cst_133 = arith.constant 1.000000e+00 : f32
    %291 = vector.broadcast %cst_132 : f32 to vector<34x128xf32>
    %292 = vector.broadcast %cst_133 : f32 to vector<34x128xf32>
    %293 = arith.select %290, %291, %292 : vector<34x128xi1>, vector<34x128xf32>
    %294 = math.absf %288 : vector<34x128xf32>
    %cst_134 = arith.constant 0.327591091 : f32
    %295 = vector.broadcast %cst_134 : f32 to vector<34x128xf32>
    %296 = arith.mulf %295, %294 : vector<34x128xf32>
    %cst_135 = arith.constant 1.000000e+00 : f32
    %297 = vector.broadcast %cst_135 : f32 to vector<34x128xf32>
    %298 = arith.addf %297, %296 : vector<34x128xf32>
    %cst_136 = arith.constant 1.000000e+00 : f32
    %299 = vector.broadcast %cst_136 : f32 to vector<34x128xf32>
    %300 = arith.divf %299, %298 : vector<34x128xf32>
    %cst_137 = arith.constant 1.06140542 : f32
    %301 = vector.broadcast %cst_137 : f32 to vector<34x128xf32>
    %302 = arith.mulf %301, %300 : vector<34x128xf32>
    %cst_138 = arith.constant -1.45315206 : f32
    %303 = vector.broadcast %cst_138 : f32 to vector<34x128xf32>
    %304 = arith.addf %302, %303 : vector<34x128xf32>
    %305 = arith.mulf %304, %300 : vector<34x128xf32>
    %cst_139 = arith.constant 1.42141378 : f32
    %306 = vector.broadcast %cst_139 : f32 to vector<34x128xf32>
    %307 = arith.addf %305, %306 : vector<34x128xf32>
    %308 = arith.mulf %307, %300 : vector<34x128xf32>
    %cst_140 = arith.constant -0.284496725 : f32
    %309 = vector.broadcast %cst_140 : f32 to vector<34x128xf32>
    %310 = arith.addf %308, %309 : vector<34x128xf32>
    %311 = arith.mulf %310, %300 : vector<34x128xf32>
    %cst_141 = arith.constant 0.254829586 : f32
    %312 = vector.broadcast %cst_141 : f32 to vector<34x128xf32>
    %313 = arith.addf %311, %312 : vector<34x128xf32>
    %314 = arith.mulf %313, %300 : vector<34x128xf32>
    %cst_142 = arith.constant 0.000000e+00 : f32
    %315 = vector.broadcast %cst_142 : f32 to vector<34x128xf32>
    %316 = arith.subf %315, %294 : vector<34x128xf32>
    %317 = arith.mulf %316, %294 : vector<34x128xf32>
    %318 = math.exp %317 : vector<34x128xf32>
    %319 = arith.mulf %314, %318 : vector<34x128xf32>
    %cst_143 = arith.constant 1.000000e+00 : f32
    %320 = vector.broadcast %cst_143 : f32 to vector<34x128xf32>
    %321 = arith.subf %320, %319 : vector<34x128xf32>
    %322 = arith.mulf %293, %321 : vector<34x128xf32>
    %cst_144 = arith.constant 1.000000e+00 : f32
    %323 = vector.broadcast %cst_144 : f32 to vector<34x128xf32>
    %324 = arith.addf %323, %322 : vector<34x128xf32>
    %325 = arith.mulf %286, %324 : vector<34x128xf32>
    %c1_145 = arith.constant 1 : index
    %c0_146 = arith.constant 0 : index
    %c0_147 = arith.constant 0 : index
    %326 = vector.load %arg15[%c1_145, %c0_146, %c0_147] : memref<2x128x32xf32, #tpu.memory_space<vmem>>, vector<1x128x32xf32>
    %327 = vector.shape_cast %326 : vector<1x128x32xf32> to vector<128x32xf32>
    %cst_148 = arith.constant dense<0.000000e+00> : vector<34x32xf32>
    %328 = tpu.matmul %325, %327, %cst_148 {dimension_numbers = #tpu.dot_dimension_numbers<[1], [0], [0], [1], [0, 0, 1, 1], [], []>} : vector<34x128xf32>, vector<128x32xf32>, vector<34x32xf32> -> vector<34x32xf32>
    %c1_149 = arith.constant 1 : index
    %c0_150 = arith.constant 0 : index
    %c0_151 = arith.constant 0 : index
    %329 = vector.load %arg16[%c1_149, %c0_150, %c0_151] : memref<2x1x32xf32, #tpu.memory_space<vmem>>, vector<1x1x32xf32>
    %330 = vector.shape_cast %329 : vector<1x1x32xf32> to vector<1x32xf32>
    %331 = vector.broadcast %330 : vector<1x32xf32> to vector<34x32xf32>
    %332 = arith.addf %328, %331 : vector<34x32xf32>
    %333 = arith.addf %253, %332 : vector<34x32xf32>
    %c0_152 = arith.constant 0 : index
    %c0_153 = arith.constant 0 : index
    %334 = vector.load %arg17[%c0_152, %c0_153] : memref<1x32xf32, #tpu.memory_space<vmem>>, vector<1x32xf32>
    %c0_154 = arith.constant 0 : index
    %c0_155 = arith.constant 0 : index
    %335 = vector.load %arg18[%c0_154, %c0_155] : memref<1x32xf32, #tpu.memory_space<vmem>>, vector<1x32xf32>
    %cst_156 = arith.constant dense<0.000000e+00> : vector<34xf32>
    %336 = vector.multi_reduction <add>, %333, %cst_156 [1] : vector<34x32xf32> to vector<34xf32>
    %337 = vector.shape_cast %336 : vector<34xf32> to vector<34x1xf32>
    %cst_157 = arith.constant 3.200000e+01 : f32
    %338 = vector.broadcast %cst_157 : f32 to vector<34x1xf32>
    %339 = arith.divf %337, %338 : vector<34x1xf32>
    %340 = vector.broadcast %339 : vector<34x1xf32> to vector<34x32xf32>
    %341 = arith.subf %333, %340 : vector<34x32xf32>
    %342 = arith.mulf %341, %341 : vector<34x32xf32>
    %cst_158 = arith.constant dense<0.000000e+00> : vector<34xf32>
    %343 = vector.multi_reduction <add>, %342, %cst_158 [1] : vector<34x32xf32> to vector<34xf32>
    %344 = vector.shape_cast %343 : vector<34xf32> to vector<34x1xf32>
    %cst_159 = arith.constant 3.200000e+01 : f32
    %345 = vector.broadcast %cst_159 : f32 to vector<34x1xf32>
    %346 = arith.divf %344, %345 : vector<34x1xf32>
    %cst_160 = arith.constant 9.99999974E-6 : f32
    %347 = vector.broadcast %cst_160 : f32 to vector<34x1xf32>
    %348 = arith.addf %346, %347 : vector<34x1xf32>
    %349 = math.rsqrt %348 : vector<34x1xf32>
    %350 = vector.broadcast %349 : vector<34x1xf32> to vector<34x32xf32>
    %351 = arith.mulf %341, %350 : vector<34x32xf32>
    %352 = vector.broadcast %334 : vector<1x32xf32> to vector<34x32xf32>
    %353 = arith.mulf %351, %352 : vector<34x32xf32>
    %354 = vector.broadcast %335 : vector<1x32xf32> to vector<34x32xf32>
    %355 = arith.addf %353, %354 : vector<34x32xf32>
    %c0_161 = arith.constant 0 : index
    %c0_162 = arith.constant 0 : index
    %356 = vector.load %arg4[%c0_161, %c0_162] : memref<2x34xf32, #tpu.memory_space<vmem>>, vector<2x34xf32>
    %cst_163 = arith.constant dense<0.000000e+00> : vector<2x32xf32>
    %357 = tpu.matmul %356, %355, %cst_163 {dimension_numbers = #tpu.dot_dimension_numbers<[1], [0], [0], [1], [0, 0, 1, 1], [], []>} : vector<2x34xf32>, vector<34x32xf32>, vector<2x32xf32> -> vector<2x32xf32>
    %c0_164 = arith.constant 0 : index
    %c0_165 = arith.constant 0 : index
    %358 = vector.load %arg19[%c0_164, %c0_165] : memref<2x32xf32, #tpu.memory_space<vmem>>, vector<2x32xf32>
    tpu.vector_store %arg19[%c0_164, %c0_165], %357 {strides = array<i32>} : memref<2x32xf32, #tpu.memory_space<vmem>>, vector<2x32xf32>,
    return
  }
}

</mosaic_0001>

<bundles_post_ra>
// kernel: tpu_custom_call.1
= control target key start
LH: loop header
LB: loop body
LE: loop exit
PB: predicated region body
PF: predicated region fallthrough
CT: control target
= control target key end

     0   :  { %s9257_s0 = inlined_call_operand.vmem [shape: f32[34,48], index: 0, kind: input, shape index: {}]   ;;  %s9258_s1 = inlined_call_operand.vmem [shape: f32[48,32], index: 1, kind: input, shape index: {}]   ;;  %s9259_s2 = inlined_call_operand.vmem [shape: f32[34,32], index: 2, kind: input, shape index: {}]   ;;  %s9260_s3 = inlined_call_operand.vmem [shape: f32[34,34], index: 3, kind: input, shape index: {}]   ;;  %s9261_s4 = inlined_call_operand.vmem [shape: f32[2,34], index: 4, kind: input, shape index: {}]   ;;  %s9262_s5 = inlined_call_operand.vmem [shape: f32[2,1,32], index: 5, kind: input, shape index: {}]   ;;  %s9263_s6 = inlined_call_operand.vmem [shape: f32[2,1,32], index: 6, kind: input, shape index: {}]   ;;  %s9264_s7 = inlined_call_operand.vmem [shape: f32[2,1,32], index: 7, kind: input, shape index: {}]   ;;  %s9265_s8 = inlined_call_operand.vmem [shape: f32[2,1,32], index: 8, kind: input, shape index: {}]   ;;  %s9266_s9 = inlined_call_operand.vmem [shape: f32[2,32,96], index: 9, kind: input, shape index: {}]   ;;  %s9267_s10 = inlined_call_operand.vmem [shape: f32[2,1,96], index: 10, kind: input, shape index: {}]   ;;  %s9268_s11 = inlined_call_operand.vmem [shape: f32[2,4,8,32], index: 11, kind: input, shape index: {}]   ;;  %s9269_s12 = inlined_call_operand.vmem [shape: f32[2,1,32], index: 12, kind: input, shape index: {}]   ;;  %s9270_s13 = inlined_call_operand.vmem [shape: f32[2,32,128], index: 13, kind: input, shape index: {}]   ;;  %s9271_s14 = inlined_call_operand.vmem [shape: f32[2,1,128], index: 14, kind: input, shape index: {}]   ;;  %s9272_s15 = inlined_call_operand.vmem [shape: f32[2,128,32], index: 15, kind: input, shape index: {}]   ;;  %s9273_s16 = inlined_call_operand.vmem [shape: f32[2,1,32], index: 16, kind: input, shape index: {}]   ;;  %s9274_s17 = inlined_call_operand.vmem [shape: f32[1,32], index: 17, kind: input, shape index: {}]   ;;  %s9275_s18 = inlined_call_operand.vmem [shape: f32[1,32], index: 18, kind: input, shape index: {}]   ;;  %s9276_s19 = inlined_call_operand.hbm [shape: f32[2,32], index: 19, kind: output, shape index: {}]  }
   0x1   :  { %9281 = sst [smem:[#allocation5_spill]] %s9257_s0 }
   0x2   :  { %9282 = sst [smem:[#allocation6_spill]] %s9258_s1 }
   0x3   :  { %9283 = sst [smem:[#allocation7_spill]] %s9259_s2 }
   0x4   :  { %9284 = sst [smem:[#allocation8_spill]] %s9260_s3 }
   0x5   :  { %s9285_s20 = sld [smem:[#allocation6_spill]]  ;;  %v7180_v3 = vmov 0.0|0.0   ;;  %vm7181_vm0 = vmmov 0   ;;  %v7182_v6 = vmov 0.0  }
   0x6   :  { %6530 = vmatprep.subr.bf16.mxu0 %v7180_v3  ;;  %5780 = vmatprep.mubr.msk.f32.mxu0 %vm7181_vm0, %v7182_v6 }
   0x7   :  { %6539 = vmatprep.subr.bf16.mxu1 %v7180_v3  ;;  %5803 = vmatprep.mubr.msk.f32.mxu1 %vm7181_vm0, %v7182_v6 }
   0xb   :  { %v68_v0 = vld [vmem:[%s9285_s20] sm:$0xff]  ;;  %v69_v1 = vld [vmem:[%s9285_s20 + $0x8] sm:$0xff]  ;;  %v70_v2 = vld [vmem:[%s9285_s20 + $0x10] sm:$0xff] }
   0xc   :  { %v6531_v4 = vpack.c.bf16 %v69_v1, %v68_v0  ;;  %v71_v5 = vld [vmem:[%s9285_s20 + $0x18] sm:$0xff]  ;;  %v72_v8 = vld [vmem:[%s9285_s20 + $0x20] sm:$0xff]  ;;  %v73_v9 = vld [vmem:[%s9285_s20 + $0x28] sm:$0xff] }
   0xd   :  { %v6534_v7 = vpack.c.bf16 %v71_v5, %v70_v2 }
   0xe   :  { %6532 = vmatpush3.bf16.msra.mxu0 %v6531_v4 }
   0xf   :  { %6533 = vmatprep.subr.bf16.mxu0 %v7180_v3 }
  0x10   :  { %24 = vsyncpa [#allocation3], 0  ;;  %v6537_v10 = vpack.c.bf16 %v73_v9, %v72_v8  ;;  %s9286_s0 = sld [smem:[#allocation5_spill]]  ;;  %vm79_vm1 = vcmask 392192   ;;  %s9287_s26 = sld [smem:[#allocation7_spill]]  ;;  %vm192_vm2 = vcmask 261120  }
  0x11   :  { %vm205_vm3 = vcmask 254976   ;;  %v282_v2 = vld [vmem:[%s9266_s9] sm:$0xff]  ;;  %v283_v4 = vld [vmem:[%s9266_s9 + $0x8] sm:$0xff]  ;;  %v285_v8 = vld [vmem:[%s9266_s9 + $0x18] sm:$0xff]  ;;  %s7183_s1 = smov 120   ;;  %s7184_s22 = smov 112  }
  0x12   :  { %6535 = vmatpush3.bf16.msra.mxu0 %v6534_v7  ;;  %v6540_v5 = vpack.c.bf16 %v283_v4, %v282_v2  ;;  %v284_v7 = vld [vmem:[%s9266_s9 + $0x10] sm:$0xff]  ;;  %s7185_s2 = smov 104   ;;  %s7186_s23 = smov 96   ;;  %vm478_vm4 = vcmask 64512   ;;  %vm1220_vm6 = vcmask 1041408   ;;  %vm969_vm7 = vcmask 277504  }
  0x13   :  { %6536 = vmatprep.subr.bf16.mxu0 %v7180_v3  ;;  %v6543_v9 = vpack.c.bf16 %v285_v8, %v284_v7  ;;  %s7187_s24 = smov 64   ;;  %vm7542_vm5 = vmpackc.low %vm478_vm4, %vm478_vm4  ;;  %vm982_vm8 = vcmask 271360  }
  0x14   :  { %6541 = vmatpush3.bf16.msra.mxu1 %v6540_v5 }
  0x15   :  { %6542 = vmatprep.subr.bf16.mxu1 %v7180_v3 }
  0x16   :  { %6538 = vmatpush3.bf16.msra.mxu0 %v6537_v10  ;;  %v63_v11 = vld [vmem:[%s9286_s0] sm:$0xff]  ;;  %v64_v12 = vld [vmem:[%s9286_s0 + $0x8] sm:$0xff]  ;;  %v65_v13 = vld [vmem:[%s9286_s0 + $0x10] sm:$0xff] }
  0x17   :  { %6553 = vmatprep.subr.bf16.mxu0 %v7180_v3  ;;  %v66_v14 = vld [vmem:[%s9286_s0 + $0x18] sm:$0xff]  ;;  %v67_v15 = vld [vmem:[%s9286_s0 + $0x20] sm:$0x3]  ;;  %v75_v20 = vld [vmem:[%s9287_s26 + $0x8] sm:$0xff] }
  0x18   :  { %v74_v16 = vld [vmem:[%s9287_s26] sm:$0xff]  ;;  %v76_v25 = vld [vmem:[%s9287_s26 + $0x10] sm:$0xff]  ;;  %v77_v30 = vld [vmem:[%s9287_s26 + $0x18] sm:$0xff]  ;;  %6544 = vmatpush3.bf16.msra.mxu1 %v6543_v9 }
  0x19   :  { %5781 = vmatmul.mubr.msk.f32.vlgmr.msra.gmra.mrb[0].mxu0 %vm79_vm1, %v63_v11  ;;  %v78_v35 = vld [vmem:[%s9287_s26 + $0x20] sm:$0x3]  ;;  %6545 = vmatprep.subr.bf16.mxu1 %v7180_v3  ;;  %s9290_s26 = sld [smem:[#allocation8_spill]] }
  0x1a   :  { %5783 = vmatprep.mubr.msk.f32.mxu0 %vm7181_vm0, %v7182_v6 }
  0x1d   :  { %5784 = vmatmul.mubr.msk.f32.gmra.mrb[2].mxu0 %vm79_vm1, %v64_v12 }
  0x1e   :  { %5786 = vmatprep.mubr.msk.f32.mxu0 %vm7181_vm0, %v7182_v6 }
  0x21   :  { %5787 = vmatmul.mubr.msk.f32.gmra.mrb[4].mxu0 %vm79_vm1, %v65_v13 }
  0x22   :  { %5789 = vmatprep.mubr.msk.f32.mxu0 %vm7181_vm0, %v7182_v6 }
  0x25   :  { %5790 = vmatmul.mubr.msk.f32.gmra.mrb[6].mxu0 %vm79_vm1, %v66_v14 }
  0x26   :  { %5792 = vmatprep.mubr.msk.f32.mxu0 %vm7181_vm0, %v7182_v6 }
  0x29   :  { %5793 = vmatmul.mubr.msk.f32.gmra.mrb[8].mxu0 %vm79_vm1, %v67_v15 }
  0x2a   :  { %5853 = vmatprep.mubr.msk.f32.mxu0 %vm7181_vm0, %v7182_v6 }
  0xec   :  { %v161_v17 = vpop.f32.mrb[0].mxu0 }
  0xed   :  { %v7345_v18 = vadd.f32 %v161_v17, %v74_v16  ;;  %v5782_v19 = vpop.f32.mrb[1].mxu0 }
  0xef   :  { %v193_v21 = vsel %vm192_vm2, %v7345_v18, 0.0 }
  0xf0   :  { %194 = vadd.xlane.f32.xlu0 %v193_v21  ;;  %v166_v22 = vpop.f32.mrb[2].mxu0 }
  0xf1   :  { %v7352_v23 = vadd.f32 %v166_v22, %v75_v20  ;;  %v5785_v24 = vpop.f32.mrb[3].mxu0 }
  0xf3   :  { %v196_v26 = vsel %vm192_vm2, %v7352_v23, 0.0 }
  0xf4   :  { %197 = vadd.xlane.f32.xlu0 %v196_v26  ;;  %v171_v27 = vpop.f32.mrb[4].mxu0 }
  0xf5   :  { %v7359_v28 = vadd.f32 %v171_v27, %v76_v25  ;;  %v5788_v29 = vpop.f32.mrb[5].mxu0  ;;  %v5221_v25 = vld [vmem:[%s9262_s5] ss:$0 sm:$0xff] }
  0xf7   :  { %v199_v31 = vsel %vm192_vm2, %v7359_v28, 0.0 }
  0xf8   :  { %200 = vadd.xlane.f32.xlu1 %v199_v31  ;;  %v176_v32 = vpop.f32.mrb[6].mxu0 }
  0xf9   :  { %v7366_v33 = vadd.f32 %v176_v32, %v77_v30  ;;  %v5791_v34 = vpop.f32.mrb[7].mxu0  ;;  %v5222_v30 = vld [vmem:[%s9263_s6] ss:$0 sm:$0xff] }
  0xfb   :  { %v202_v36 = vsel %vm192_vm2, %v7366_v33, 0.0 }
  0xfc   :  { %203 = vadd.xlane.f32.xlu1 %v202_v36  ;;  %v181_v37 = vpop.f32.mrb[8].mxu0 }
  0xfd   :  { %v7373_v38 = vadd.f32 %v181_v37, %v78_v35  ;;  %v5794_v39 = vpop.f32.mrb[9].mxu0 }
  0xff   :  { %v206_v40 = vsel %vm205_vm3, %v7373_v38, 0.0 }
 0x100   :  { %207 = vadd.xlane.f32.xlu0 %v206_v40 }
 0x17d   :  { %v195_v41 = vpop.xlane.xlu0 %194 }
 0x17e   :  { %v210_v42 = vmul.f32 0.03125, %v195_v41 }
 0x180   :  { %v215_v43 = vsub.f32 %v7345_v18, %v210_v42 }
 0x181   :  { %v198_v44 = vpop.xlane.xlu0 %197 }
 0x182   :  { %v211_v45 = vmul.f32 0.03125, %v198_v44  ;;  %v220_v46 = vmul.f32 %v215_v43, %v215_v43 }
 0x184   :  { %v216_v47 = vsub.f32 %v7352_v23, %v211_v45  ;;  %v225_v48 = vsel %vm192_vm2, %v220_v46, 0.0 }
 0x185   :  { %v201_v49 = vpop.xlane.xlu1 %200  ;;  %226 = vadd.xlane.f32.xlu1 %v225_v48 }
 0x186   :  { %v212_v50 = vmul.f32 0.03125, %v201_v49  ;;  %v221_v51 = vmul.f32 %v216_v47, %v216_v47 }
 0x188   :  { %v217_v52 = vsub.f32 %v7359_v28, %v212_v50  ;;  %v228_v53 = vsel %vm192_vm2, %v221_v51, 0.0 }
 0x189   :  { %v204_v54 = vpop.xlane.xlu1 %203  ;;  %229 = vadd.xlane.f32.xlu0 %v228_v53 }
 0x18a   :  { %v213_v55 = vmul.f32 0.03125, %v204_v54  ;;  %v222_v56 = vmul.f32 %v217_v52, %v217_v52 }
 0x18c   :  { %v218_v57 = vsub.f32 %v7366_v33, %v213_v55  ;;  %v231_v58 = vsel %vm192_vm2, %v222_v56, 0.0 }
 0x18d   :  { %232 = vadd.xlane.f32.xlu1 %v231_v58  ;;  %v208_v59 = vpop.xlane.xlu0 %207 }
 0x18e   :  { %v214_v60 = vmul.f32 0.03125, %v208_v59  ;;  %v223_v61 = vmul.f32 %v218_v57, %v218_v57 }
 0x190   :  { %v219_v62 = vsub.f32 %v7373_v38, %v214_v60  ;;  %v234_v63 = vsel %vm192_vm2, %v223_v61, 0.0 }
 0x191   :  { %235 = vadd.xlane.f32.xlu0 %v234_v63 }
 0x192   :  { %v224_v0 = vmul.f32 %v219_v62, %v219_v62 }
 0x194   :  { %v237_v1 = vsel %vm205_vm3, %v224_v0, 0.0 }
 0x195   :  { %238 = vadd.xlane.f32.xlu1 %v237_v1 }
 0x212   :  { %v227_v10 = vpop.xlane.xlu1 %226 }
 0x213   :  { %v240_v11 = vmul.f32 0.03125, %v227_v10 }
 0x215   :  { %v245_v12 = vadd.f32 1e-05, %v240_v11 }
 0x216   :  { %v230_v13 = vpop.xlane.xlu0 %229 }
 0x217   :  { %6901 = vrsqrt.f32 %v245_v12  ;;  %v241_v14 = vmul.f32 0.03125, %v230_v13 }
 0x219   :  { %v246_v15 = vadd.f32 1e-05, %v241_v14 }
 0x21a   :  { %v233_v16 = vpop.xlane.xlu1 %232 }
 0x21b   :  { %6903 = vrsqrt.f32 %v246_v15  ;;  %v242_v17 = vmul.f32 0.03125, %v233_v16 }
 0x21d   :  { %v247_v19 = vadd.f32 1e-05, %v242_v17 }
 0x21e   :  { %v236_v20 = vpop.xlane.xlu0 %235 }
 0x21f   :  { %6905 = vrsqrt.f32 %v247_v19  ;;  %v243_v21 = vmul.f32 0.03125, %v236_v20 }
 0x221   :  { %v6902_v22 = vpop.eup %6901  ;;  %v248_v24 = vadd.f32 1e-05, %v243_v21 }
 0x222   :  { %v239_v26 = vpop.xlane.xlu1 %238  ;;  %v255_v27 = vmul.f32 %v6902_v22, %v215_v43 }
 0x223   :  { %6907 = vrsqrt.f32 %v248_v24  ;;  %v244_v29 = vmul.f32 0.03125, %v239_v26 }
 0x224   :  { %v266_v31 = vmul.f32 %v5221_v25, %v255_v27 }
 0x225   :  { %v6904_v32 = vpop.eup %6903  ;;  %v249_v34 = vadd.f32 1e-05, %v244_v29 }
 0x226   :  { %v277_v35 = vadd.f32 %v5222_v30, %v266_v31  ;;  %v256_v36 = vmul.f32 %v6904_v32, %v216_v47 }
 0x227   :  { %6909 = vrsqrt.f32 %v249_v34 }
 0x228   :  { %5804 = vmatmul.mubr.msk.f32.vlgmr.msra.gmra.mrb[0].mxu1 %vm192_vm2, %v277_v35  ;;  %v267_v37 = vmul.f32 %v5221_v25, %v256_v36 }
 0x229   :  { %v6906_v39 = vpop.eup %6905  ;;  %5806 = vmatprep.mubr.msk.f32.mxu1 %vm7181_vm0, %v7182_v6 }
 0x22a   :  { %v278_v40 = vadd.f32 %v5222_v30, %v267_v37  ;;  %v257_v41 = vmul.f32 %v6906_v39, %v217_v52  ;;  %v5223_v52 = vld [vmem:[%s9267_s10] ss:$0 sm:$0xff] }
 0x22c   :  { %5807 = vmatmul.mubr.msk.f32.gmra.mrb[2].mxu1 %vm192_vm2, %v278_v40  ;;  %v268_v42 = vmul.f32 %v5221_v25, %v257_v41 }
 0x22d   :  { %v6908_v43 = vpop.eup %6907  ;;  %5809 = vmatprep.mubr.msk.f32.mxu1 %vm7181_vm0, %v7182_v6 }
 0x22e   :  { %v279_v44 = vadd.f32 %v5222_v30, %v268_v42  ;;  %v258_v45 = vmul.f32 %v6908_v43, %v218_v57 }
 0x230   :  { %5810 = vmatmul.mubr.msk.f32.gmra.mrb[4].mxu1 %vm192_vm2, %v279_v44  ;;  %v269_v46 = vmul.f32 %v5221_v25, %v258_v45 }
 0x231   :  { %v6910_v47 = vpop.eup %6909  ;;  %5812 = vmatprep.mubr.msk.f32.mxu1 %vm7181_vm0, %v7182_v6 }
 0x232   :  { %v280_v48 = vadd.f32 %v5222_v30, %v269_v46  ;;  %v259_v49 = vmul.f32 %v6910_v47, %v219_v62 }
 0x234   :  { %5813 = vmatmul.mubr.msk.f32.gmra.mrb[6].mxu1 %vm192_vm2, %v280_v48  ;;  %v270_v50 = vmul.f32 %v5221_v25, %v259_v49 }
 0x235   :  { %5815 = vmatprep.mubr.msk.f32.mxu1 %vm7181_vm0, %v7182_v6 }
 0x236   :  { %v281_v51 = vadd.f32 %v5222_v30, %v270_v50 }
 0x238   :  { %5816 = vmatmul.mubr.msk.f32.gmra.mrb[8].mxu1 %vm192_vm2, %v281_v51 }
 0x239   :  { %5828 = vmatprep.mubr.msk.f32.mxu1 %vm7181_vm0, %v7182_v6 }
 0x2fb   :  { %v374_v53 = vpop.f32.mrb[0].mxu1 }
 0x2fc   :  { %v7425_v54 = vadd.f32 %v5223_v52, %v374_v53  ;;  %v5805_v55 = vpop.f32.mrb[1].mxu1 }
 0x2fe   :  { %403 = vrot.lane.b32.xlu0 %v7425_v54, %s7183_s1  ;;  %v448_v44 = vmul.f32 0.35355338, %v7425_v54 }
 0x2ff   :  { %v379_v56 = vpop.f32.mrb[2].mxu1 }
 0x300   :  { %v7429_v57 = vadd.f32 %v5223_v52, %v379_v56  ;;  %v5808_v58 = vpop.f32.mrb[3].mxu1 }
 0x302   :  { %420 = vrot.lane.b32.xlu0 %v7429_v57, %s7184_s22  ;;  %405 = vrot.lane.b32.xlu1 %v7429_v57, %s7183_s1  ;;  %v6741_v59 = vpack.i.bf16 %v7429_v57, %v7425_v54  ;;  %v449_v45 = vmul.f32 0.35355338, %v7429_v57 }
 0x303   :  { %v384_v60 = vpop.f32.mrb[4].mxu1 }
 0x304   :  { %v7437_v61 = vadd.f32 %v5223_v52, %v384_v60  ;;  %v5811_v62 = vpop.f32.mrb[5].mxu1 }
 0x306   :  { %407 = vrot.lane.b32.xlu1 %v7437_v61, %s7183_s1  ;;  %v450_v46 = vmul.f32 0.35355338, %v7437_v61 }
 0x307   :  { %v389_v63 = vpop.f32.mrb[6].mxu1 }
 0x308   :  { %v7441_v0 = vadd.f32 %v5223_v52, %v389_v63  ;;  %v5814_v1 = vpop.f32.mrb[7].mxu1 }
 0x30a   :  { %409 = vrot.lane.b32.xlu1 %v7441_v0, %s7183_s1  ;;  %v6751_v2 = vpack.i.bf16 %v7441_v0, %v7437_v61  ;;  %v451_v47 = vmul.f32 0.35355338, %v7441_v0 }
 0x30b   :  { %v394_v4 = vpop.f32.mrb[8].mxu1 }
 0x30c   :  { %v7447_v5 = vadd.f32 %v5223_v52, %v394_v4  ;;  %v5817_v7 = vpop.f32.mrb[9].mxu1 }
 0x30e   :  { %418 = vrot.lane.b32.xlu1 %v7425_v54, %s7184_s22  ;;  %411 = vrot.lane.b32.xlu0 %v7447_v5, %s7183_s1  ;;  %v452_v48 = vmul.f32 0.35355338, %v7447_v5 }
 0x312   :  { %433 = vrot.lane.b32.xlu1 %v7425_v54, %s7185_s2  ;;  %435 = vrot.lane.b32.xlu0 %v7429_v57, %s7185_s2 }
 0x316   :  { %422 = vrot.lane.b32.xlu1 %v7437_v61, %s7184_s22  ;;  %424 = vrot.lane.b32.xlu0 %v7441_v0, %s7184_s22 }
 0x31a   :  { %437 = vrot.lane.b32.xlu1 %v7437_v61, %s7185_s2  ;;  %439 = vrot.lane.b32.xlu0 %v7441_v0, %s7185_s2 }
 0x31e   :  { %426 = vrot.lane.b32.xlu1 %v7447_v5, %s7184_s22  ;;  %441 = vrot.lane.b32.xlu0 %v7447_v5, %s7185_s2 }
 0x322   :  { %6742 = vrot.lane.b32.xlu1 %v6741_v59, %s7186_s23 }
 0x326   :  { %6752 = vrot.lane.b32.xlu1 %v6751_v2, %s7186_s23 }
 0x32a   :  { %476 = vrot.lane.b32.xlu1 %v7447_v5, %s7186_s23 }
 0x370   :  { %v7473_v8 = vpop.permute.xlu0 %403 }
 0x374   :  { %v7475_v9 = vpop.permute.xlu1 %405  ;;  %v7482_v12 = vpop.permute.xlu0 %420 }
 0x375   :  { %v6746_v10 = vpack.i.bf16 %v7475_v9, %v7473_v8 }
 0x377   :  { %6747 = vrot.lane.b32.xlu0 %v6746_v10, %s7186_s23 }
 0x378   :  { %v7480_v11 = vpop.permute.xlu1 %407 }
 0x37c   :  { %v7484_v13 = vpop.permute.xlu1 %409 }
 0x37d   :  { %v6756_v14 = vpack.i.bf16 %v7484_v13, %v7480_v11 }
 0x37f   :  { %6757 = vrot.lane.b32.xlu0 %v6756_v14, %s7186_s23 }
 0x380   :  { %v7489_v15 = vpop.permute.xlu1 %418  ;;  %v7491_v16 = vpop.permute.xlu0 %411 }
 0x381   :  { %v7495_v17 = vpack.i.bf16 %v7482_v12, %v7489_v15 }
 0x383   :  { %6762 = vrot.lane.b32.xlu1 %v7495_v17, %s7186_s23  ;;  %602 = vrot.lane.b32.xlu0 %v7491_v16, %s7186_s23 }
 0x384   :  { %v7501_v19 = vpop.permute.xlu1 %433  ;;  %v7503_v20 = vpop.permute.xlu0 %435 }
 0x385   :  { %v7507_v21 = vpack.i.bf16 %v7503_v20, %v7501_v19 }
 0x387   :  { %6767 = vrot.lane.b32.xlu0 %v7507_v21, %s7186_s23 }
 0x388   :  { %v7511_v22 = vpop.permute.xlu1 %422  ;;  %v7513_v24 = vpop.permute.xlu0 %424 }
 0x389   :  { %v7517_v25 = vpack.i.bf16 %v7513_v24, %v7511_v22 }
 0x38b   :  { %6772 = vrot.lane.b32.xlu1 %v7517_v25, %s7186_s23 }
 0x38c   :  { %v7521_v26 = vpop.permute.xlu1 %437  ;;  %v7523_v27 = vpop.permute.xlu0 %439 }
 0x38d   :  { %v7527_v29 = vpack.i.bf16 %v7523_v27, %v7521_v26 }
 0x38f   :  { %6777 = vrot.lane.b32.xlu0 %v7527_v29, %s7186_s23 }
 0x390   :  { %v7531_v30 = vpop.permute.xlu1 %426  ;;  %v7535_v31 = vpop.permute.xlu0 %441 }
 0x391   :  { %727 = vrot.lane.b32.xlu1 %v7531_v30, %s7186_s23 }
 0x393   :  { %852 = vrot.lane.b32.xlu0 %v7535_v31, %s7186_s23 }
 0x394   :  { %v6743_v32 = vpop.permute.xlu1 %6742 }
 0x395   :  { %v6745_v34 = vunpack.i.h.bf16 %v6743_v32  ;;  %v6744_v35 = vunpack.i.l.bf16 %v6743_v32  ;;  %6782 = vrot.lane.b32.xlu1 %v6741_v59, %s7187_s24  ;;  %v454_v32 = vmul.f32 0.35355338, %v7475_v9 }
 0x397   :  { %v6546_v37 = vpack.c.bf16 %v6745_v34, %v6744_v35  ;;  %6787 = vrot.lane.b32.xlu0 %v6751_v2, %s7187_s24 }
 0x398   :  { %v6753_v39 = vpop.permute.xlu1 %6752 }
 0x399   :  { %6548 = vmatpush3.bf16.xpose.msk.msra.mxu1 %vm7542_vm5, %v6546_v37  ;;  %6792 = vrot.lane.b32.xlu1 %v6746_v10, %s7187_s24  ;;  %v6755_v40 = vunpack.i.h.bf16 %v6753_v39  ;;  %v6754_v41 = vunpack.i.l.bf16 %v6753_v39  ;;  %v455_v39 = vmul.f32 0.35355338, %v7480_v11 }
 0x39a   :  { %6549 = vmatprep.subr.bf16.mxu1 %v7180_v3 }
 0x39b   :  { %1199 = vrot.lane.b32.xlu0 %v7447_v5, %s7187_s24  ;;  %v6550_v42 = vpack.c.bf16 %v6755_v40, %v6754_v41  ;;  %v453_v5 = vmul.f32 0.35355338, %v7473_v8 }
 0x39c   :  { %v477_v43 = vpop.permute.xlu1 %476 }
 0x39d   :  { %6797 = vrot.lane.b32.xlu1 %v6756_v14, %s7187_s24 }
 0x3a1   :  { %6552 = vmatpush3.bf16.xpose.msk.msra.mxu1 %vm7542_vm5, %v6550_v42 }
 0x3a2   :  { %5826 = vmatprep.subr.mxu1 %v7182_v6 }
 0x3a9   :  { %5827 = vmatpush3.xpose.msk.msra.mxu1 %vm478_vm4, %v477_v43 }
 0x3aa   :  { %6561 = vmatprep.subr.bf16.mxu1 %v7180_v3 }
 0x3ac   :  { %5829 = vmatmul.mubr.msk.f32.vlgmr.msra.gmra.mrb[10].mxu1 %vm478_vm4, %v448_v44  ;;  %v456_v44 = vmul.f32 0.35355338, %v7484_v13  ;;  %v459_v13 = vmul.f32 0.35355338, %v7482_v12  ;;  %v463_v12 = vmul.f32 0.35355338, %v7501_v19 }
 0x3ad   :  { %5831 = vmatprep.mubr.msk.f32.mxu1 %vm7181_vm0, %v7182_v6  ;;  %v464_v19 = vmul.f32 0.35355338, %v7503_v20  ;;  %v465_v20 = vmul.f32 0.35355338, %v7521_v26  ;;  %v467_v26 = vmul.f32 0.35355338, %v7535_v31 }
 0x3b0   :  { %5832 = vmatmul.mubr.msk.f32.gmra.mrb[12].mxu1 %vm478_vm4, %v449_v45  ;;  %v458_v45 = vmul.f32 0.35355338, %v7489_v15  ;;  %v457_v15 = vmul.f32 0.35355338, %v7491_v16 }
 0x3b1   :  { %5834 = vmatprep.mubr.msk.f32.mxu1 %vm7181_vm0, %v7182_v6 }
 0x3b4   :  { %5835 = vmatmul.mubr.msk.f32.gmra.mrb[14].mxu1 %vm478_vm4, %v450_v46 }
 0x3b5   :  { %5837 = vmatprep.mubr.msk.f32.mxu1 %vm7181_vm0, %v7182_v6 }
 0x3b8   :  { %5838 = vmatmul.mubr.msk.f32.gmra.mrb[16].mxu1 %vm478_vm4, %v451_v47 }
 0x3b9   :  { %5840 = vmatprep.mubr.msk.f32.mxu1 %vm7181_vm0, %v7182_v6 }
 0x3bc   :  { %5841 = vmatmul.mubr.msk.f32.gmra.mrb[18].mxu1 %vm478_vm4, %v452_v48 }
 0x3bd   :  { %5878 = vmatprep.mubr.msk.f32.mxu1 %vm7181_vm0, %v7182_v6 }
 0x3e9   :  { %v6748_v49 = vpop.permute.xlu0 %6747 }
 0x3ea   :  { %v6750_v50 = vunpack.i.h.bf16 %v6748_v49  ;;  %v6749_v51 = vunpack.i.l.bf16 %v6748_v49 }
 0x3ec   :  { %v6554_v52 = vpack.c.bf16 %v6750_v50, %v6749_v51 }
 0x3ee   :  { %6556 = vmatpush3.bf16.xpose.msk.msra.mxu0 %vm7542_vm5, %v6554_v52 }
 0x3ef   :  { %6557 = vmatprep.subr.bf16.mxu0 %v7180_v3 }
 0x3f1   :  { %v6758_v53 = vpop.permute.xlu0 %6757 }
 0x3f2   :  { %v6760_v54 = vunpack.i.h.bf16 %v6758_v53  ;;  %v6759_v55 = vunpack.i.l.bf16 %v6758_v53  ;;  %v460_v53 = vmul.f32 0.35355338, %v7511_v22  ;;  %v461_v22 = vmul.f32 0.35355338, %v7513_v24 }
 0x3f3   :  { %v462_v24 = vmul.f32 0.35355338, %v7531_v30 }
 0x3f4   :  { %v6558_v56 = vpack.c.bf16 %v6760_v54, %v6759_v55 }
 0x3f5   :  { %v6763_v57 = vpop.permute.xlu1 %6762  ;;  %v603_v58 = vpop.permute.xlu0 %602 }
 0x3f6   :  { %v6765_v59 = vunpack.i.h.bf16 %v6763_v57  ;;  %v6764_v60 = vunpack.i.l.bf16 %v6763_v57  ;;  %6560 = vmatpush3.bf16.xpose.msk.msra.mxu0 %vm7542_vm5, %v6558_v56 }
 0x3f7   :  { %5851 = vmatprep.subr.mxu0 %v7182_v6 }
 0x3f8   :  { %v6562_v61 = vpack.c.bf16 %v6765_v59, %v6764_v60  ;;  %v466_v59 = vmul.f32 0.35355338, %v7523_v27  ;;  %v7672_v60 = vld [vmem:[%s9290_s26] sm:$0xff] }
 0x3f9   :  { %v6768_v62 = vpop.permute.xlu0 %6767 }
 0x3fa   :  { %6564 = vmatpush3.bf16.xpose.msk.msra.mxu1 %vm7542_vm5, %v6562_v61  ;;  %v6770_v63 = vunpack.i.h.bf16 %v6768_v62  ;;  %v6769_v0 = vunpack.i.l.bf16 %v6768_v62 }
 0x3fb   :  { %6565 = vmatprep.subr.bf16.mxu1 %v7180_v3 }
 0x3fc   :  { %v6570_v7 = vpack.c.bf16 %v6770_v63, %v6769_v0  ;;  %v7680_v63 = vld [vmem:[%s9290_s26 + $0x8] sm:$0xff] }
 0x3fd   :  { %v6773_v1 = vpop.permute.xlu1 %6772 }
 0x3fe   :  { %v6775_v2 = vunpack.i.h.bf16 %v6773_v1  ;;  %v6774_v4 = vunpack.i.l.bf16 %v6773_v1  ;;  %5852 = vmatpush3.xpose.msk.msra.mxu0 %vm478_vm4, %v603_v58 }
 0x3ff   :  { %6569 = vmatprep.subr.bf16.mxu0 %v7180_v3 }
 0x400   :  { %v6566_v10 = vpack.c.bf16 %v6775_v2, %v6774_v4 }
 0x401   :  { %v6778_v14 = vpop.permute.xlu0 %6777  ;;  %5854 = vmatmul.mubr.msk.f32.vlgmr.msra.gmra.mrb[10].mxu0 %vm478_vm4, %v453_v5  ;;  %v7690_v5 = vld [vmem:[%s9290_s26 + $0x10] sm:$0xff] }
 0x402   :  { %6568 = vmatpush3.bf16.xpose.msk.msra.mxu1 %vm7542_vm5, %v6566_v10  ;;  %6572 = vmatpush3.bf16.xpose.msk.msra.mxu0 %vm7542_vm5, %v6570_v7  ;;  %v6780_v8 = vunpack.i.h.bf16 %v6778_v14  ;;  %v6779_v35 = vunpack.i.l.bf16 %v6778_v14 }
 0x403   :  { %v728_v34 = vpop.permute.xlu1 %727  ;;  %5856 = vmatprep.mubr.msk.f32.mxu0 %vm7181_vm0, %v7182_v6  ;;  %5876 = vmatprep.subr.mxu1 %v7182_v6 }
 0x404   :  { %6573 = vmatprep.subr.bf16.mxu0 %v7180_v3  ;;  %v6574_v9 = vpack.c.bf16 %v6780_v8, %v6779_v35 }
 0x405   :  { %v853_v37 = vpop.permute.xlu0 %852  ;;  %5857 = vmatmul.mubr.msk.f32.gmra.mrb[12].mxu0 %vm478_vm4, %v454_v32 }
 0x406   :  { %5859 = vmatprep.mubr.msk.f32.mxu0 %vm7181_vm0, %v7182_v6 }
 0x407   :  { %v6783_v40 = vpop.permute.xlu1 %6782 }
 0x408   :  { %v6785_v41 = vunpack.i.h.bf16 %v6783_v40  ;;  %v6784_v42 = vunpack.i.l.bf16 %v6783_v40  ;;  %v7710_v40 = vld [vmem:[%s9290_s26 + $0x20] sm:$0x3] }
 0x409   :  { %v6788_v43 = vpop.permute.xlu0 %6787  ;;  %5860 = vmatmul.mubr.msk.f32.gmra.mrb[14].mxu0 %vm478_vm4, %v455_v39 }
 0x40a   :  { %5877 = vmatpush3.xpose.msk.msra.mxu1 %vm478_vm4, %v728_v34  ;;  %6576 = vmatpush3.bf16.xpose.msk.msra.mxu0 %vm7542_vm5, %v6574_v9  ;;  %v6578_v11 = vpack.c.bf16 %v6785_v41, %v6784_v42  ;;  %v6790_v47 = vunpack.i.h.bf16 %v6788_v43  ;;  %v6789_v48 = vunpack.i.l.bf16 %v6788_v43  ;;  %v7700_v34 = vld [vmem:[%s9290_s26 + $0x18] sm:$0xff] }
 0x40b   :  { %v6793_v46 = vpop.permute.xlu1 %6792  ;;  %5862 = vmatprep.mubr.msk.f32.mxu0 %vm7181_vm0, %v7182_v6  ;;  %6577 = vmatprep.subr.bf16.mxu1 %v7180_v3 }
 0x40c   :  { %5901 = vmatprep.subr.mxu0 %v7182_v6  ;;  %v6581_v49 = vpack.c.bf16 %v6790_v47, %v6789_v48  ;;  %v6795_v50 = vunpack.i.h.bf16 %v6793_v46  ;;  %v6794_v51 = vunpack.i.l.bf16 %v6793_v46 }
 0x40d   :  { %5879 = vmatmul.mubr.msk.f32.vlgmr.msra.gmra.mrb[20].mxu1 %vm478_vm4, %v458_v45  ;;  %5863 = vmatmul.mubr.msk.f32.gmra.mrb[16].mxu0 %vm478_vm4, %v456_v44  ;;  %v1200_v57 = vpop.permute.xlu0 %1199 }
 0x40e   :  { %6579 = vmatpush3.bf16.msra.mxu1 %v6578_v11  ;;  %5865 = vmatprep.mubr.msk.f32.mxu0 %vm7181_vm0, %v7182_v6  ;;  %v6584_v54 = vpack.c.bf16 %v6795_v50, %v6794_v51 }
 0x40f   :  { %5881 = vmatprep.mubr.msk.f32.mxu1 %vm7181_vm0, %v7182_v6  ;;  %6580 = vmatprep.subr.bf16.mxu1 %v7180_v3  ;;  %v6798_v52 = vpop.permute.xlu1 %6797 }
 0x410   :  { %v6800_v55 = vunpack.i.h.bf16 %v6798_v52  ;;  %v6799_v56 = vunpack.i.l.bf16 %v6798_v52 }
 0x411   :  { %5866 = vmatmul.mubr.msk.f32.gmra.mrb[18].mxu0 %vm478_vm4, %v457_v15  ;;  %5882 = vmatmul.mubr.msk.f32.gmra.mrb[22].mxu1 %vm478_vm4, %v459_v13 }
 0x412   :  { %5902 = vmatpush3.xpose.msk.msra.mxu0 %vm478_vm4, %v853_v37  ;;  %6582 = vmatpush3.bf16.msra.mxu1 %v6581_v49  ;;  %v6587_v58 = vpack.c.bf16 %v6800_v55, %v6799_v56 }
 0x413   :  { %5884 = vmatprep.mubr.msk.f32.mxu1 %vm7181_vm0, %v7182_v6  ;;  %5903 = vmatprep.mubr.msk.f32.mxu0 %vm7181_vm0, %v7182_v6 }
 0x414   :  { %5926 = vmatprep.subr.mxu1 %v7182_v6  ;;  %6583 = vmatprep.subr.bf16.mxu0 %v7180_v3 }
 0x415   :  { %5885 = vmatmul.mubr.msk.f32.gmra.mrb[24].mxu1 %vm478_vm4, %v460_v53  ;;  %5904 = vmatmul.mubr.msk.f32.vlgmr.msra.gmra.mrb[20].mxu0 %vm478_vm4, %v463_v12 }
 0x416   :  { %5927 = vmatpush3.msk.msra.mxu1 %vm1220_vm6, %v1200_v57  ;;  %6585 = vmatpush3.bf16.msra.mxu0 %v6584_v54 }
 0x417   :  { %5887 = vmatprep.mubr.msk.f32.mxu1 %vm7181_vm0, %v7182_v6  ;;  %5906 = vmatprep.mubr.msk.f32.mxu0 %vm7181_vm0, %v7182_v6 }
 0x418   :  { %6586 = vmatprep.subr.bf16.mxu0 %v7180_v3  ;;  %6589 = vmatprep.subr.bf16.mxu1 %v7180_v3 }
 0x419   :  { %5888 = vmatmul.mubr.msk.f32.gmra.mrb[26].mxu1 %vm478_vm4, %v461_v22  ;;  %5907 = vmatmul.mubr.msk.f32.gmra.mrb[22].mxu0 %vm478_vm4, %v464_v19 }
 0x41a   :  { %6588 = vmatpush3.bf16.msra.mxu0 %v6587_v58  ;;  %5890 = vmatprep.mubr.msk.f32.mxu1 %vm7181_vm0, %v7182_v6 }
 0x41b   :  { %5909 = vmatprep.mubr.msk.f32.mxu0 %vm7181_vm0, %v7182_v6  ;;  %5951 = vmatprep.subr.mxu0 %v7182_v6 }
 0x41d   :  { %5891 = vmatmul.mubr.msk.f32.gmra.mrb[28].mxu1 %vm478_vm4, %v462_v24  ;;  %5910 = vmatmul.mubr.msk.f32.gmra.mrb[24].mxu0 %vm478_vm4, %v465_v20 }
 0x41e   :  { %5912 = vmatprep.mubr.msk.f32.mxu0 %vm7181_vm0, %v7182_v6  ;;  %5928 = vmatprep.mubr.msk.f32.mxu1 %vm7181_vm0, %v7182_v6 }
 0x421   :  { %5913 = vmatmul.mubr.msk.f32.gmra.mrb[26].mxu0 %vm478_vm4, %v466_v59 }
 0x422   :  { %5915 = vmatprep.mubr.msk.f32.mxu0 %vm7181_vm0, %v7182_v6 }
 0x425   :  { %5916 = vmatmul.mubr.msk.f32.gmra.mrb[28].mxu0 %vm478_vm4, %v467_v26 }
 0x426   :  { %5953 = vmatprep.mubr.msk.f32.mxu0 %vm7181_vm0, %v7182_v6 }
 0x47f   :  { %v570_v61 = vpop.f32.mrb[10].mxu1 }
 0x480   :  { %v7675_v27 = vadd.f32 %v570_v61, %v7672_v60  ;;  %v5830_v62 = vpop.f32.mrb[11].mxu1 }
 0x482   :  { %v970_v0 = vsel %vm969_vm7, %v7675_v27, -inf }
 0x483   :  { %v575_v1 = vpop.f32.mrb[12].mxu1  ;;  %971 = vmax.xlane.f32.xlu1 %v970_v0 }
 0x484   :  { %v7685_v2 = vadd.f32 %v575_v1, %v7680_v63  ;;  %v5833_v4 = vpop.f32.mrb[13].mxu1 }
 0x486   :  { %v973_v7 = vsel %vm969_vm7, %v7685_v2, -inf }
 0x487   :  { %v580_v10 = vpop.f32.mrb[14].mxu1  ;;  %974 = vmax.xlane.f32.xlu0 %v973_v7 }
 0x488   :  { %v7695_v14 = vadd.f32 %v580_v10, %v7690_v5  ;;  %v5836_v32 = vpop.f32.mrb[15].mxu1 }
 0x48a   :  { %v976_v8 = vsel %vm969_vm7, %v7695_v14, -inf }
 0x48b   :  { %v585_v35 = vpop.f32.mrb[16].mxu1  ;;  %977 = vmax.xlane.f32.xlu1 %v976_v8 }
 0x48c   :  { %v7705_v37 = vadd.f32 %v585_v35, %v7700_v34  ;;  %v5839_v39 = vpop.f32.mrb[17].mxu1 }
 0x48e   :  { %v979_v9 = vsel %vm969_vm7, %v7705_v37, -inf }
 0x48f   :  { %v590_v41 = vpop.f32.mrb[18].mxu1  ;;  %980 = vmax.xlane.f32.xlu1 %v979_v9 }
 0x490   :  { %v7715_v42 = vadd.f32 %v590_v41, %v7710_v40  ;;  %v5842_v43 = vpop.f32.mrb[19].mxu1 }
 0x492   :  { %v983_v44 = vsel %vm982_vm8, %v7715_v42, -inf }
 0x493   :  { %984 = vmax.xlane.f32.xlu1 %v983_v44 }
 0x4d4   :  { %v695_v45 = vpop.f32.mrb[10].mxu0 }
 0x4d5   :  { %v7720_v46 = vadd.f32 %v695_v45, %v7672_v60  ;;  %v5855_v11 = vpop.f32.mrb[11].mxu0 }
 0x4d7   :  { %v986_v47 = vsel %vm969_vm7, %v7720_v46, -inf }
 0x4d8   :  { %987 = vmax.xlane.f32.xlu0 %v986_v47  ;;  %v700_v48 = vpop.f32.mrb[12].mxu0 }
 0x4d9   :  { %v7725_v13 = vadd.f32 %v700_v48, %v7680_v63  ;;  %v5858_v15 = vpop.f32.mrb[13].mxu0 }
 0x4db   :  { %v989_v49 = vsel %vm969_vm7, %v7725_v13, -inf }
 0x4dc   :  { %990 = vmax.xlane.f32.xlu0 %v989_v49  ;;  %v705_v50 = vpop.f32.mrb[14].mxu0 }
 0x4dd   :  { %v7730_v51 = vadd.f32 %v705_v50, %v7690_v5  ;;  %v5861_v52 = vpop.f32.mrb[15].mxu0 }
 0x4df   :  { %v992_v12 = vsel %vm969_vm7, %v7730_v51, -inf }
 0x4e0   :  { %v820_v53 = vpop.f32.mrb[20].mxu1  ;;  %993 = vmax.xlane.f32.xlu0 %v992_v12  ;;  %v710_v54 = vpop.f32.mrb[16].mxu0 }
 0x4e1   :  { %v7735_v55 = vadd.f32 %v820_v53, %v7672_v60  ;;  %v7738_v56 = vadd.f32 %v710_v54, %v7700_v34  ;;  %v5864_v57 = vpop.f32.mrb[17].mxu0  ;;  %v5880_v19 = vpop.f32.mrb[21].mxu1 }
 0x4e3   :  { %v1001_v22 = vsel %vm969_vm7, %v7735_v55, -inf  ;;  %v995_v58 = vsel %vm969_vm7, %v7738_v56, -inf }
 0x4e4   :  { %1002 = vmax.xlane.f32.xlu1 %v1001_v22  ;;  %v825_v20 = vpop.f32.mrb[22].mxu1  ;;  %996 = vmax.xlane.f32.xlu0 %v995_v58  ;;  %v715_v24 = vpop.f32.mrb[18].mxu0 }
 0x4e5   :  { %v7745_v59 = vadd.f32 %v825_v20, %v7680_v63  ;;  %v7748_v26 = vadd.f32 %v715_v24, %v7710_v40  ;;  %v5867_v61 = vpop.f32.mrb[19].mxu0  ;;  %v5883_v62 = vpop.f32.mrb[23].mxu1 }
 0x4e7   :  { %v1004_v0 = vsel %vm969_vm7, %v7745_v59, -inf  ;;  %v998_v1 = vsel %vm982_vm8, %v7748_v26, -inf }
 0x4e8   :  { %1005 = vmax.xlane.f32.xlu1 %v1004_v0  ;;  %v830_v4 = vpop.f32.mrb[24].mxu1  ;;  %999 = vmax.xlane.f32.xlu0 %v998_v1  ;;  %v945_v7 = vpop.f32.mrb[20].mxu0 }
 0x4e9   :  { %v7755_v10 = vadd.f32 %v830_v4, %v7690_v5  ;;  %v5886_v32 = vpop.f32.mrb[25].mxu1  ;;  %v5905_v8 = vpop.f32.mrb[21].mxu0 }
 0x4eb   :  { %v1007_v35 = vsel %vm969_vm7, %v7755_v10, -inf }
 0x4ec   :  { %1008 = vmax.xlane.f32.xlu1 %v1007_v35  ;;  %v835_v39 = vpop.f32.mrb[26].mxu1  ;;  %v950_v9 = vpop.f32.mrb[22].mxu0 }
 0x4ed   :  { %v7760_v41 = vadd.f32 %v835_v39, %v7700_v34  ;;  %v5889_v43 = vpop.f32.mrb[27].mxu1  ;;  %v5908_v44 = vpop.f32.mrb[23].mxu0  ;;  %v7783_v1 = vadd.f32 %v950_v9, %v7680_v63 }
 0x4ef   :  { %v1010_v45 = vsel %vm969_vm7, %v7760_v41, -inf }
 0x4f0   :  { %1011 = vmax.xlane.f32.xlu1 %v1010_v45  ;;  %v840_v11 = vpop.f32.mrb[28].mxu1  ;;  %v955_v47 = vpop.f32.mrb[24].mxu0 }
 0x4f1   :  { %v7765_v48 = vadd.f32 %v840_v11, %v7710_v40  ;;  %v5892_v15 = vpop.f32.mrb[29].mxu1  ;;  %v5911_v49 = vpop.f32.mrb[25].mxu0  ;;  %v7788_v4 = vadd.f32 %v955_v47, %v7690_v5 }
 0x4f3   :  { %v1013_v50 = vsel %vm982_vm8, %v7765_v48, -inf }
 0x4f4   :  { %1014 = vmax.xlane.f32.xlu1 %v1013_v50  ;;  %v960_v52 = vpop.f32.mrb[26].mxu0 }
 0x4f5   :  { %v5914_v12 = vpop.f32.mrb[27].mxu0 }
 0x4f8   :  { %v965_v53 = vpop.f32.mrb[28].mxu0 }
 0x4f9   :  { %v5917_v54 = vpop.f32.mrb[29].mxu0  ;;  %v7804_v5 = vadd.f32 %v965_v53, %v7710_v40 }
 0x4fb   :  { %v1028_v9 = vsel %vm982_vm8, %v7804_v5, -inf }
 0x4fe   :  { %6802 = vrot.lane.b32.xlu0 %v7495_v17, %s7187_s24  ;;  %v7779_v17 = vadd.f32 %v945_v7, %v7672_v60  ;;  %v1019_v60 = vsel %vm969_vm7, %v7783_v1, -inf  ;;  %v1022_v7 = vsel %vm969_vm7, %v7788_v4, -inf }
 0x502   :  { %6807 = vrot.lane.b32.xlu0 %v7507_v21, %s7187_s24 }
 0x505   :  { %1321 = vrot.lane.b32.xlu1 %v7491_v16, %s7187_s24 }
 0x510   :  { %v972_v57 = vpop.xlane.xlu1 %971 }
 0x511   :  { %v1031_v19 = vsub.f32 %v7675_v27, %v972_v57  ;;  %v1016_v27 = vsel %vm969_vm7, %v7779_v17, -inf }
 0x513   :  { %v1051_v58 = vmul.f32 1.442695, %v1031_v19 }
 0x514   :  { %v975_v22 = vpop.xlane.xlu0 %974 }
 0x515   :  { %v1032_v20 = vsub.f32 %v7685_v2, %v975_v22  ;;  %6911 = vpow2.f32 %v1051_v58 }
 0x517   :  { %v1053_v61 = vmul.f32 1.442695, %v1032_v20 }
 0x518   :  { %v978_v24 = vpop.xlane.xlu1 %977 }
 0x519   :  { %v1033_v62 = vsub.f32 %v7695_v14, %v978_v24  ;;  %6913 = vpow2.f32 %v1053_v61 }
 0x51b   :  { %v1055_v21 = vmul.f32 1.442695, %v1033_v62 }
 0x51c   :  { %v981_v0 = vpop.xlane.xlu1 %980 }
 0x51d   :  { %v1034_v16 = vsub.f32 %v7705_v37, %v981_v0  ;;  %6915 = vpow2.f32 %v1055_v21  ;;  %v7795_v37 = vadd.f32 %v960_v52, %v7700_v34 }
 0x51f   :  { %v1057_v2 = vmul.f32 1.442695, %v1034_v16  ;;  %v7792_v14 = vpop.eup %6911  ;;  %v1025_v34 = vsel %vm969_vm7, %v7795_v37, -inf }
 0x520   :  { %v1091_v63 = vsel %vm969_vm7, %v7792_v14, 0.0  ;;  %v985_v44 = vpop.xlane.xlu1 %984 }
 0x521   :  { %1017 = vmax.xlane.f32.xlu0 %v1016_v27  ;;  %6917 = vpow2.f32 %v1057_v2  ;;  %v1035_v45 = vsub.f32 %v7715_v42, %v985_v44 }
 0x523   :  { %v7801_v32 = vpop.eup %6913  ;;  %v1059_v11 = vmul.f32 1.442695, %v1035_v45 }
 0x524   :  { %v1094_v8 = vsel %vm969_vm7, %v7801_v32, 0.0 }
 0x525   :  { %1020 = vmax.xlane.f32.xlu0 %v1019_v60  ;;  %6919 = vpow2.f32 %v1059_v11 }
 0x527   :  { %v7810_v35 = vpop.eup %6915 }
 0x528   :  { %v1097_v39 = vsel %vm969_vm7, %v7810_v35, 0.0 }
 0x529   :  { %1092 = vadd.xlane.f32.xlu1 %v1091_v63  ;;  %1023 = vmax.xlane.f32.xlu0 %v1022_v7 }
 0x52b   :  { %v7816_v43 = vpop.eup %6917 }
 0x52c   :  { %v1100_v40 = vsel %vm969_vm7, %v7816_v43, 0.0 }
 0x52d   :  { %1095 = vadd.xlane.f32.xlu1 %v1094_v8  ;;  %1026 = vmax.xlane.f32.xlu0 %v1025_v34 }
 0x52f   :  { %v7823_v47 = vpop.eup %6919 }
 0x530   :  { %v1103_v49 = vsel %vm982_vm8, %v7823_v47, 0.0 }
 0x531   :  { %1098 = vadd.xlane.f32.xlu1 %v1097_v39  ;;  %1029 = vmax.xlane.f32.xlu0 %v1028_v9 }
 0x535   :  { %1101 = vadd.xlane.f32.xlu1 %v1100_v40 }
 0x547   :  { %6812 = vrot.lane.b32.xlu0 %v7517_v25, %s7187_s24 }
 0x565   :  { %v988_v15 = vpop.xlane.xlu0 %987 }
 0x566   :  { %v1036_v50 = vsub.f32 %v7720_v46, %v988_v15  ;;  %1104 = vadd.xlane.f32.xlu0 %v1103_v49 }
 0x568   :  { %v1061_v52 = vmul.f32 1.442695, %v1036_v50 }
 0x569   :  { %v991_v12 = vpop.xlane.xlu0 %990 }
 0x56a   :  { %6921 = vpow2.f32 %v1061_v52  ;;  %v1037_v53 = vsub.f32 %v7725_v13, %v991_v12 }
 0x56c   :  { %v1063_v25 = vmul.f32 1.442695, %v1037_v53 }
 0x56d   :  { %v994_v54 = vpop.xlane.xlu0 %993 }
 0x56e   :  { %6923 = vpow2.f32 %v1063_v25  ;;  %v1038_v22 = vsub.f32 %v7730_v51, %v994_v54 }
 0x570   :  { %v1065_v61 = vmul.f32 1.442695, %v1038_v22 }
 0x571   :  { %v1003_v42 = vpop.xlane.xlu1 %1002  ;;  %v997_v0 = vpop.xlane.xlu0 %996 }
 0x572   :  { %v1041_v57 = vsub.f32 %v7735_v55, %v1003_v42  ;;  %v1039_v16 = vsub.f32 %v7738_v56, %v997_v0 }
 0x574   :  { %v7830_v19 = vpop.eup %6921  ;;  %v1071_v58 = vmul.f32 1.442695, %v1041_v57  ;;  %v1067_v60 = vmul.f32 1.442695, %v1039_v16 }
 0x575   :  { %v1006_v20 = vpop.xlane.xlu1 %1005  ;;  %v1106_v46 = vsel %vm969_vm7, %v7830_v19, 0.0  ;;  %v1000_v7 = vpop.xlane.xlu0 %999 }
 0x576   :  { %6925 = vpow2.f32 %v1071_v58  ;;  %v1042_v24 = vsub.f32 %v7745_v59, %v1006_v20  ;;  %1107 = vadd.xlane.f32.xlu0 %v1106_v46 }
 0x578   :  { %v7836_v13 = vpop.eup %6923  ;;  %v1073_v62 = vmul.f32 1.442695, %v1042_v24 }
 0x579   :  { %v1009_v21 = vpop.xlane.xlu1 %1008  ;;  %v1109_v55 = vsel %vm969_vm7, %v7836_v13, 0.0  ;;  %v6803_v57 = vpop.permute.xlu0 %6802 }
 0x57a   :  { %6927 = vpow2.f32 %v1073_v62  ;;  %v1043_v51 = vsub.f32 %v7755_v10, %v1009_v21  ;;  %1110 = vadd.xlane.f32.xlu0 %v1109_v55  ;;  %v1040_v10 = vsub.f32 %v7748_v26, %v1000_v7 }
 0x57b   :  { %6929 = vpow2.f32 %v1065_v61 }
 0x57c   :  { %v1075_v27 = vmul.f32 1.442695, %v1043_v51 }
 0x57d   :  { %v1012_v2 = vpop.xlane.xlu1 %1011  ;;  %v7879_v22 = vpop.permute.xlu0 %6807 }
 0x57e   :  { %6931 = vpow2.f32 %v1075_v27  ;;  %v1044_v63 = vsub.f32 %v7760_v41, %v1012_v2  ;;  %v1069_v41 = vmul.f32 1.442695, %v1040_v10 }
 0x57f   :  { %6933 = vpow2.f32 %v1067_v60 }
 0x580   :  { %v7842_v59 = vpop.eup %6925  ;;  %v1077_v56 = vmul.f32 1.442695, %v1044_v63 }
 0x581   :  { %v1015_v8 = vpop.xlane.xlu1 %1014  ;;  %v1121_v34 = vsel %vm969_vm7, %v7842_v59, 0.0 }
 0x582   :  { %1122 = vadd.xlane.f32.xlu1 %v1121_v34  ;;  %6935 = vpow2.f32 %v1077_v56  ;;  %v1045_v45 = vsub.f32 %v7765_v48, %v1015_v8  ;;  %v6805_v8 = vunpack.i.h.bf16 %v6803_v57 }
 0x583   :  { %6937 = vpow2.f32 %v1069_v41 }
 0x584   :  { %v7847_v39 = vpop.eup %6927  ;;  %v1079_v15 = vmul.f32 1.442695, %v1045_v45 }
 0x585   :  { %v1322_v9 = vpop.permute.xlu1 %1321  ;;  %v1124_v40 = vsel %vm969_vm7, %v7847_v39, 0.0  ;;  %v7852_v44 = vpop.eup %6929 }
 0x586   :  { %5952 = vmatpush3.msk.msra.mxu0 %vm1220_vm6, %v1322_v9  ;;  %1125 = vadd.xlane.f32.xlu0 %v1124_v40  ;;  %v1112_v11 = vsel %vm969_vm7, %v7852_v44, 0.0  ;;  %6939 = vpow2.f32 %v1079_v15 }
 0x587   :  { %6595 = vmatprep.subr.bf16.mxu0 %v7180_v3 }
 0x588   :  { %v7859_v26 = vpop.eup %6931 }
 0x589   :  { %v1127_v49 = vsel %vm969_vm7, %v7859_v26, 0.0  ;;  %v7863_v50 = vpop.eup %6933 }
 0x58a   :  { %1113 = vadd.xlane.f32.xlu0 %v1112_v11  ;;  %v1115_v52 = vsel %vm969_vm7, %v7863_v50, 0.0 }
 0x58c   :  { %v7867_v12 = vpop.eup %6935 }
 0x58d   :  { %v1130_v48 = vsel %vm969_vm7, %v7867_v12, 0.0  ;;  %v7871_v53 = vpop.eup %6937 }
 0x58e   :  { %1128 = vadd.xlane.f32.xlu0 %v1127_v49  ;;  %v1118_v25 = vsel %vm982_vm8, %v7871_v53, 0.0 }
 0x590   :  { %v7875_v54 = vpop.eup %6939 }
 0x591   :  { %v1133_v42 = vsel %vm982_vm8, %v7875_v54, 0.0 }
 0x592   :  { %1116 = vadd.xlane.f32.xlu0 %v1115_v52 }
 0x596   :  { %1131 = vadd.xlane.f32.xlu0 %v1130_v48 }
 0x59a   :  { %1119 = vadd.xlane.f32.xlu0 %v1118_v25 }
 0x59e   :  { %1134 = vadd.xlane.f32.xlu0 %v1133_v42 }
 0x5ae   :  { %v1018_v58 = vpop.xlane.xlu0 %1017 }
 0x5af   :  { %v1046_v20 = vsub.f32 %v7779_v17, %v1018_v58 }
 0x5b1   :  { %v1081_v46 = vmul.f32 1.442695, %v1046_v20 }
 0x5b2   :  { %v1021_v24 = vpop.xlane.xlu0 %1020 }
 0x5b3   :  { %6941 = vpow2.f32 %v1081_v46  ;;  %v1047_v61 = vsub.f32 %v7783_v1, %v1021_v24 }
 0x5b5   :  { %v1083_v62 = vmul.f32 1.442695, %v1047_v61 }
 0x5b6   :  { %v1093_v0 = vpop.xlane.xlu1 %1092  ;;  %v1024_v21 = vpop.xlane.xlu0 %1023 }
 0x5b7   :  { %6943 = vpow2.f32 %v1083_v62  ;;  %v1048_v55 = vsub.f32 %v7788_v4, %v1024_v21  ;;  %v6804_v4 = vunpack.i.l.bf16 %v6803_v57 }
 0x5b8   :  { %6945 = vrcp.f32 %v1093_v0  ;;  %v6809_v0 = vunpack.i.l.bf16 %v7879_v22 }
 0x5b9   :  { %v1085_v51 = vmul.f32 1.442695, %v1048_v55  ;;  %v6590_v11 = vpack.c.bf16 %v6805_v8, %v6804_v4 }
 0x5ba   :  { %v1096_v16 = vpop.xlane.xlu1 %1095  ;;  %v1027_v27 = vpop.xlane.xlu0 %1026 }
 0x5bb   :  { %6947 = vpow2.f32 %v1085_v51  ;;  %v1049_v2 = vsub.f32 %v7795_v37, %v1027_v27 }
 0x5bc   :  { %6949 = vrcp.f32 %v1096_v16 }
 0x5bd   :  { %v7885_v17 = vpop.eup %6941  ;;  %v1087_v60 = vmul.f32 1.442695, %v1049_v2 }
 0x5be   :  { %v1099_v63 = vpop.xlane.xlu1 %1098  ;;  %v1030_v7 = vpop.xlane.xlu0 %1029  ;;  %v1136_v1 = vsel %vm969_vm7, %v7885_v17, 0.0 }
 0x5bf   :  { %6951 = vpow2.f32 %v1087_v60  ;;  %1137 = vadd.xlane.f32.xlu0 %v1136_v1 }
 0x5c0   :  { %6953 = vrcp.f32 %v1099_v63 }
 0x5c1   :  { %v7889_v34 = vpop.eup %6943 }
 0x5c2   :  { %v6946_v10 = vpop.eup %6945  ;;  %v1102_v56 = vpop.xlane.xlu1 %1101  ;;  %v1139_v37 = vsel %vm969_vm7, %v7889_v34, 0.0 }
 0x5c3   :  { %v6813_v9 = vpop.permute.xlu0 %6812  ;;  %v1171_v40 = vmul.f32 %v6946_v10, %v7792_v14  ;;  %1140 = vadd.xlane.f32.xlu1 %v1139_v37  ;;  %6955 = vrcp.f32 %v1102_v56 }
 0x5c4   :  { %v6815_v41 = vunpack.i.h.bf16 %v6813_v9  ;;  %v6814_v45 = vunpack.i.l.bf16 %v6813_v9 }
 0x5c5   :  { %v7894_v15 = vpop.eup %6947  ;;  %5929 = vmatmul.mubr.msk.f32.vlgmr.msra.gmra.mrb[30].mxu1 %vm969_vm7, %v1171_v40 }
 0x5c6   :  { %v6950_v49 = vpop.eup %6949  ;;  %v6593_v52 = vpack.c.bf16 %v6815_v41, %v6814_v45  ;;  %6591 = vmatpush3.bf16.msra.mxu1 %v6590_v11  ;;  %5931 = vmatprep.mubr.msk.f32.mxu1 %vm7181_vm0, %v7182_v6  ;;  %v1142_v48 = vsel %vm969_vm7, %v7894_v15, 0.0  ;;  %v1676_v11 = vld [vmem:[%s9268_s11] sm:$0xff] }
 0x5c7   :  { %6592 = vmatprep.subr.bf16.mxu1 %v7180_v3  ;;  %1143 = vadd.xlane.f32.xlu0 %v1142_v48  ;;  %v1172_v14 = vmul.f32 %v6950_v49, %v7801_v32 }
 0x5c9   :  { %v7903_v25 = vpop.eup %6951  ;;  %5932 = vmatmul.mubr.msk.f32.gmra.mrb[32].mxu1 %vm969_vm7, %v1172_v14 }
 0x5ca   :  { %v6954_v42 = vpop.eup %6953  ;;  %6594 = vmatpush3.bf16.msra.mxu1 %v6593_v52  ;;  %5934 = vmatprep.mubr.msk.f32.mxu1 %vm7181_vm0, %v7182_v6  ;;  %v1145_v57 = vsel %vm969_vm7, %v7903_v25, 0.0 }
 0x5cb   :  { %1146 = vadd.xlane.f32.xlu1 %v1145_v57  ;;  %v1173_v58 = vmul.f32 %v6954_v42, %v7810_v35  ;;  %5976 = vmatprep.subr.mxu1 %v7182_v6  ;;  %v1050_v35 = vsub.f32 %v7804_v5, %v1030_v7  ;;  %v6810_v5 = vunpack.i.h.bf16 %v7879_v22 }
 0x5cd   :  { %5935 = vmatmul.mubr.msk.f32.gmra.mrb[34].mxu1 %vm969_vm7, %v1173_v58  ;;  %v6956_v32 = vpop.eup %6955  ;;  %v1089_v46 = vmul.f32 1.442695, %v1050_v35  ;;  %v6596_v51 = vpack.c.bf16 %v6810_v5, %v6809_v0 }
 0x5ce   :  { %5937 = vmatprep.mubr.msk.f32.mxu1 %vm7181_vm0, %v7182_v6  ;;  %v1174_v20 = vmul.f32 %v6956_v32, %v7816_v43 }
 0x5cf   :  { %6957 = vpow2.f32 %v1089_v46 }
 0x5d1   :  { %5938 = vmatmul.mubr.msk.f32.gmra.mrb[36].mxu1 %vm969_vm7, %v1174_v20 }
 0x5d2   :  { %5940 = vmatprep.mubr.msk.f32.mxu1 %vm7181_vm0, %v7182_v6 }
 0x5d9   :  { %v7926_v43 = vpop.eup %6957 }
 0x5da   :  { %v1148_v62 = vsel %vm982_vm8, %v7926_v43, 0.0 }
 0x5dc   :  { %6817 = vrot.lane.b32.xlu1 %v7527_v29, %s7187_s24 }
 0x5dd   :  { %1442 = vrot.lane.b32.xlu0 %v7531_v30, %s7187_s24 }
 0x5e1   :  { %1563 = vrot.lane.b32.xlu0 %v7535_v31, %s7187_s24 }
 0x5f3   :  { %v1105_v24 = vpop.xlane.xlu0 %1104 }
 0x5f4   :  { %6959 = vrcp.f32 %v1105_v24 }
 0x5fe   :  { %v6960_v61 = vpop.eup %6959 }
 0x5ff   :  { %v1175_v29 = vmul.f32 %v6960_v61, %v7823_v47 }
 0x600   :  { %1149 = vadd.xlane.f32.xlu1 %v1148_v62 }
 0x601   :  { %5941 = vmatmul.mubr.msk.f32.gmra.mrb[38].mxu1 %vm969_vm7, %v1175_v29 }
 0x602   :  { %5978 = vmatprep.mubr.msk.f32.mxu1 %vm7181_vm0, %v7182_v6 }
 0x603   :  { %v1108_v30 = vpop.xlane.xlu0 %1107 }
 0x604   :  { %6961 = vrcp.f32 %v1108_v30 }
 0x607   :  { %v1111_v31 = vpop.xlane.xlu0 %1110 }
 0x608   :  { %6963 = vrcp.f32 %v1111_v31 }
 0x60e   :  { %v6962_v21 = vpop.eup %6961 }
 0x60f   :  { %v1176_v55 = vmul.f32 %v6962_v21, %v7830_v19 }
 0x611   :  { %5954 = vmatmul.mubr.msk.f32.vlgmr.msra.gmra.mrb[30].mxu0 %vm969_vm7, %v1176_v55 }
 0x612   :  { %v6964_v47 = vpop.eup %6963  ;;  %6597 = vmatpush3.bf16.msra.mxu0 %v6596_v51  ;;  %5956 = vmatprep.mubr.msk.f32.mxu0 %vm7181_vm0, %v7182_v6 }
 0x613   :  { %v1126_v16 = vpop.xlane.xlu0 %1125  ;;  %v1177_v27 = vmul.f32 %v6964_v47, %v7836_v13  ;;  %6598 = vmatprep.subr.bf16.mxu0 %v7180_v3 }
 0x615   :  { %5957 = vmatmul.mubr.msk.f32.gmra.mrb[32].mxu0 %vm969_vm7, %v1177_v27 }
 0x616   :  { %5959 = vmatprep.mubr.msk.f32.mxu0 %vm7181_vm0, %v7182_v6 }
 0x617   :  { %v1114_v22 = vpop.xlane.xlu0 %1113 }
 0x618   :  { %6965 = vrcp.f32 %v1114_v22 }
 0x61b   :  { %v1129_v19 = vpop.xlane.xlu0 %1128 }
 0x61f   :  { %v1117_v2 = vpop.xlane.xlu0 %1116 }
 0x620   :  { %6967 = vrcp.f32 %v1117_v2 }
 0x622   :  { %v6966_v60 = vpop.eup %6965 }
 0x623   :  { %v1132_v63 = vpop.xlane.xlu0 %1131  ;;  %v1178_v7 = vmul.f32 %v6966_v60, %v7852_v44  ;;  %v1123_v44 = vpop.xlane.xlu1 %1122 }
 0x625   :  { %5960 = vmatmul.mubr.msk.f32.gmra.mrb[34].mxu0 %vm969_vm7, %v1178_v7 }
 0x626   :  { %5962 = vmatprep.mubr.msk.f32.mxu0 %vm7181_vm0, %v7182_v6 }
 0x627   :  { %v1120_v13 = vpop.xlane.xlu0 %1119 }
 0x628   :  { %6969 = vrcp.f32 %v1120_v13 }
 0x629   :  { %6971 = vrcp.f32 %v1123_v44 }
 0x62a   :  { %v6968_v1 = vpop.eup %6967  ;;  %6973 = vrcp.f32 %v1126_v16  ;;  %v1678_v16 = vld [vmem:[%s9268_s11 + $0x10] sm:$0xff] }
 0x62b   :  { %v1179_v8 = vmul.f32 %v6968_v1, %v7863_v50  ;;  %v1135_v56 = vpop.xlane.xlu0 %1134  ;;  %6975 = vrcp.f32 %v1129_v19  ;;  %v1679_v19 = vld [vmem:[%s9268_s11 + $0x18] sm:$0xff] }
 0x62c   :  { %6977 = vrcp.f32 %v1132_v63 }
 0x62d   :  { %5963 = vmatmul.mubr.msk.f32.gmra.mrb[36].mxu0 %vm969_vm7, %v1179_v8 }
 0x62e   :  { %5965 = vmatprep.mubr.msk.f32.mxu0 %vm7181_vm0, %v7182_v6 }
 0x632   :  { %v6970_v4 = vpop.eup %6969 }
 0x633   :  { %v1180_v10 = vmul.f32 %v6970_v4, %v7871_v53  ;;  %v6972_v40 = vpop.eup %6971 }
 0x634   :  { %v1181_v41 = vmul.f32 %v6972_v40, %v7842_v59  ;;  %v6974_v49 = vpop.eup %6973 }
 0x635   :  { %5966 = vmatmul.mubr.msk.f32.gmra.mrb[38].mxu0 %vm969_vm7, %v1180_v10  ;;  %v1182_v52 = vmul.f32 %v6974_v49, %v7847_v39  ;;  %v6976_v48 = vpop.eup %6975 }
 0x636   :  { %6003 = vmatprep.mubr.msk.f32.mxu0 %vm7181_vm0, %v7182_v6  ;;  %v6978_v58 = vpop.eup %6977  ;;  %v1183_v32 = vmul.f32 %v6976_v48, %v7859_v26 }
 0x637   :  { %v1184_v24 = vmul.f32 %v6978_v58, %v7867_v12 }
 0x64c   :  { %v1138_v9 = vpop.xlane.xlu0 %1137 }
 0x64d   :  { %6979 = vrcp.f32 %v1138_v9 }
 0x64e   :  { %6981 = vrcp.f32 %v1135_v56 }
 0x650   :  { %v1141_v50 = vpop.xlane.xlu1 %1140 }
 0x651   :  { %6983 = vrcp.f32 %v1141_v50 }
 0x654   :  { %v1144_v37 = vpop.xlane.xlu0 %1143 }
 0x655   :  { %6985 = vrcp.f32 %v1144_v37 }
 0x657   :  { %v6980_v20 = vpop.eup %6979 }
 0x658   :  { %v1147_v45 = vpop.xlane.xlu1 %1146  ;;  %v1443_v53 = vpop.permute.xlu0 %1442  ;;  %v1186_v35 = vmul.f32 %v6980_v20, %v7885_v17 }
 0x659   :  { %5977 = vmatpush3.msk.msra.mxu1 %vm1220_vm6, %v1443_v53  ;;  %6987 = vrcp.f32 %v1147_v45  ;;  %v6982_v39 = vpop.eup %6981 }
 0x65a   :  { %5979 = vmatmul.mubr.msk.f32.vlgmr.msra.gmra.mrb[40].mxu1 %vm969_vm7, %v1181_v41  ;;  %6729 = vmatprep.subr.mxu1 %v7182_v6  ;;  %v1185_v26 = vmul.f32 %v6982_v39, %v7875_v54 }
 0x65b   :  { %5981 = vmatprep.mubr.msk.f32.mxu1 %vm7181_vm0, %v7182_v6  ;;  %6730 = vmatpush3.msra.mxu1 %v1676_v11  ;;  %v6984_v61 = vpop.eup %6983 }
 0x65c   :  { %v6818_v59 = vpop.permute.xlu1 %6817  ;;  %6052 = vmatprep.subr.mxu1 %v7182_v6  ;;  %v1564_v46 = vpop.permute.xlu0 %1563  ;;  %v1187_v17 = vmul.f32 %v6984_v61, %v7889_v34 }
 0x65d   :  { %v6820_v14 = vunpack.i.h.bf16 %v6818_v59  ;;  %v6819_v42 = vunpack.i.l.bf16 %v6818_v59 }
 0x65e   :  { %5982 = vmatmul.mubr.msk.f32.gmra.mrb[42].mxu1 %vm969_vm7, %v1182_v52 }
 0x65f   :  { %v6599_v57 = vpack.c.bf16 %v6820_v14, %v6819_v42  ;;  %5984 = vmatprep.mubr.msk.f32.mxu1 %vm7181_vm0, %v7182_v6  ;;  %v6986_v12 = vpop.eup %6985 }
 0x660   :  { %v1188_v62 = vmul.f32 %v6986_v12, %v7894_v15 }
 0x661   :  { %6600 = vmatpush3.bf16.msra.mxu0 %v6599_v57 }
 0x662   :  { %5985 = vmatmul.mubr.msk.f32.gmra.mrb[44].mxu1 %vm969_vm7, %v1183_v32  ;;  %6001 = vmatprep.subr.mxu0 %v7182_v6 }
 0x663   :  { %5987 = vmatprep.mubr.msk.f32.mxu1 %vm7181_vm0, %v7182_v6  ;;  %v6988_v54 = vpop.eup %6987 }
 0x664   :  { %v1189_v34 = vmul.f32 %v6988_v54, %v7903_v25  ;;  %v1677_v25 = vld [vmem:[%s9268_s11 + $0x8] sm:$0xff] }
 0x665   :  { %6002 = vmatpush3.msk.msra.mxu0 %vm1220_vm6, %v1564_v46 }
 0x666   :  { %5988 = vmatmul.mubr.msk.f32.gmra.mrb[46].mxu1 %vm969_vm7, %v1184_v24  ;;  %6004 = vmatmul.mubr.msk.f32.vlgmr.msra.gmra.mrb[40].mxu0 %vm969_vm7, %v1186_v35 }
 0x667   :  { %5990 = vmatprep.mubr.msk.f32.mxu1 %vm7181_vm0, %v7182_v6  ;;  %6006 = vmatprep.mubr.msk.f32.mxu0 %vm7181_vm0, %v7182_v6 }
 0x668   :  { %6018 = vmatprep.subr.mxu0 %v7182_v6 }
 0x669   :  { %6019 = vmatpush3.msra.mxu0 %v1676_v11 }
 0x66a   :  { %5991 = vmatmul.mubr.msk.f32.gmra.mrb[48].mxu1 %vm969_vm7, %v1185_v26  ;;  %6007 = vmatmul.mubr.msk.f32.gmra.mrb[42].mxu0 %vm969_vm7, %v1187_v17 }
 0x66b   :  { %6009 = vmatprep.mubr.msk.f32.mxu0 %vm7181_vm0, %v7182_v6  ;;  %6023 = vmatprep.mubr.msk.f32.mxu1 %vm7181_vm0, %v7182_v6 }
 0x66c   :  { %6035 = vmatprep.subr.mxu0 %v7182_v6 }
 0x66e   :  { %6010 = vmatmul.mubr.msk.f32.gmra.mrb[44].mxu0 %vm969_vm7, %v1188_v62 }
 0x66f   :  { %6012 = vmatprep.mubr.msk.f32.mxu0 %vm7181_vm0, %v7182_v6 }
 0x672   :  { %6013 = vmatmul.mubr.msk.f32.gmra.mrb[46].mxu0 %vm969_vm7, %v1189_v34 }
 0x673   :  { %6015 = vmatprep.mubr.msk.f32.mxu0 %vm7181_vm0, %v7182_v6 }
 0x68d   :  { %v1150_v29 = vpop.xlane.xlu1 %1149 }
 0x68e   :  { %6989 = vrcp.f32 %v1150_v29 }
 0x698   :  { %v6990_v30 = vpop.eup %6989  ;;  %v1289_v31 = vpop.f32.mrb[30].mxu1 }
 0x699   :  { %v5930_v15 = vpop.f32.mrb[31].mxu1  ;;  %v1190_v5 = vmul.f32 %v6990_v30, %v7926_v43 }
 0x69b   :  { %6016 = vmatmul.mubr.msk.f32.gmra.mrb[48].mxu0 %vm969_vm7, %v1190_v5 }
 0x69c   :  { %v1294_v0 = vpop.f32.mrb[32].mxu1  ;;  %6020 = vmatprep.mubr.msk.f32.mxu0 %vm7181_vm0, %v7182_v6 }
 0x69d   :  { %v5933_v21 = vpop.f32.mrb[33].mxu1  ;;  %6024 = vmatmul.mubr.msk.f32.vlgmr.msra.gmra.mrb[50].mxu1 %vm478_vm4, %v1294_v0 }
 0x69e   :  { %6026 = vmatprep.mubr.msk.f32.mxu1 %vm7181_vm0, %v7182_v6  ;;  %6053 = vmatpush3.msra.mxu1 %v1678_v16 }
 0x69f   :  { %6021 = vmatmul.mubr.msk.f32.vlgmr.msra.gmra.mrb[50].mxu0 %vm478_vm4, %v1289_v31  ;;  %6601 = vmatprep.subr.bf16.mxu1 %v7180_v3 }
 0x6a0   :  { %v1299_v55 = vpop.f32.mrb[34].mxu1  ;;  %6036 = vmatpush3.msra.mxu0 %v1677_v25  ;;  %6037 = vmatprep.mubr.msk.f32.mxu0 %vm7181_vm0, %v7182_v6 }
 0x6a1   :  { %v5936_v43 = vpop.f32.mrb[35].mxu1  ;;  %6027 = vmatmul.mubr.msk.f32.gmra.mrb[52].mxu1 %vm478_vm4, %v1299_v55  ;;  %6069 = vmatprep.subr.mxu0 %v7182_v6 }
 0x6a2   :  { %6029 = vmatprep.mubr.msk.f32.mxu1 %vm7181_vm0, %v7182_v6 }
 0x6a4   :  { %v1304_v51 = vpop.f32.mrb[36].mxu1 }
 0x6a5   :  { %v5939_v47 = vpop.f32.mrb[37].mxu1  ;;  %6030 = vmatmul.mubr.msk.f32.gmra.mrb[54].mxu1 %vm478_vm4, %v1304_v51 }
 0x6a6   :  { %6032 = vmatprep.mubr.msk.f32.mxu1 %vm7181_vm0, %v7182_v6 }
 0x6d4   :  { %v1309_v27 = vpop.f32.mrb[38].mxu1 }
 0x6d5   :  { %v5942_v22 = vpop.f32.mrb[39].mxu1  ;;  %6033 = vmatmul.mubr.msk.f32.gmra.mrb[56].mxu1 %vm478_vm4, %v1309_v27 }
 0x6d6   :  { %6054 = vmatprep.mubr.msk.f32.mxu1 %vm7181_vm0, %v7182_v6 }
 0x6e4   :  { %v1410_v2 = vpop.f32.mrb[30].mxu0 }
 0x6e5   :  { %v5955_v60 = vpop.f32.mrb[31].mxu0  ;;  %6038 = vmatmul.mubr.msk.f32.vlgmr.msra.gmra.mrb[52].mxu0 %vm478_vm4, %v1410_v2 }
 0x6e6   :  { %6040 = vmatprep.mubr.msk.f32.mxu0 %vm7181_vm0, %v7182_v6  ;;  %6070 = vmatpush3.msra.mxu0 %v1679_v19 }
 0x6e7   :  { %6607 = vmatprep.subr.bf16.mxu0 %v7180_v3 }
 0x6e8   :  { %v1415_v63 = vpop.f32.mrb[32].mxu0 }
 0x6e9   :  { %v5958_v7 = vpop.f32.mrb[33].mxu0  ;;  %6041 = vmatmul.mubr.msk.f32.gmra.mrb[54].mxu0 %vm478_vm4, %v1415_v63 }
 0x6ea   :  { %6043 = vmatprep.mubr.msk.f32.mxu0 %vm7181_vm0, %v7182_v6 }
 0x6f8   :  { %v1420_v13 = vpop.f32.mrb[34].mxu0 }
 0x6f9   :  { %v5961_v1 = vpop.f32.mrb[35].mxu0  ;;  %6044 = vmatmul.mubr.msk.f32.gmra.mrb[56].mxu0 %vm478_vm4, %v1420_v13 }
 0x6fa   :  { %6046 = vmatprep.mubr.msk.f32.mxu0 %vm7181_vm0, %v7182_v6 }
 0x700   :  { %v1425_v8 = vpop.f32.mrb[36].mxu0 }
 0x701   :  { %v5964_v4 = vpop.f32.mrb[37].mxu0  ;;  %6047 = vmatmul.mubr.msk.f32.gmra.mrb[58].mxu0 %vm478_vm4, %v1425_v8 }
 0x702   :  { %6049 = vmatprep.mubr.msk.f32.mxu0 %vm7181_vm0, %v7182_v6 }
 0x708   :  { %v1430_v10 = vpop.f32.mrb[38].mxu0 }
 0x709   :  { %v5967_v44 = vpop.f32.mrb[39].mxu0  ;;  %6050 = vmatmul.mubr.msk.f32.gmra.mrb[60].mxu0 %vm478_vm4, %v1430_v10 }
 0x70a   :  { %6071 = vmatprep.mubr.msk.f32.mxu0 %vm7181_vm0, %v7182_v6 }
 0x72d   :  { %v1531_v56 = vpop.f32.mrb[40].mxu1 }
 0x72e   :  { %v5980_v9 = vpop.f32.mrb[41].mxu1  ;;  %6055 = vmatmul.mubr.msk.f32.vlgmr.msra.gmra.mrb[58].mxu1 %vm478_vm4, %v1531_v56 }
 0x72f   :  { %6057 = vmatprep.mubr.msk.f32.mxu1 %vm7181_vm0, %v7182_v6 }
 0x731   :  { %v1536_v50 = vpop.f32.mrb[42].mxu1 }
 0x732   :  { %v5983_v37 = vpop.f32.mrb[43].mxu1  ;;  %6058 = vmatmul.mubr.msk.f32.gmra.mrb[60].mxu1 %vm478_vm4, %v1536_v50 }
 0x733   :  { %6060 = vmatprep.mubr.msk.f32.mxu1 %vm7181_vm0, %v7182_v6 }
 0x735   :  { %v1541_v40 = vpop.f32.mrb[44].mxu1 }
 0x736   :  { %v5986_v41 = vpop.f32.mrb[45].mxu1  ;;  %6061 = vmatmul.mubr.msk.f32.gmra.mrb[62].mxu1 %vm478_vm4, %v1541_v40 }
 0x737   :  { %6063 = vmatprep.mubr.msk.f32.mxu1 %vm7181_vm0, %v7182_v6 }
 0x739   :  { %v1546_v45 = vpop.f32.mrb[46].mxu1  ;;  %v1652_v53 = vpop.f32.mrb[40].mxu0 }
 0x73a   :  { %v5989_v11 = vpop.f32.mrb[47].mxu1  ;;  %v6005_v49 = vpop.f32.mrb[41].mxu0  ;;  %6064 = vmatmul.mubr.msk.f32.gmra.mrb[64].mxu1 %vm478_vm4, %v1546_v45  ;;  %6072 = vmatmul.mubr.msk.f32.vlgmr.msra.gmra.mrb[62].mxu0 %vm478_vm4, %v1652_v53 }
 0x73b   :  { %6066 = vmatprep.mubr.msk.f32.mxu1 %vm7181_vm0, %v7182_v6  ;;  %6074 = vmatprep.mubr.msk.f32.mxu0 %vm7181_vm0, %v7182_v6 }
 0x73d   :  { %v1551_v59 = vpop.f32.mrb[48].mxu1  ;;  %v1657_v52 = vpop.f32.mrb[42].mxu0 }
 0x73e   :  { %v5992_v48 = vpop.f32.mrb[49].mxu1  ;;  %v6008_v14 = vpop.f32.mrb[43].mxu0  ;;  %6067 = vmatmul.mubr.msk.f32.gmra.mrb[66].mxu1 %vm478_vm4, %v1551_v59  ;;  %6075 = vmatmul.mubr.msk.f32.gmra.mrb[64].mxu0 %vm478_vm4, %v1657_v52 }
 0x73f   :  { %6077 = vmatprep.mubr.msk.f32.mxu0 %vm7181_vm0, %v7182_v6  ;;  %6094 = vmatprep.mubr.msk.f32.mxu1 %vm7181_vm0, %v7182_v6 }
 0x741   :  { %v1662_v42 = vpop.f32.mrb[44].mxu0 }
 0x742   :  { %v6011_v57 = vpop.f32.mrb[45].mxu0  ;;  %6078 = vmatmul.mubr.msk.f32.gmra.mrb[66].mxu0 %vm478_vm4, %v1662_v42 }
 0x743   :  { %6080 = vmatprep.mubr.msk.f32.mxu0 %vm7181_vm0, %v7182_v6 }
 0x745   :  { %v1667_v58 = vpop.f32.mrb[46].mxu0 }
 0x746   :  { %v6014_v32 = vpop.f32.mrb[47].mxu0  ;;  %6081 = vmatmul.mubr.msk.f32.gmra.mrb[68].mxu0 %vm478_vm4, %v1667_v58 }
 0x747   :  { %6083 = vmatprep.mubr.msk.f32.mxu0 %vm7181_vm0, %v7182_v6 }
 0x76e   :  { %v1672_v20 = vpop.f32.mrb[48].mxu0 }
 0x76f   :  { %v6017_v39 = vpop.f32.mrb[49].mxu0  ;;  %6084 = vmatmul.mubr.msk.f32.gmra.mrb[70].mxu0 %vm478_vm4, %v1672_v20 }
 0x770   :  { %v1766_v35 = vpop.f32.mrb[50].mxu1  ;;  %6141 = vmatprep.mubr.msk.f32.mxu0 %vm7181_vm0, %v7182_v6  ;;  %v5313_v39 = vld [vmem:[%s9269_s12] ss:$0 sm:$0xff] }
 0x771   :  { %v6025_v46 = vpop.f32.mrb[51].mxu1  ;;  %v2107_v21 = vsel %vm192_vm2, %v1766_v35, 0.0 }
 0x772   :  { %v1761_v24 = vpop.f32.mrb[50].mxu0 }
 0x773   :  { %v6022_v61 = vpop.f32.mrb[51].mxu0  ;;  %v2100_v30 = vsel %vm192_vm2, %v1761_v24, 0.0 }
 0x774   :  { %v1771_v26 = vpop.f32.mrb[52].mxu1 }
 0x775   :  { %v6028_v17 = vpop.f32.mrb[53].mxu1  ;;  %v2114_v47 = vsel %vm192_vm2, %v1771_v26, 0.0 }
 0x778   :  { %v1776_v12 = vpop.f32.mrb[54].mxu1 }
 0x779   :  { %v6031_v62 = vpop.f32.mrb[55].mxu1  ;;  %v2121_v2 = vsel %vm192_vm2, %v1776_v12, 0.0 }
 0x7a8   :  { %v1781_v54 = vpop.f32.mrb[56].mxu1 }
 0x7a9   :  { %v6034_v34 = vpop.f32.mrb[57].mxu1  ;;  %v2128_v1 = vsel %vm205_vm3, %v1781_v54, 0.0 }
 0x7b8   :  { %v1866_v29 = vpop.f32.mrb[52].mxu0 }
 0x7b9   :  { %v2101_v31 = vsel %vm192_vm2, %v1866_v29, 0.0  ;;  %v6039_v15 = vpop.f32.mrb[53].mxu0 }
 0x7ba   :  { %v2102_v5 = vadd.f32 %v2101_v31, %v2100_v30 }
 0x7bc   :  { %v1871_v0 = vpop.f32.mrb[54].mxu0 }
 0x7bd   :  { %v2108_v25 = vsel %vm192_vm2, %v1871_v0, 0.0  ;;  %v6042_v55 = vpop.f32.mrb[55].mxu0 }
 0x7be   :  { %v2109_v43 = vadd.f32 %v2108_v25, %v2107_v21 }
 0x7cc   :  { %v1876_v51 = vpop.f32.mrb[56].mxu0 }
 0x7cd   :  { %v2115_v16 = vsel %vm192_vm2, %v1876_v51, 0.0  ;;  %v6045_v27 = vpop.f32.mrb[57].mxu0 }
 0x7ce   :  { %v2116_v22 = vadd.f32 %v2115_v16, %v2114_v47 }
 0x7d4   :  { %v1881_v19 = vpop.f32.mrb[58].mxu0 }
 0x7d5   :  { %v2122_v60 = vsel %vm192_vm2, %v1881_v19, 0.0  ;;  %v6048_v63 = vpop.f32.mrb[59].mxu0 }
 0x7d6   :  { %v2123_v7 = vadd.f32 %v2122_v60, %v2121_v2 }
 0x7dc   :  { %v1886_v13 = vpop.f32.mrb[60].mxu0 }
 0x7dd   :  { %v2129_v8 = vsel %vm205_vm3, %v1886_v13, 0.0  ;;  %v6051_v4 = vpop.f32.mrb[61].mxu0 }
 0x7de   :  { %v2130_v10 = vadd.f32 %v2129_v8, %v2128_v1 }
 0x801   :  { %v1971_v44 = vpop.f32.mrb[58].mxu1 }
 0x802   :  { %v2103_v56 = vsel %vm192_vm2, %v1971_v44, 0.0  ;;  %v6056_v9 = vpop.f32.mrb[59].mxu1 }
 0x803   :  { %v2104_v50 = vadd.f32 %v2103_v56, %v2102_v5 }
 0x805   :  { %v1976_v37 = vpop.f32.mrb[60].mxu1 }
 0x806   :  { %v2110_v40 = vsel %vm192_vm2, %v1976_v37, 0.0  ;;  %v6059_v41 = vpop.f32.mrb[61].mxu1 }
 0x807   :  { %v2111_v45 = vadd.f32 %v2110_v40, %v2109_v43 }
 0x809   :  { %v1981_v53 = vpop.f32.mrb[62].mxu1 }
 0x80a   :  { %v2117_v11 = vsel %vm192_vm2, %v1981_v53, 0.0  ;;  %v6062_v49 = vpop.f32.mrb[63].mxu1 }
 0x80b   :  { %v2118_v59 = vadd.f32 %v2117_v11, %v2116_v22 }
 0x80d   :  { %v1986_v52 = vpop.f32.mrb[64].mxu1  ;;  %v2076_v48 = vpop.f32.mrb[62].mxu0 }
 0x80e   :  { %v2124_v14 = vsel %vm192_vm2, %v1986_v52, 0.0  ;;  %v2105_v42 = vsel %vm192_vm2, %v2076_v48, 0.0  ;;  %v6065_v57 = vpop.f32.mrb[65].mxu1  ;;  %v6073_v58 = vpop.f32.mrb[63].mxu0 }
 0x80f   :  { %v2125_v32 = vadd.f32 %v2124_v14, %v2123_v7  ;;  %v2106_v20 = vadd.f32 %v2105_v42, %v2104_v50  ;;  %v2241_v42 = vld [vmem:[%s9270_s13] sm:$0xff]  ;;  %v2242_v57 = vld [vmem:[%s9270_s13 + $0x8] sm:$0xff] }
 0x810   :  { %v6602_v58 = vpack.c.bf16 %v2242_v57, %v2241_v42  ;;  %v2498_v57 = vld [vmem:[%s9272_s15 + $0x30] sm:$0xff] }
 0x811   :  { %v2135_v35 = vadd.f32 %v2106_v20, %v7345_v18  ;;  %v1991_v46 = vpop.f32.mrb[66].mxu1  ;;  %v2081_v24 = vpop.f32.mrb[64].mxu0  ;;  %v2244_v20 = vld [vmem:[%s9270_s13 + $0x18] sm:$0xff] }
 0x812   :  { %v2131_v61 = vsel %vm205_vm3, %v1991_v46, 0.0  ;;  %v2112_v26 = vsel %vm192_vm2, %v2081_v24, 0.0  ;;  %v6068_v17 = vpop.f32.mrb[67].mxu1  ;;  %v6076_v12 = vpop.f32.mrb[65].mxu0  ;;  %6603 = vmatpush3.bf16.msra.mxu1 %v6602_v58  ;;  %v2499_v58 = vld [vmem:[%s9272_s15 + $0x38] sm:$0xff] }
 0x813   :  { %v2132_v62 = vadd.f32 %v2131_v61, %v2130_v10  ;;  %v2113_v54 = vadd.f32 %v2112_v26, %v2111_v45  ;;  %v8100_v34 = vadd.f32 %v5313_v39, %v2135_v35  ;;  %6604 = vmatprep.subr.bf16.mxu1 %v7180_v3 }
 0x815   :  { %v2136_v29 = vadd.f32 %v2113_v54, %v7352_v23  ;;  %v2086_v30 = vpop.f32.mrb[66].mxu0  ;;  %v2154_v31 = vsel %vm192_vm2, %v8100_v34, 0.0 }
 0x816   :  { %v2119_v18 = vsel %vm192_vm2, %v2086_v30, 0.0  ;;  %2155 = vadd.xlane.f32.xlu1 %v2154_v31  ;;  %v6079_v15 = vpop.f32.mrb[67].mxu0 }
 0x817   :  { %v2120_v5 = vadd.f32 %v2119_v18, %v2118_v59  ;;  %v8106_v0 = vadd.f32 %v5313_v39, %v2136_v29 }
 0x819   :  { %v2137_v21 = vadd.f32 %v2120_v5, %v7359_v28  ;;  %v2091_v25 = vpop.f32.mrb[68].mxu0  ;;  %v2157_v55 = vsel %vm192_vm2, %v8106_v0, 0.0 }
 0x81a   :  { %v2126_v43 = vsel %vm192_vm2, %v2091_v25, 0.0  ;;  %2158 = vadd.xlane.f32.xlu0 %v2157_v55  ;;  %v6082_v23 = vpop.f32.mrb[69].mxu0  ;;  %v5314_v55 = vld [vmem:[%s9264_s7] ss:$0 sm:$0xff] }
 0x81b   :  { %v2127_v51 = vadd.f32 %v2126_v43, %v2125_v32  ;;  %v8112_v47 = vadd.f32 %v5313_v39, %v2137_v21  ;;  %v2243_v32 = vld [vmem:[%s9270_s13 + $0x10] sm:$0xff] }
 0x81d   :  { %v2138_v16 = vadd.f32 %v2127_v51, %v7366_v33  ;;  %v2160_v27 = vsel %vm192_vm2, %v8112_v47, 0.0  ;;  %v5315_v51 = vld [vmem:[%s9265_s8] ss:$0 sm:$0xff] }
 0x81e   :  { %2161 = vadd.xlane.f32.xlu1 %v2160_v27 }
 0x81f   :  { %v8117_v22 = vadd.f32 %v5313_v39, %v2138_v16 }
 0x821   :  { %v2163_v28 = vsel %vm192_vm2, %v8117_v22, 0.0 }
 0x822   :  { %2164 = vadd.xlane.f32.xlu1 %v2163_v28 }
 0x842   :  { %v2096_v19 = vpop.f32.mrb[70].mxu0 }
 0x843   :  { %v2133_v2 = vsel %vm205_vm3, %v2096_v19, 0.0  ;;  %v6085_v60 = vpop.f32.mrb[71].mxu0 }
 0x844   :  { %v2134_v63 = vadd.f32 %v2133_v2, %v2132_v62 }
 0x846   :  { %v2139_v7 = vadd.f32 %v2134_v63, %v7373_v38 }
 0x848   :  { %v8123_v13 = vadd.f32 %v5313_v39, %v2139_v7  ;;  %v6605_v39 = vpack.c.bf16 %v2244_v20, %v2243_v32  ;;  %v6617_v32 = vpack.c.bf16 %v2499_v58, %v2498_v57  ;;  %v2500_v20 = vld [vmem:[%s9272_s15 + $0x40] sm:$0xff] }
 0x84a   :  { %v2166_v33 = vsel %vm205_vm3, %v8123_v13, 0.0  ;;  %6606 = vmatpush3.bf16.msra.mxu1 %v6605_v39  ;;  %v2501_v39 = vld [vmem:[%s9272_s15 + $0x48] sm:$0xff] }
 0x84b   :  { %2167 = vadd.xlane.f32.xlu1 %v2166_v33  ;;  %6631 = vmatprep.subr.bf16.mxu1 %v7180_v3 }
 0x8a3   :  { %v2156_v1 = vpop.xlane.xlu1 %2155 }
 0x8a4   :  { %v2169_v8 = vmul.f32 0.03125, %v2156_v1 }
 0x8a6   :  { %v2174_v4 = vsub.f32 %v8100_v34, %v2169_v8 }
 0x8a7   :  { %v2159_v10 = vpop.xlane.xlu0 %2158 }
 0x8a8   :  { %v2170_v44 = vmul.f32 0.03125, %v2159_v10  ;;  %v2179_v56 = vmul.f32 %v2174_v4, %v2174_v4 }
 0x8aa   :  { %v2175_v9 = vsub.f32 %v8106_v0, %v2170_v44  ;;  %v2184_v50 = vsel %vm192_vm2, %v2179_v56, 0.0 }
 0x8ab   :  { %v2162_v37 = vpop.xlane.xlu1 %2161  ;;  %2185 = vadd.xlane.f32.xlu1 %v2184_v50 }
 0x8ac   :  { %v2171_v38 = vmul.f32 0.03125, %v2162_v37  ;;  %v2180_v40 = vmul.f32 %v2175_v9, %v2175_v9 }
 0x8ae   :  { %v2176_v41 = vsub.f32 %v8112_v47, %v2171_v38  ;;  %v2187_v45 = vsel %vm192_vm2, %v2180_v40, 0.0 }
 0x8af   :  { %v2165_v53 = vpop.xlane.xlu1 %2164  ;;  %2188 = vadd.xlane.f32.xlu1 %v2187_v45  ;;  %v2492_v45 = vld [vmem:[%s9272_s15] sm:$0xff] }
 0x8b0   :  { %v2172_v11 = vmul.f32 0.03125, %v2165_v53  ;;  %v2181_v49 = vmul.f32 %v2176_v41, %v2176_v41  ;;  %v2493_v53 = vld [vmem:[%s9272_s15 + $0x8] sm:$0xff] }
 0x8b2   :  { %v2177_v59 = vsub.f32 %v8117_v22, %v2172_v11  ;;  %v2190_v52 = vsel %vm192_vm2, %v2181_v49, 0.0  ;;  %v6608_v11 = vpack.c.bf16 %v2493_v53, %v2492_v45  ;;  %v2494_v49 = vld [vmem:[%s9272_s15 + $0x10] sm:$0xff] }
 0x8b3   :  { %2191 = vadd.xlane.f32.xlu1 %v2190_v52 }
 0x8b4   :  { %v2182_v48 = vmul.f32 %v2177_v59, %v2177_v59  ;;  %6609 = vmatpush3.bf16.msra.mxu0 %v6608_v11 }
 0x8b5   :  { %6610 = vmatprep.subr.bf16.mxu0 %v7180_v3 }
 0x8b6   :  { %v2193_v14 = vsel %vm192_vm2, %v2182_v48, 0.0  ;;  %v2496_v48 = vld [vmem:[%s9272_s15 + $0x20] sm:$0xff] }
 0x8b7   :  { %2194 = vadd.xlane.f32.xlu1 %v2193_v14  ;;  %v2497_v14 = vld [vmem:[%s9272_s15 + $0x28] sm:$0xff] }
 0x8b8   :  { %v6614_v42 = vpack.c.bf16 %v2497_v14, %v2496_v48 }
 0x8d8   :  { %v2168_v35 = vpop.xlane.xlu1 %2167 }
 0x8d9   :  { %v2173_v46 = vmul.f32 0.03125, %v2168_v35  ;;  %v6620_v35 = vpack.c.bf16 %v2501_v39, %v2500_v20 }
 0x8db   :  { %v2178_v24 = vsub.f32 %v8123_v13, %v2173_v46  ;;  %v2502_v46 = vld [vmem:[%s9272_s15 + $0x50] sm:$0xff] }
 0x8dd   :  { %v2183_v61 = vmul.f32 %v2178_v24, %v2178_v24 }
 0x8df   :  { %v2196_v26 = vsel %vm205_vm3, %v2183_v61, 0.0 }
 0x8e0   :  { %2197 = vadd.xlane.f32.xlu0 %v2196_v26  ;;  %v2504_v26 = vld [vmem:[%s9272_s15 + $0x60] sm:$0xff] }
 0x938   :  { %v2186_v17 = vpop.xlane.xlu1 %2185 }
 0x939   :  { %v2199_v12 = vmul.f32 0.03125, %v2186_v17  ;;  %v2505_v17 = vld [vmem:[%s9272_s15 + $0x68] sm:$0xff] }
 0x93b   :  { %v2204_v62 = vadd.f32 1e-05, %v2199_v12  ;;  %v6626_v12 = vpack.c.bf16 %v2505_v17, %v2504_v26 }
 0x93c   :  { %v2189_v54 = vpop.xlane.xlu1 %2188 }
 0x93d   :  { %6991 = vrsqrt.f32 %v2204_v62  ;;  %v2200_v29 = vmul.f32 0.03125, %v2189_v54  ;;  %v2506_v62 = vld [vmem:[%s9272_s15 + $0x70] sm:$0xff]  ;;  %v2507_v54 = vld [vmem:[%s9272_s15 + $0x78] sm:$0xff] }
 0x93f   :  { %v2205_v30 = vadd.f32 1e-05, %v2200_v29  ;;  %v6629_v29 = vpack.c.bf16 %v2507_v54, %v2506_v62 }
 0x940   :  { %v2192_v31 = vpop.xlane.xlu1 %2191 }
 0x941   :  { %6993 = vrsqrt.f32 %v2205_v30  ;;  %v2201_v18 = vmul.f32 0.03125, %v2192_v31  ;;  %v8231_v30 = vld [vmem:[%s9271_s14] ss:$0 sm:$0xff] }
 0x943   :  { %v2206_v15 = vadd.f32 1e-05, %v2201_v18 }
 0x944   :  { %v2195_v5 = vpop.xlane.xlu1 %2194 }
 0x945   :  { %6995 = vrsqrt.f32 %v2206_v15  ;;  %v2202_v21 = vmul.f32 0.03125, %v2195_v5 }
 0x947   :  { %v6992_v25 = vpop.eup %6991  ;;  %v2207_v43 = vadd.f32 1e-05, %v2202_v21 }
 0x948   :  { %v2214_v23 = vmul.f32 %v6992_v25, %v2174_v4 }
 0x949   :  { %6997 = vrsqrt.f32 %v2207_v43 }
 0x94a   :  { %v2225_v16 = vmul.f32 %v5314_v55, %v2214_v23 }
 0x94b   :  { %v6994_v27 = vpop.eup %6993 }
 0x94c   :  { %v2236_v28 = vadd.f32 %v5315_v51, %v2225_v16  ;;  %v2215_v19 = vmul.f32 %v6994_v27, %v2175_v9 }
 0x94e   :  { %6095 = vmatmul.mubr.msk.f32.vlgmr.msra.gmra.mrb[68].mxu1 %vm192_vm2, %v2236_v28  ;;  %v2226_v2 = vmul.f32 %v5314_v55, %v2215_v19 }
 0x94f   :  { %v6996_v60 = vpop.eup %6995  ;;  %6097 = vmatprep.mubr.msk.f32.mxu1 %vm7181_vm0, %v7182_v6 }
 0x950   :  { %v2237_v63 = vadd.f32 %v5315_v51, %v2226_v2  ;;  %v2216_v7 = vmul.f32 %v6996_v60, %v2176_v41 }
 0x952   :  { %6098 = vmatmul.mubr.msk.f32.gmra.mrb[70].mxu1 %vm192_vm2, %v2237_v63  ;;  %v2227_v33 = vmul.f32 %v5314_v55, %v2216_v7 }
 0x953   :  { %v6998_v1 = vpop.eup %6997  ;;  %6100 = vmatprep.mubr.msk.f32.mxu1 %vm7181_vm0, %v7182_v6 }
 0x954   :  { %v2238_v8 = vadd.f32 %v5315_v51, %v2227_v33  ;;  %v2217_v4 = vmul.f32 %v6998_v1, %v2177_v59  ;;  %v2495_v59 = vld [vmem:[%s9272_s15 + $0x18] sm:$0xff] }
 0x955   :  { %v6611_v52 = vpack.c.bf16 %v2495_v59, %v2494_v49 }
 0x956   :  { %6101 = vmatmul.mubr.msk.f32.gmra.mrb[72].mxu1 %vm192_vm2, %v2238_v8  ;;  %v2228_v10 = vmul.f32 %v5314_v55, %v2217_v4 }
 0x957   :  { %6103 = vmatprep.mubr.msk.f32.mxu1 %vm7181_vm0, %v7182_v6  ;;  %6612 = vmatpush3.bf16.msra.mxu0 %v6611_v52 }
 0x958   :  { %v2239_v44 = vadd.f32 %v5315_v51, %v2228_v10  ;;  %6613 = vmatprep.subr.bf16.mxu0 %v7180_v3 }
 0x95a   :  { %6104 = vmatmul.mubr.msk.f32.gmra.mrb[74].mxu1 %vm192_vm2, %v2239_v44 }
 0x95b   :  { %6106 = vmatprep.mubr.msk.f32.mxu1 %vm7181_vm0, %v7182_v6  ;;  %6615 = vmatpush3.bf16.msra.mxu0 %v6614_v42 }
 0x95c   :  { %6616 = vmatprep.subr.bf16.mxu0 %v7180_v3 }
 0x95f   :  { %6618 = vmatpush3.bf16.msra.mxu0 %v6617_v32 }
 0x960   :  { %6619 = vmatprep.subr.bf16.mxu0 %v7180_v3 }
 0x963   :  { %6621 = vmatpush3.bf16.msra.mxu0 %v6620_v35 }
 0x964   :  { %6622 = vmatprep.subr.bf16.mxu0 %v7180_v3 }
 0x96d   :  { %v2198_v56 = vpop.xlane.xlu0 %2197 }
 0x96e   :  { %v2203_v9 = vmul.f32 0.03125, %v2198_v56 }
 0x970   :  { %v2208_v50 = vadd.f32 1e-05, %v2203_v9 }
 0x972   :  { %6999 = vrsqrt.f32 %v2208_v50 }
 0x97c   :  { %v7000_v37 = vpop.eup %6999 }
 0x97d   :  { %v2218_v38 = vmul.f32 %v7000_v37, %v2178_v24  ;;  %v2503_v24 = vld [vmem:[%s9272_s15 + $0x58] sm:$0xff] }
 0x97e   :  { %v6623_v61 = vpack.c.bf16 %v2503_v24, %v2502_v46 }
 0x97f   :  { %v2229_v40 = vmul.f32 %v5314_v55, %v2218_v38 }
 0x980   :  { %6624 = vmatpush3.bf16.msra.mxu0 %v6623_v61 }
 0x981   :  { %v2240_v41 = vadd.f32 %v5315_v51, %v2229_v40  ;;  %6625 = vmatprep.subr.bf16.mxu0 %v7180_v3 }
 0x983   :  { %6107 = vmatmul.mubr.msk.f32.gmra.mrb[76].mxu1 %vm192_vm2, %v2240_v41 }
 0x984   :  { %6164 = vmatprep.mubr.msk.f32.mxu1 %vm7181_vm0, %v7182_v6  ;;  %6627 = vmatpush3.bf16.msra.mxu0 %v6626_v12 }
 0x985   :  { %6628 = vmatprep.subr.bf16.mxu0 %v7180_v3 }
 0x988   :  { %6630 = vmatpush3.bf16.msra.mxu0 %v6629_v29 }
 0x989   :  { %6637 = vmatprep.subr.bf16.mxu0 %v7180_v3 }
 0xa21   :  { %v2333_v31 = vpop.f32.mrb[68].mxu1 }
 0xa22   :  { %v8234_v18 = vadd.f32 %v8231_v30, %v2333_v31  ;;  %v6096_v15 = vpop.f32.mrb[69].mxu1 }
 0xa24   :  { %v8237_v5 = vmul.f32 0.70710677, %v8234_v18 }
 0xa25   :  { %v2338_v21 = vpop.f32.mrb[70].mxu1 }
 0xa26   :  { %v2377_v25 = vand.u32 2147483647, %v8237_v5  ;;  %v8241_v55 = vadd.f32 %v8231_v30, %v2338_v21  ;;  %v6099_v43 = vpop.f32.mrb[71].mxu1  ;;  %vm2367_vm9 = vcmp.lt.f32.partialorder %v8237_v5, 0.0  ;;  %v2357_v5 = vmul.f32 0.5, %v8234_v18 }
 0xa28   :  { %v2382_v23 = vmul.f32 0.3275911, %v2377_v25  ;;  %v8244_v51 = vmul.f32 0.70710677, %v8241_v55  ;;  %v2447_v56 = vsub.f32 0.0, %v2377_v25 }
 0xa29   :  { %v2343_v16 = vpop.f32.mrb[72].mxu1 }
 0xa2a   :  { %v2387_v27 = vadd.f32 1.0, %v2382_v23  ;;  %v2378_v28 = vand.u32 2147483647, %v8244_v51  ;;  %v6102_v19 = vpop.f32.mrb[73].mxu1  ;;  %v8248_v2 = vadd.f32 %v8231_v30, %v2343_v16  ;;  %v2452_v40 = vmul.f32 %v2447_v56, %v2377_v25 }
 0xa2b   :  { %vm2368_vm10 = vcmp.lt.f32.partialorder %v8244_v51, 0.0  ;;  %v2358_v51 = vmul.f32 0.5, %v8241_v55 }
 0xa2c   :  { %7001 = vrcp.f32 %v2387_v27  ;;  %v2383_v60 = vmul.f32 0.3275911, %v2378_v28  ;;  %v8251_v63 = vmul.f32 0.70710677, %v8248_v2  ;;  %v2448_v41 = vsub.f32 0.0, %v2378_v28 }
 0xa2d   :  { %v2348_v7 = vpop.f32.mrb[74].mxu1  ;;  %v2457_v59 = vmul.f32 1.442695, %v2452_v40  ;;  %v2359_v55 = vmul.f32 0.5, %v8248_v2 }
 0xa2e   :  { %v2388_v33 = vadd.f32 1.0, %v2383_v60  ;;  %v8254_v1 = vadd.f32 %v8231_v30, %v2348_v7  ;;  %v6105_v8 = vpop.f32.mrb[75].mxu1  ;;  %v2379_v4 = vand.u32 2147483647, %v8251_v63  ;;  %v2453_v52 = vmul.f32 %v2448_v41, %v2378_v28 }
 0xa2f   :  { %v7188_v41 = vmov 1.0   ;;  %vm2369_vm11 = vcmp.lt.f32.partialorder %v8251_v63, 0.0 }
 0xa30   :  { %7003 = vrcp.f32 %v2388_v33  ;;  %v2384_v10 = vmul.f32 0.3275911, %v2379_v4  ;;  %v8258_v44 = vmul.f32 0.70710677, %v8254_v1  ;;  %v2449_v14 = vsub.f32 0.0, %v2379_v4 }
 0xa31   :  { %v2459_v32 = vmul.f32 1.442695, %v2453_v52 }
 0xa32   :  { %v2389_v9 = vadd.f32 1.0, %v2384_v10  ;;  %v2380_v50 = vand.u32 2147483647, %v8258_v44  ;;  %v2454_v35 = vmul.f32 %v2449_v14, %v2379_v4  ;;  %vm2370_vm12 = vcmp.lt.f32.partialorder %v8258_v44, 0.0 }
 0xa34   :  { %7005 = vrcp.f32 %v2389_v9  ;;  %v2385_v37 = vmul.f32 0.3275911, %v2380_v50  ;;  %v2450_v46 = vsub.f32 0.0, %v2380_v50  ;;  %v2461_v29 = vmul.f32 1.442695, %v2454_v35 }
 0xa36   :  { %v7002_v38 = vpop.eup %7001  ;;  %v2390_v53 = vadd.f32 1.0, %v2385_v37  ;;  %v2455_v31 = vmul.f32 %v2450_v46, %v2380_v50 }
 0xa37   :  { %v2402_v45 = vmul.f32 1.0614054, %v7002_v38 }
 0xa38   :  { %7007 = vrcp.f32 %v2390_v53  ;;  %v2463_v19 = vmul.f32 1.442695, %v2455_v31 }
 0xa39   :  { %v2407_v11 = vadd.f32 -1.4531521, %v2402_v45  ;;  %7009 = vpow2.f32 %v2457_v59  ;;  %v2372_v45 = vsel %vm2367_vm9, -1.0, %v7188_v41 }
 0xa3a   :  { %v7004_v49 = vpop.eup %7003  ;;  %7011 = vpow2.f32 %v2459_v32 }
 0xa3b   :  { %v2412_v48 = vmul.f32 %v7002_v38, %v2407_v11  ;;  %v2403_v42 = vmul.f32 1.0614054, %v7004_v49  ;;  %7013 = vpow2.f32 %v2461_v29 }
 0xa3c   :  { %7015 = vpow2.f32 %v2463_v19 }
 0xa3d   :  { %v2417_v57 = vadd.f32 1.4214138, %v2412_v48  ;;  %v2408_v58 = vadd.f32 -1.4531521, %v2403_v42 }
 0xa3e   :  { %v7006_v20 = vpop.eup %7005 }
 0xa3f   :  { %v2422_v39 = vmul.f32 %v7002_v38, %v2417_v57  ;;  %v2413_v24 = vmul.f32 %v7004_v49, %v2408_v58  ;;  %v2404_v61 = vmul.f32 1.0614054, %v7006_v20  ;;  %v2373_v57 = vsel %vm2368_vm10, -1.0, %v7188_v41 }
 0xa41   :  { %v2427_v26 = vadd.f32 -0.28449672, %v2422_v39  ;;  %v2418_v17 = vadd.f32 1.4214138, %v2413_v24  ;;  %v2409_v12 = vadd.f32 -1.4531521, %v2404_v61 }
 0xa42   :  { %v7008_v62 = vpop.eup %7007 }
 0xa43   :  { %v2432_v54 = vmul.f32 %v7002_v38, %v2427_v26  ;;  %v2423_v15 = vmul.f32 %v7004_v49, %v2418_v17  ;;  %v2414_v21 = vmul.f32 %v7006_v20, %v2409_v12  ;;  %v2405_v25 = vmul.f32 1.0614054, %v7008_v62  ;;  %v7010_v7 = vpop.eup %7009 }
 0xa44   :  { %v7012_v40 = vpop.eup %7011 }
 0xa45   :  { %v2437_v43 = vadd.f32 0.2548296, %v2432_v54  ;;  %v2428_v23 = vadd.f32 -0.28449672, %v2423_v15  ;;  %v2419_v16 = vadd.f32 1.4214138, %v2414_v21  ;;  %v7014_v32 = vpop.eup %7013 }
 0xa46   :  { %v2410_v27 = vadd.f32 -1.4531521, %v2405_v25  ;;  %v7016_v17 = vpop.eup %7015  ;;  %v2375_v25 = vsel %vm2370_vm12, -1.0, %v7188_v41 }
 0xa47   :  { %v2442_v28 = vmul.f32 %v7002_v38, %v2437_v43  ;;  %v2433_v60 = vmul.f32 %v7004_v49, %v2428_v23  ;;  %v2424_v33 = vmul.f32 %v7006_v20, %v2419_v16 }
 0xa48   :  { %v2415_v8 = vmul.f32 %v7008_v62, %v2410_v27  ;;  %v2360_v27 = vmul.f32 0.5, %v8254_v1 }
 0xa49   :  { %v2467_v4 = vmul.f32 %v7010_v7, %v2442_v28  ;;  %v2438_v10 = vadd.f32 0.2548296, %v2433_v60  ;;  %v2429_v56 = vadd.f32 -0.28449672, %v2424_v33 }
 0xa4a   :  { %v2420_v9 = vadd.f32 1.4214138, %v2415_v8 }
 0xa4b   :  { %v2472_v50 = vsub.f32 1.0, %v2467_v4  ;;  %v2443_v37 = vmul.f32 %v7004_v49, %v2438_v10  ;;  %v2434_v38 = vmul.f32 %v7006_v20, %v2429_v56 }
 0xa4c   :  { %v2425_v53 = vmul.f32 %v7008_v62, %v2420_v9 }
 0xa4d   :  { %v2477_v11 = vmul.f32 %v2472_v50, %v2372_v45  ;;  %v2468_v59 = vmul.f32 %v7012_v40, %v2443_v37  ;;  %v2439_v52 = vadd.f32 0.2548296, %v2434_v38 }
 0xa4e   :  { %v2430_v48 = vadd.f32 -0.28449672, %v2425_v53 }
 0xa4f   :  { %v2482_v14 = vadd.f32 1.0, %v2477_v11  ;;  %v2473_v42 = vsub.f32 1.0, %v2468_v59  ;;  %v2444_v58 = vmul.f32 %v7006_v20, %v2439_v52  ;;  %v2374_v20 = vsel %vm2369_vm11, -1.0, %v7188_v41 }
 0xa50   :  { %v2435_v49 = vmul.f32 %v7008_v62, %v2430_v48 }
 0xa51   :  { %v2487_v39 = vmul.f32 %v2482_v14, %v2357_v5  ;;  %v2478_v35 = vmul.f32 %v2473_v42, %v2373_v57  ;;  %v2469_v46 = vmul.f32 %v7014_v32, %v2444_v58  ;;  %v5322_v42 = vld [vmem:[%s9273_s16] ss:$0 sm:$0xff] }
 0xa52   :  { %v2440_v24 = vadd.f32 0.2548296, %v2435_v49 }
 0xa53   :  { %6142 = vmatmul.mubr.f32.vlgmr.msra.gmra.mrb[72].mxu0 %v2487_v39  ;;  %v2483_v61 = vadd.f32 1.0, %v2478_v35  ;;  %v2474_v18 = vsub.f32 1.0, %v2469_v46 }
 0xa54   :  { %6144 = vmatprep.mubr.msk.f32.mxu0 %vm7181_vm0, %v7182_v6  ;;  %v2445_v26 = vmul.f32 %v7008_v62, %v2440_v24 }
 0xa55   :  { %v2488_v12 = vmul.f32 %v2483_v61, %v2358_v51  ;;  %v2479_v29 = vmul.f32 %v2474_v18, %v2374_v20 }
 0xa56   :  { %v2353_v54 = vpop.f32.mrb[76].mxu1  ;;  %v2470_v63 = vmul.f32 %v7016_v17, %v2445_v26 }
 0xa57   :  { %v2354_v31 = vadd.f32 %v8231_v30, %v2353_v54  ;;  %v6108_v15 = vpop.f32.mrb[77].mxu1  ;;  %6145 = vmatmul.mubr.f32.gmra.mrb[74].mxu0 %v2488_v12  ;;  %v2484_v21 = vadd.f32 1.0, %v2479_v29 }
 0xa58   :  { %6147 = vmatprep.mubr.msk.f32.mxu0 %vm7181_vm0, %v7182_v6  ;;  %v2475_v62 = vsub.f32 1.0, %v2470_v63 }
 0xa59   :  { %v2366_v43 = vmul.f32 0.70710677, %v2354_v31  ;;  %v2489_v23 = vmul.f32 %v2484_v21, %v2359_v55  ;;  %v2361_v48 = vmul.f32 0.5, %v2354_v31 }
 0xa5a   :  { %v2480_v16 = vmul.f32 %v2475_v62, %v2375_v25 }
 0xa5b   :  { %v2381_v44 = vand.u32 2147483647, %v2366_v43  ;;  %6148 = vmatmul.mubr.f32.gmra.mrb[76].mxu0 %v2489_v23  ;;  %vm2371_vm13 = vcmp.lt.f32.partialorder %v2366_v43, 0.0 }
 0xa5c   :  { %v2485_v28 = vadd.f32 1.0, %v2480_v16  ;;  %6150 = vmatprep.mubr.msk.f32.mxu0 %vm7181_vm0, %v7182_v6  ;;  %v2376_v59 = vsel %vm2371_vm13, -1.0, %v7188_v41 }
 0xa5d   :  { %v2386_v30 = vmul.f32 0.3275911, %v2381_v44  ;;  %v2451_v60 = vsub.f32 0.0, %v2381_v44 }
 0xa5e   :  { %v2490_v2 = vmul.f32 %v2485_v28, %v2360_v27 }
 0xa5f   :  { %v2391_v19 = vadd.f32 1.0, %v2386_v30  ;;  %v2456_v33 = vmul.f32 %v2451_v60, %v2381_v44 }
 0xa60   :  { %6151 = vmatmul.mubr.f32.gmra.mrb[78].mxu0 %v2490_v2 }
 0xa61   :  { %7017 = vrcp.f32 %v2391_v19  ;;  %6153 = vmatprep.mubr.msk.f32.mxu0 %vm7181_vm0, %v7182_v6  ;;  %v2465_v10 = vmul.f32 1.442695, %v2456_v33 }
 0xa63   :  { %7019 = vpow2.f32 %v2465_v10 }
 0xa6b   :  { %v7018_v7 = vpop.eup %7017 }
 0xa6c   :  { %v2406_v8 = vmul.f32 1.0614054, %v7018_v7 }
 0xa6d   :  { %v7020_v38 = vpop.eup %7019 }
 0xa6e   :  { %v2411_v4 = vadd.f32 -1.4531521, %v2406_v8 }
 0xa70   :  { %v2416_v1 = vmul.f32 %v7018_v7, %v2411_v4 }
 0xa72   :  { %v2421_v56 = vadd.f32 1.4214138, %v2416_v1 }
 0xa74   :  { %v2426_v9 = vmul.f32 %v7018_v7, %v2421_v56  ;;  %v5327_v56 = vld [vmem:[%s9266_s9 + $0x20] sm:$0xff] }
 0xa76   :  { %v2431_v50 = vadd.f32 -0.28449672, %v2426_v9  ;;  %v5328_v9 = vld [vmem:[%s9266_s9 + $0x28] sm:$0xff] }
 0xa78   :  { %v2436_v37 = vmul.f32 %v7018_v7, %v2431_v50  ;;  %v6632_v50 = vpack.c.bf16 %v5328_v9, %v5327_v56 }
 0xa7a   :  { %v2441_v40 = vadd.f32 0.2548296, %v2436_v37  ;;  %6633 = vmatpush3.bf16.msra.mxu1 %v6632_v50  ;;  %v5329_v37 = vld [vmem:[%s9266_s9 + $0x30] sm:$0xff] }
 0xa7b   :  { %6634 = vmatprep.subr.bf16.mxu1 %v7180_v3 }
 0xa7c   :  { %v2446_v45 = vmul.f32 %v7018_v7, %v2441_v40  ;;  %v5330_v40 = vld [vmem:[%s9266_s9 + $0x38] sm:$0xff] }
 0xa7e   :  { %v2471_v53 = vmul.f32 %v7020_v38, %v2446_v45  ;;  %v6635_v45 = vpack.c.bf16 %v5330_v40, %v5329_v37 }
 0xa80   :  { %v2476_v11 = vsub.f32 1.0, %v2471_v53  ;;  %6636 = vmatpush3.bf16.msra.mxu1 %v6635_v45 }
 0xa81   :  { %6645 = vmatprep.subr.bf16.mxu1 %v7180_v3 }
 0xa82   :  { %v2481_v52 = vmul.f32 %v2476_v11, %v2376_v59 }
 0xa84   :  { %v2486_v5 = vadd.f32 1.0, %v2481_v52 }
 0xa86   :  { %v2491_v14 = vmul.f32 %v2486_v5, %v2361_v48 }
 0xa88   :  { %6154 = vmatmul.mubr.f32.gmra.mrb[80].mxu0 %v2491_v14 }
 0xa89   :  { %6189 = vmatprep.mubr.msk.f32.mxu0 %vm7181_vm0, %v7182_v6 }
 0xb26   :  { %v2581_v57 = vpop.f32.mrb[72].mxu0 }
 0xb27   :  { %v2582_v58 = vadd.f32 %v5322_v42, %v2581_v57  ;;  %v6143_v49 = vpop.f32.mrb[73].mxu0 }
 0xb29   :  { %v8289_v32 = vadd.f32 %v2582_v58, %v8100_v34 }
 0xb2a   :  { %v2586_v39 = vpop.f32.mrb[74].mxu0 }
 0xb2b   :  { %v2587_v35 = vadd.f32 %v5322_v42, %v2586_v39  ;;  %v6146_v46 = vpop.f32.mrb[75].mxu0  ;;  %v2614_v24 = vsel %vm192_vm2, %v8289_v32, 0.0 }
 0xb2c   :  { %2615 = vadd.xlane.f32.xlu1 %v2614_v24 }
 0xb2d   :  { %v8294_v51 = vadd.f32 %v2587_v35, %v8106_v0 }
 0xb2e   :  { %v2591_v61 = vpop.f32.mrb[76].mxu0 }
 0xb2f   :  { %v2617_v18 = vsel %vm192_vm2, %v8294_v51, 0.0  ;;  %v2592_v26 = vadd.f32 %v5322_v42, %v2591_v61  ;;  %v6149_v17 = vpop.f32.mrb[77].mxu0 }
 0xb30   :  { %2618 = vadd.xlane.f32.xlu0 %v2617_v18  ;;  %v5325_v18 = vld [vmem:[%s9262_s5 + $0x1] ss:$0 sm:$0xff] }
 0xb31   :  { %v8299_v34 = vadd.f32 %v2592_v26, %v8112_v47 }
 0xb33   :  { %v2596_v20 = vpop.f32.mrb[78].mxu0  ;;  %v2620_v29 = vsel %vm192_vm2, %v8299_v34, 0.0 }
 0xb34   :  { %v2597_v12 = vadd.f32 %v5322_v42, %v2596_v20  ;;  %v6152_v54 = vpop.f32.mrb[79].mxu0  ;;  %2621 = vadd.xlane.f32.xlu1 %v2620_v29  ;;  %v5326_v20 = vld [vmem:[%s9263_s6 + $0x1] ss:$0 sm:$0xff] }
 0xb36   :  { %v8304_v0 = vadd.f32 %v2597_v12, %v8117_v22 }
 0xb38   :  { %v2623_v63 = vsel %vm192_vm2, %v8304_v0, 0.0 }
 0xb39   :  { %2624 = vadd.xlane.f32.xlu0 %v2623_v63 }
 0xb5b   :  { %v2601_v31 = vpop.f32.mrb[80].mxu0 }
 0xb5c   :  { %v2602_v15 = vadd.f32 %v5322_v42, %v2601_v31  ;;  %v6155_v55 = vpop.f32.mrb[81].mxu0 }
 0xb5e   :  { %v8309_v47 = vadd.f32 %v2602_v15, %v8123_v13 }
 0xb60   :  { %v2626_v21 = vsel %vm205_vm3, %v8309_v47, 0.0 }
 0xb61   :  { %2627 = vadd.xlane.f32.xlu1 %v2626_v21 }
 0xbb9   :  { %v2616_v62 = vpop.xlane.xlu1 %2615 }
 0xbba   :  { %v2629_v25 = vmul.f32 0.03125, %v2616_v62 }
 0xbbc   :  { %v2634_v43 = vsub.f32 %v8289_v32, %v2629_v25 }
 0xbbd   :  { %v2619_v22 = vpop.xlane.xlu0 %2618 }
 0xbbe   :  { %v2630_v23 = vmul.f32 0.03125, %v2619_v22  ;;  %v2639_v16 = vmul.f32 %v2634_v43, %v2634_v43 }
 0xbc0   :  { %v2635_v44 = vsub.f32 %v8294_v51, %v2630_v23  ;;  %v2644_v27 = vsel %vm192_vm2, %v2639_v16, 0.0 }
 0xbc1   :  { %2645 = vadd.xlane.f32.xlu0 %v2644_v27  ;;  %v2622_v28 = vpop.xlane.xlu1 %2621 }
 0xbc2   :  { %v2640_v30 = vmul.f32 %v2635_v44, %v2635_v44  ;;  %v2631_v13 = vmul.f32 0.03125, %v2622_v28 }
 0xbc4   :  { %v2647_v2 = vsel %vm192_vm2, %v2640_v30, 0.0  ;;  %v2636_v19 = vsub.f32 %v8299_v34, %v2631_v13 }
 0xbc5   :  { %2648 = vadd.xlane.f32.xlu1 %v2647_v2 }
 0xbc6   :  { %v2625_v60 = vpop.xlane.xlu0 %2624  ;;  %v2641_v33 = vmul.f32 %v2636_v19, %v2636_v19 }
 0xbc7   :  { %v2632_v7 = vmul.f32 0.03125, %v2625_v60  ;;  %v5332_v60 = vld [vmem:[%s9267_s10 + $0x1] ss:$0 sm:$0xff]  ;;  %s7189_s10 = smov [#allocation2]  }
 0xbc8   :  { %v2650_v4 = vsel %vm192_vm2, %v2641_v33, 0.0 }
 0xbc9   :  { %v2637_v8 = vsub.f32 %v8304_v0, %v2632_v7  ;;  %2651 = vadd.xlane.f32.xlu0 %v2650_v4 }
 0xbcb   :  { %v2642_v10 = vmul.f32 %v2637_v8, %v2637_v8 }
 0xbcd   :  { %v2653_v1 = vsel %vm192_vm2, %v2642_v10, 0.0 }
 0xbce   :  { %2654 = vadd.xlane.f32.xlu1 %v2653_v1 }
 0xbee   :  { %v2628_v38 = vpop.xlane.xlu1 %2627 }
 0xbef   :  { %v2633_v53 = vmul.f32 0.03125, %v2628_v38 }
 0xbf1   :  { %v2638_v11 = vsub.f32 %v8309_v47, %v2633_v53 }
 0xbf3   :  { %v2643_v59 = vmul.f32 %v2638_v11, %v2638_v11 }
 0xbf5   :  { %v2656_v52 = vsel %vm205_vm3, %v2643_v59, 0.0 }
 0xbf6   :  { %2657 = vadd.xlane.f32.xlu0 %v2656_v52 }
 0xc4e   :  { %v2646_v48 = vpop.xlane.xlu0 %2645 }
 0xc4f   :  { %v2659_v5 = vmul.f32 0.03125, %v2646_v48 }
 0xc51   :  { %v2664_v14 = vadd.f32 1e-05, %v2659_v5 }
 0xc52   :  { %v2649_v42 = vpop.xlane.xlu1 %2648 }
 0xc53   :  { %7021 = vrsqrt.f32 %v2664_v14  ;;  %v2660_v57 = vmul.f32 0.03125, %v2649_v42 }
 0xc55   :  { %v2665_v58 = vadd.f32 1e-05, %v2660_v57 }
 0xc56   :  { %v2652_v49 = vpop.xlane.xlu0 %2651 }
 0xc57   :  { %7023 = vrsqrt.f32 %v2665_v58  ;;  %v2661_v39 = vmul.f32 0.03125, %v2652_v49 }
 0xc59   :  { %v2666_v35 = vadd.f32 1e-05, %v2661_v39 }
 0xc5b   :  { %v2655_v46 = vpop.xlane.xlu1 %2654  ;;  %7025 = vrsqrt.f32 %v2666_v35 }
 0xc5c   :  { %v2662_v24 = vmul.f32 0.03125, %v2655_v46 }
 0xc5d   :  { %v7022_v61 = vpop.eup %7021 }
 0xc5e   :  { %v2674_v26 = vmul.f32 %v7022_v61, %v2634_v43  ;;  %v2667_v17 = vadd.f32 1e-05, %v2662_v24 }
 0xc60   :  { %v2685_v12 = vmul.f32 %v5325_v18, %v2674_v26  ;;  %7027 = vrsqrt.f32 %v2667_v17 }
 0xc61   :  { %v7024_v54 = vpop.eup %7023 }
 0xc62   :  { %v2696_v29 = vadd.f32 %v5326_v20, %v2685_v12  ;;  %v2675_v63 = vmul.f32 %v7024_v54, %v2635_v44 }
 0xc64   :  { %6165 = vmatmul.mubr.msk.f32.vlgmr.msra.gmra.mrb[78].mxu1 %vm192_vm2, %v2696_v29  ;;  %v2686_v31 = vmul.f32 %v5325_v18, %v2675_v63 }
 0xc65   :  { %6167 = vmatprep.mubr.msk.f32.mxu1 %vm7181_vm0, %v7182_v6  ;;  %v7026_v15 = vpop.eup %7025 }
 0xc66   :  { %v2697_v55 = vadd.f32 %v5326_v20, %v2686_v31  ;;  %v2676_v21 = vmul.f32 %v7026_v15, %v2636_v19 }
 0xc68   :  { %6168 = vmatmul.mubr.msk.f32.gmra.mrb[80].mxu1 %vm192_vm2, %v2697_v55  ;;  %v2687_v62 = vmul.f32 %v5325_v18, %v2676_v21 }
 0xc69   :  { %6170 = vmatprep.mubr.msk.f32.mxu1 %vm7181_vm0, %v7182_v6 }
 0xc6a   :  { %v7028_v25 = vpop.eup %7027  ;;  %v2698_v43 = vadd.f32 %v5326_v20, %v2687_v62 }
 0xc6b   :  { %v2677_v22 = vmul.f32 %v7028_v25, %v2637_v8 }
 0xc6c   :  { %6171 = vmatmul.mubr.msk.f32.gmra.mrb[82].mxu1 %vm192_vm2, %v2698_v43 }
 0xc6d   :  { %v2688_v23 = vmul.f32 %v5325_v18, %v2677_v22  ;;  %6173 = vmatprep.mubr.msk.f32.mxu1 %vm7181_vm0, %v7182_v6 }
 0xc6f   :  { %v2699_v16 = vadd.f32 %v5326_v20, %v2688_v23 }
 0xc71   :  { %6174 = vmatmul.mubr.msk.f32.gmra.mrb[84].mxu1 %vm192_vm2, %v2699_v16 }
 0xc72   :  { %6176 = vmatprep.mubr.msk.f32.mxu1 %vm7181_vm0, %v7182_v6 }
 0xc83   :  { %v2658_v44 = vpop.xlane.xlu0 %2657 }
 0xc84   :  { %v2663_v27 = vmul.f32 0.03125, %v2658_v44 }
 0xc86   :  { %v2668_v28 = vadd.f32 1e-05, %v2663_v27 }
 0xc88   :  { %7029 = vrsqrt.f32 %v2668_v28 }
 0xc92   :  { %v7030_v30 = vpop.eup %7029 }
 0xc93   :  { %v2678_v13 = vmul.f32 %v7030_v30, %v2638_v11 }
 0xc95   :  { %v2689_v2 = vmul.f32 %v5325_v18, %v2678_v13 }
 0xc97   :  { %v2700_v19 = vadd.f32 %v5326_v20, %v2689_v2 }
 0xc99   :  { %6177 = vmatmul.mubr.msk.f32.gmra.mrb[86].mxu1 %vm192_vm2, %v2700_v19 }
 0xc9a   :  { %6214 = vmatprep.mubr.msk.f32.mxu1 %vm7181_vm0, %v7182_v6 }
 0xd37   :  { %v2795_v7 = vpop.f32.mrb[78].mxu1 }
 0xd38   :  { %v8361_v33 = vadd.f32 %v5332_v60, %v2795_v7  ;;  %v6166_v8 = vpop.f32.mrb[79].mxu1 }
 0xd3a   :  { %2824 = vrot.lane.b32.xlu1 %v8361_v33, %s7183_s1  ;;  %v2869_v44 = vmul.f32 0.35355338, %v8361_v33 }
 0xd3b   :  { %v2800_v4 = vpop.f32.mrb[80].mxu1 }
 0xd3c   :  { %v8365_v10 = vadd.f32 %v5332_v60, %v2800_v4  ;;  %v6169_v1 = vpop.f32.mrb[81].mxu1 }
 0xd3e   :  { %2826 = vrot.lane.b32.xlu0 %v8365_v10, %s7183_s1  ;;  %v8371_v56 = vpack.i.bf16 %v8365_v10, %v8361_v33  ;;  %v2870_v27 = vmul.f32 0.35355338, %v8365_v10 }
 0xd3f   :  { %v2805_v9 = vpop.f32.mrb[82].mxu1 }
 0xd40   :  { %v8373_v50 = vadd.f32 %v5332_v60, %v2805_v9  ;;  %v6172_v37 = vpop.f32.mrb[83].mxu1 }
 0xd42   :  { %2839 = vrot.lane.b32.xlu0 %v8361_v33, %s7184_s22  ;;  %2828 = vrot.lane.b32.xlu1 %v8373_v50, %s7183_s1  ;;  %v2871_v28 = vmul.f32 0.35355338, %v8373_v50 }
 0xd44   :  { %v2810_v40 = vpop.f32.mrb[84].mxu1 }
 0xd45   :  { %v8379_v45 = vadd.f32 %v5332_v60, %v2810_v40  ;;  %v6175_v38 = vpop.f32.mrb[85].mxu1 }
 0xd46   :  { %2854 = vrot.lane.b32.xlu0 %v8361_v33, %s7185_s2 }
 0xd47   :  { %2830 = vrot.lane.b32.xlu1 %v8379_v45, %s7183_s1  ;;  %v6831_v53 = vpack.i.bf16 %v8379_v45, %v8373_v50  ;;  %v2872_v30 = vmul.f32 0.35355338, %v8379_v45 }
 0xd4a   :  { %2843 = vrot.lane.b32.xlu0 %v8373_v50, %s7184_s22 }
 0xd4b   :  { %2841 = vrot.lane.b32.xlu1 %v8365_v10, %s7184_s22 }
 0xd4e   :  { %2858 = vrot.lane.b32.xlu0 %v8373_v50, %s7185_s2 }
 0xd6c   :  { %v2815_v11 = vpop.f32.mrb[86].mxu1 }
 0xd6d   :  { %v8393_v59 = vadd.f32 %v5332_v60, %v2815_v11  ;;  %v6178_v52 = vpop.f32.mrb[87].mxu1 }
 0xd6f   :  { %2847 = vrot.lane.b32.xlu0 %v8393_v59, %s7184_s22  ;;  %2832 = vrot.lane.b32.xlu1 %v8393_v59, %s7183_s1  ;;  %v2873_v13 = vmul.f32 0.35355338, %v8393_v59  ;;  %s5208_s1 = sshll.u32 %s7189_s10, 4  ;;  %s5209_s1 = int_to_ptr.vmem [resolvable:$true] %s5208_s1 }
 0xd70   :  { %p7161_p1 = scmp.lt.s32.totalorder %s5209_s1, %s5209_s1 }
 0xd73   :  { %6822 = vrot.lane.b32.xlu0 %v8371_v56, %s7186_s23  ;;  %2856 = vrot.lane.b32.xlu1 %v8365_v10, %s7185_s2 }
 0xd77   :  { %6832 = vrot.lane.b32.xlu0 %v6831_v53, %s7186_s23  ;;  %2845 = vrot.lane.b32.xlu1 %v8379_v45, %s7184_s22  ;;  %s7156_s22 = scalar_lea.vmem %s5209_s1, 32 }
 0xd78   :  { %p7157_p0 = scmp.ne.s32.totalorder %s5209_s1, %s7156_s22  ;;  %p7162_p2 = scmp.lt.s32.totalorder %s7156_s22, %s7156_s22 }
 0xd7a   :  { %p7163_p3 = por %p7162_p2, %p7161_p1 }
 0xd7b   :  { %2897 = vrot.lane.b32.xlu0 %v8393_v59, %s7186_s23  ;;  %2860 = vrot.lane.b32.xlu1 %v8379_v45, %s7185_s2 }
 0xd7c   :  { %p7164_p4 = pnand %p7163_p3, %p7157_p0 }
 0xd7f   :  { %2862 = vrot.lane.b32.xlu1 %v8393_v59, %s7185_s2 }
 0xdac   :  { %v8412_v48 = vpop.permute.xlu1 %2824 }
 0xdad   :  { %v2874_v40 = vmul.f32 0.35355338, %v8412_v48 }
 0xdb0   :  { %v8414_v5 = vpop.permute.xlu0 %2826 }
 0xdb1   :  { %v6826_v14 = vpack.i.bf16 %v8414_v5, %v8412_v48  ;;  %v2875_v45 = vmul.f32 0.35355338, %v8414_v5 }
 0xdb3   :  { %6827 = vrot.lane.b32.xlu1 %v6826_v14, %s7186_s23 }
 0xdb4   :  { %v8419_v42 = vpop.permute.xlu1 %2828  ;;  %v8426_v49 = vpop.permute.xlu0 %2839 }
 0xdb5   :  { %v2876_v52 = vmul.f32 0.35355338, %v8419_v42 }
 0xdb8   :  { %v8433_v46 = vpop.permute.xlu0 %2854 }
 0xdb9   :  { %v8421_v57 = vpop.permute.xlu1 %2830 }
 0xdba   :  { %v6876_v58 = vpack.i.bf16 %v8421_v57, %v8419_v42 }
 0xdbc   :  { %6837 = vrot.lane.b32.xlu1 %v6876_v58, %s7186_s23  ;;  %v8435_v24 = vpop.permute.xlu0 %2843 }
 0xdbd   :  { %v8428_v39 = vpop.permute.xlu1 %2841 }
 0xdbe   :  { %v6841_v35 = vpack.i.bf16 %v8428_v39, %v8426_v49 }
 0xdc0   :  { %6842 = vrot.lane.b32.xlu0 %v6841_v35, %s7186_s23  ;;  %v8437_v61 = vpop.permute.xlu0 %2858 }
 0xde1   :  { %v8439_v18 = vpop.permute.xlu0 %2847  ;;  %v8441_v26 = vpop.permute.xlu1 %2832 }
 0xde2   :  { %3022 = vrot.lane.b32.xlu1 %v8441_v26, %s7186_s23 }
 0xde5   :  { %v6823_v17 = vpop.permute.xlu0 %6822  ;;  %v8445_v20 = vpop.permute.xlu1 %2856 }
 0xde6   :  { %v6825_v12 = vunpack.i.h.bf16 %v6823_v17  ;;  %v6824_v54 = vunpack.i.l.bf16 %v6823_v17  ;;  %v8449_v29 = vpack.i.bf16 %v8445_v20, %v8433_v46  ;;  %v2877_v17 = vmul.f32 0.35355338, %v8421_v57 }
 0xde8   :  { %v6638_v63 = vpack.c.bf16 %v6825_v12, %v6824_v54  ;;  %6847 = vrot.lane.b32.xlu1 %v8449_v29, %s7186_s23 }
 0xde9   :  { %v6833_v31 = vpop.permute.xlu0 %6832  ;;  %v8453_v15 = vpop.permute.xlu1 %2845 }
 0xdea   :  { %6640 = vmatpush3.bf16.xpose.msk.msra.mxu0 %vm7542_vm5, %v6638_v63  ;;  %v8459_v55 = vpack.i.bf16 %v8453_v15, %v8435_v24  ;;  %v6835_v21 = vunpack.i.h.bf16 %v6833_v31  ;;  %v6834_v62 = vunpack.i.l.bf16 %v6833_v31 }
 0xdeb   :  { %6641 = vmatprep.subr.bf16.mxu0 %v7180_v3 }
 0xdec   :  { %6852 = vrot.lane.b32.xlu0 %v8459_v55, %s7186_s23  ;;  %v6642_v22 = vpack.c.bf16 %v6835_v21, %v6834_v62  ;;  %v2878_v21 = vmul.f32 0.35355338, %v8441_v26 }
 0xded   :  { %v8464_v25 = vpop.permute.xlu1 %2860  ;;  %v2898_v16 = vpop.permute.xlu0 %2897 }
 0xdee   :  { %v8468_v43 = vpack.i.bf16 %v8464_v25, %v8437_v61 }
 0xdf0   :  { %6857 = vrot.lane.b32.xlu1 %v8468_v43, %s7186_s23  ;;  %3147 = vrot.lane.b32.xlu0 %v8439_v18, %s7186_s23 }
 0xdf1   :  { %v8476_v23 = vpop.permute.xlu1 %2862 }
 0xdf2   :  { %6644 = vmatpush3.bf16.xpose.msk.msra.mxu0 %vm7542_vm5, %v6642_v22 }
 0xdf3   :  { %6187 = vmatprep.subr.mxu0 %v7182_v6 }
 0xdf4   :  { %3272 = vrot.lane.b32.xlu1 %v8476_v23, %s7186_s23  ;;  %6867 = vrot.lane.b32.xlu0 %v6826_v14, %s7187_s24 }
 0xdf8   :  { %6862 = vrot.lane.b32.xlu1 %v8371_v56, %s7187_s24  ;;  %6872 = vrot.lane.b32.xlu0 %v6831_v53, %s7187_s24 }
 0xdfa   :  { %6188 = vmatpush3.xpose.msk.msra.mxu0 %vm478_vm4, %v2898_v16 }
 0xdfb   :  { %6653 = vmatprep.subr.bf16.mxu0 %v7180_v3 }
 0xdfc   :  { %6877 = vrot.lane.b32.xlu1 %v6876_v58, %s7187_s24  ;;  %6882 = vrot.lane.b32.xlu0 %v6841_v35, %s7187_s24 }
 0xdfd   :  { %6190 = vmatmul.mubr.msk.f32.vlgmr.msra.gmra.mrb[82].mxu0 %vm478_vm4, %v2869_v44 }
 0xdfe   :  { %6192 = vmatprep.mubr.msk.f32.mxu0 %vm7181_vm0, %v7182_v6 }
 0xe00   :  { %3617 = vrot.lane.b32.xlu1 %v8393_v59, %s7187_s24 }
 0xe01   :  { %6193 = vmatmul.mubr.msk.f32.gmra.mrb[84].mxu0 %vm478_vm4, %v2870_v27  ;;  %v2879_v27 = vmul.f32 0.35355338, %v8426_v49 }
 0xe02   :  { %6195 = vmatprep.mubr.msk.f32.mxu0 %vm7181_vm0, %v7182_v6 }
 0xe04   :  { %3738 = vrot.lane.b32.xlu1 %v8441_v26, %s7187_s24 }
 0xe05   :  { %6196 = vmatmul.mubr.msk.f32.gmra.mrb[86].mxu0 %vm478_vm4, %v2871_v28 }
 0xe06   :  { %6198 = vmatprep.mubr.msk.f32.mxu0 %vm7181_vm0, %v7182_v6 }
 0xe09   :  { %6199 = vmatmul.mubr.msk.f32.gmra.mrb[88].mxu0 %vm478_vm4, %v2872_v30 }
 0xe0a   :  { %6201 = vmatprep.mubr.msk.f32.mxu0 %vm7181_vm0, %v7182_v6 }
 0xe0d   :  { %6202 = vmatmul.mubr.msk.f32.gmra.mrb[90].mxu0 %vm478_vm4, %v2873_v13 }
 0xe0e   :  { %6239 = vmatprep.mubr.msk.f32.mxu0 %vm7181_vm0, %v7182_v6 }
 0xe25   :  { %v6828_v2 = vpop.permute.xlu1 %6827 }
 0xe26   :  { %v6830_v19 = vunpack.i.h.bf16 %v6828_v2  ;;  %v6829_v60 = vunpack.i.l.bf16 %v6828_v2 }
 0xe28   :  { %v6646_v7 = vpack.c.bf16 %v6830_v19, %v6829_v60  ;;  %v2884_v19 = vmul.f32 0.35355338, %v8433_v46  ;;  %v2880_v60 = vmul.f32 0.35355338, %v8428_v39  ;;  %v2881_v46 = vmul.f32 0.35355338, %v8435_v24 }
 0xe29   :  { %v2885_v39 = vmul.f32 0.35355338, %v8445_v20  ;;  %v2886_v24 = vmul.f32 0.35355338, %v8437_v61  ;;  %v2882_v20 = vmul.f32 0.35355338, %v8453_v15 }
 0xe2a   :  { %6648 = vmatpush3.bf16.xpose.msk.msra.mxu1 %vm7542_vm5, %v6646_v7  ;;  %v2883_v61 = vmul.f32 0.35355338, %v8439_v18  ;;  %v2887_v15 = vmul.f32 0.35355338, %v8464_v25 }
 0xe2b   :  { %6649 = vmatprep.subr.bf16.mxu1 %v7180_v3 }
 0xe2e   :  { %v6838_v33 = vpop.permute.xlu1 %6837 }
 0xe2f   :  { %v6840_v8 = vunpack.i.h.bf16 %v6838_v33  ;;  %v6839_v4 = vunpack.i.l.bf16 %v6838_v33 }
 0xe31   :  { %v6650_v10 = vpack.c.bf16 %v6840_v8, %v6839_v4 }
 0xe32   :  { %v6843_v1 = vpop.permute.xlu0 %6842 }
 0xe33   :  { %v6845_v56 = vunpack.i.h.bf16 %v6843_v1  ;;  %v6844_v9 = vunpack.i.l.bf16 %v6843_v1  ;;  %6652 = vmatpush3.bf16.xpose.msk.msra.mxu1 %vm7542_vm5, %v6650_v10 }
 0xe34   :  { %6212 = vmatprep.subr.mxu1 %v7182_v6 }
 0xe35   :  { %v6654_v50 = vpack.c.bf16 %v6845_v56, %v6844_v9  ;;  %v2888_v56 = vmul.f32 0.35355338, %v8476_v23  ;;  %v7151_v9 = vld [vmem:[%s9290_s26] sm:$0xff] }
 0xe37   :  { %6656 = vmatpush3.bf16.xpose.msk.msra.mxu0 %vm7542_vm5, %v6654_v50 }
 0xe38   :  { %6657 = vmatprep.subr.bf16.mxu0 %v7180_v3 }
 0xe54   :  { %v3023_v37 = vpop.permute.xlu1 %3022 }
 0xe55   :  { %6213 = vmatpush3.xpose.msk.msra.mxu1 %vm478_vm4, %v3023_v37 }
 0xe56   :  { %6661 = vmatprep.subr.bf16.mxu1 %v7180_v3 }
 0xe58   :  { %6215 = vmatmul.mubr.msk.f32.vlgmr.msra.gmra.mrb[88].mxu1 %vm478_vm4, %v2874_v40 }
 0xe59   :  { %6217 = vmatprep.mubr.msk.f32.mxu1 %vm7181_vm0, %v7182_v6 }
 0xe5a   :  { %v6848_v38 = vpop.permute.xlu1 %6847 }
 0xe5b   :  { %v6850_v53 = vunpack.i.h.bf16 %v6848_v38  ;;  %v6849_v11 = vunpack.i.l.bf16 %v6848_v38  ;;  %v8615_v38 = vld [vmem:[%s9290_s26 + $0x8] sm:$0xff] }
 0xe5c   :  { %6218 = vmatmul.mubr.msk.f32.gmra.mrb[90].mxu1 %vm478_vm4, %v2875_v45 }
 0xe5d   :  { %6220 = vmatprep.mubr.msk.f32.mxu1 %vm7181_vm0, %v7182_v6  ;;  %v6662_v59 = vpack.c.bf16 %v6850_v53, %v6849_v11 }
 0xe5e   :  { %v6853_v48 = vpop.permute.xlu0 %6852 }
 0xe5f   :  { %v6855_v14 = vunpack.i.h.bf16 %v6853_v48  ;;  %v6854_v58 = vunpack.i.l.bf16 %v6853_v48  ;;  %6664 = vmatpush3.bf16.xpose.msk.msra.mxu1 %vm7542_vm5, %v6662_v59  ;;  %v8625_v48 = vld [vmem:[%s9290_s26 + $0x10] sm:$0xff] }
 0xe60   :  { %6221 = vmatmul.mubr.msk.f32.gmra.mrb[92].mxu1 %vm478_vm4, %v2876_v52  ;;  %6665 = vmatprep.subr.bf16.mxu1 %v7180_v3 }
 0xe61   :  { %v6658_v5 = vpack.c.bf16 %v6855_v14, %v6854_v58  ;;  %6223 = vmatprep.mubr.msk.f32.mxu1 %vm7181_vm0, %v7182_v6 }
 0xe62   :  { %v6858_v35 = vpop.permute.xlu1 %6857  ;;  %v3148_v12 = vpop.permute.xlu0 %3147 }
 0xe63   :  { %v6860_v54 = vunpack.i.h.bf16 %v6858_v35  ;;  %v6859_v42 = vunpack.i.l.bf16 %v6858_v35  ;;  %6660 = vmatpush3.bf16.xpose.msk.msra.mxu0 %vm7542_vm5, %v6658_v5 }
 0xe64   :  { %6224 = vmatmul.mubr.msk.f32.gmra.mrb[94].mxu1 %vm478_vm4, %v2877_v17  ;;  %6237 = vmatprep.subr.mxu0 %v7182_v6  ;;  %v8635_v17 = vld [vmem:[%s9290_s26 + $0x18] sm:$0xff] }
 0xe65   :  { %v6666_v63 = vpack.c.bf16 %v6860_v54, %v6859_v42  ;;  %6226 = vmatprep.mubr.msk.f32.mxu1 %vm7181_vm0, %v7182_v6 }
 0xe66   :  { %v3273_v31 = vpop.permute.xlu1 %3272  ;;  %v6868_v62 = vpop.permute.xlu0 %6867 }
 0xe67   :  { %6668 = vmatpush3.bf16.xpose.msk.msra.mxu1 %vm7542_vm5, %v6666_v63  ;;  %v6870_v36 = vunpack.i.h.bf16 %v6868_v62  ;;  %v6869_v28 = vunpack.i.l.bf16 %v6868_v62 }
 0xe68   :  { %6227 = vmatmul.mubr.msk.f32.gmra.mrb[96].mxu1 %vm478_vm4, %v2878_v21  ;;  %6262 = vmatprep.subr.mxu1 %v7182_v6 }
 0xe69   :  { %6264 = vmatprep.mubr.msk.f32.mxu1 %vm7181_vm0, %v7182_v6  ;;  %v6676_v49 = vpack.c.bf16 %v6870_v36, %v6869_v28 }
 0xe6a   :  { %v6863_v57 = vpop.permute.xlu1 %6862  ;;  %v6873_v22 = vpop.permute.xlu0 %6872 }
 0xe6b   :  { %v6865_v16 = vunpack.i.h.bf16 %v6863_v57  ;;  %v6864_v44 = vunpack.i.l.bf16 %v6863_v57  ;;  %6238 = vmatpush3.xpose.msk.msra.mxu0 %vm478_vm4, %v3148_v12  ;;  %v6875_v30 = vunpack.i.h.bf16 %v6873_v22  ;;  %v6874_v13 = vunpack.i.l.bf16 %v6873_v22 }
 0xe6c   :  { %6669 = vmatprep.subr.bf16.mxu0 %v7180_v3 }
 0xe6d   :  { %v6670_v26 = vpack.c.bf16 %v6865_v16, %v6864_v44  ;;  %v6673_v7 = vpack.c.bf16 %v6875_v30, %v6874_v13 }
 0xe6e   :  { %6240 = vmatmul.mubr.msk.f32.vlgmr.msra.gmra.mrb[92].mxu0 %vm478_vm4, %v2879_v27  ;;  %v6878_v2 = vpop.permute.xlu1 %6877 }
 0xe6f   :  { %6263 = vmatpush3.xpose.msk.msra.mxu1 %vm478_vm4, %v3273_v31  ;;  %6671 = vmatpush3.bf16.msra.mxu0 %v6670_v26  ;;  %v6880_v33 = vunpack.i.h.bf16 %v6878_v2  ;;  %v6879_v8 = vunpack.i.l.bf16 %v6878_v2  ;;  %v8645_v31 = vld [vmem:[%s9290_s26 + $0x20] sm:$0x3] }
 0xe70   :  { %6242 = vmatprep.mubr.msk.f32.mxu0 %vm7181_vm0, %v7182_v6  ;;  %6672 = vmatprep.subr.bf16.mxu0 %v7180_v3 }
 0xe71   :  { %6675 = vmatprep.subr.bf16.mxu1 %v7180_v3  ;;  %v6679_v10 = vpack.c.bf16 %v6880_v33, %v6879_v8 }
 0xe72   :  { %6243 = vmatmul.mubr.msk.f32.gmra.mrb[94].mxu0 %vm478_vm4, %v2880_v60  ;;  %6265 = vmatmul.mubr.msk.f32.vlgmr.msra.gmra.mrb[98].mxu1 %vm478_vm4, %v2884_v19  ;;  %v3618_v4 = vpop.permute.xlu1 %3617 }
 0xe73   :  { %6674 = vmatpush3.bf16.msra.mxu0 %v6673_v7  ;;  %6677 = vmatpush3.bf16.msra.mxu1 %v6676_v49 }
 0xe74   :  { %6245 = vmatprep.mubr.msk.f32.mxu0 %vm7181_vm0, %v7182_v6  ;;  %6267 = vmatprep.mubr.msk.f32.mxu1 %vm7181_vm0, %v7182_v6 }
 0xe75   :  { %6287 = vmatprep.subr.mxu0 %v7182_v6  ;;  %6678 = vmatprep.subr.bf16.mxu1 %v7180_v3 }
 0xe76   :  { %6246 = vmatmul.mubr.msk.f32.gmra.mrb[96].mxu0 %vm478_vm4, %v2881_v46  ;;  %6268 = vmatmul.mubr.msk.f32.gmra.mrb[100].mxu1 %vm478_vm4, %v2885_v39  ;;  %v3739_v1 = vpop.permute.xlu1 %3738 }
 0xe77   :  { %6288 = vmatpush3.msk.msra.mxu0 %vm1220_vm6, %v3618_v4  ;;  %6680 = vmatpush3.bf16.msra.mxu1 %v6679_v10 }
 0xe78   :  { %6248 = vmatprep.mubr.msk.f32.mxu0 %vm7181_vm0, %v7182_v6  ;;  %6270 = vmatprep.mubr.msk.f32.mxu1 %vm7181_vm0, %v7182_v6 }
 0xe79   :  { %6312 = vmatprep.subr.mxu1 %v7182_v6  ;;  %6681 = vmatprep.subr.bf16.mxu0 %v7180_v3 }
 0xe7a   :  { %6249 = vmatmul.mubr.msk.f32.gmra.mrb[98].mxu0 %vm478_vm4, %v2882_v20  ;;  %6271 = vmatmul.mubr.msk.f32.gmra.mrb[102].mxu1 %vm478_vm4, %v2886_v24 }
 0xe7b   :  { %6313 = vmatpush3.msk.msra.mxu1 %vm1220_vm6, %v3739_v1  ;;  %6251 = vmatprep.mubr.msk.f32.mxu0 %vm7181_vm0, %v7182_v6 }
 0xe7c   :  { %6273 = vmatprep.mubr.msk.f32.mxu1 %vm7181_vm0, %v7182_v6  ;;  %6687 = vmatprep.subr.bf16.mxu1 %v7180_v3 }
 0xe7e   :  { %6252 = vmatmul.mubr.msk.f32.gmra.mrb[100].mxu0 %vm478_vm4, %v2883_v61  ;;  %6274 = vmatmul.mubr.msk.f32.gmra.mrb[104].mxu1 %vm478_vm4, %v2887_v15 }
 0xe7f   :  { %6276 = vmatprep.mubr.msk.f32.mxu1 %vm7181_vm0, %v7182_v6  ;;  %6289 = vmatprep.mubr.msk.f32.mxu0 %vm7181_vm0, %v7182_v6 }
 0xe82   :  { %6277 = vmatmul.mubr.msk.f32.gmra.mrb[106].mxu1 %vm478_vm4, %v2888_v56 }
 0xe83   :  { %6314 = vmatprep.mubr.msk.f32.mxu1 %vm7181_vm0, %v7182_v6 }
 0xed0   :  { %v2990_v25 = vpop.f32.mrb[82].mxu0 }
 0xed1   :  { %v8608_v50 = vadd.f32 %v7151_v9, %v2990_v25  ;;  %v6191_v37 = vpop.f32.mrb[83].mxu0 }
 0xed3   :  { %v3389_v40 = vsel %vm969_vm7, %v8608_v50, -inf }
 0xed4   :  { %3390 = vmax.xlane.f32.xlu0 %v3389_v40  ;;  %v2995_v45 = vpop.f32.mrb[84].mxu0 }
 0xed5   :  { %v8618_v53 = vadd.f32 %v8615_v38, %v2995_v45  ;;  %v6194_v11 = vpop.f32.mrb[85].mxu0 }
 0xed7   :  { %v3392_v59 = vsel %vm969_vm7, %v8618_v53, -inf }
 0xed8   :  { %3393 = vmax.xlane.f32.xlu0 %v3392_v59  ;;  %v3000_v52 = vpop.f32.mrb[86].mxu0 }
 0xed9   :  { %v8628_v14 = vadd.f32 %v8625_v48, %v3000_v52  ;;  %v6197_v58 = vpop.f32.mrb[87].mxu0 }
 0xedb   :  { %v3395_v5 = vsel %vm969_vm7, %v8628_v14, -inf }
 0xedc   :  { %3396 = vmax.xlane.f32.xlu0 %v3395_v5  ;;  %v3005_v35 = vpop.f32.mrb[88].mxu0 }
 0xedd   :  { %v8638_v12 = vadd.f32 %v8635_v17, %v3005_v35  ;;  %v6200_v54 = vpop.f32.mrb[89].mxu0 }
 0xedf   :  { %v3398_v42 = vsel %vm969_vm7, %v8638_v12, -inf }
 0xee0   :  { %3399 = vmax.xlane.f32.xlu0 %v3398_v42  ;;  %v3010_v63 = vpop.f32.mrb[90].mxu0 }
 0xee1   :  { %v8648_v21 = vadd.f32 %v8645_v31, %v3010_v63  ;;  %v6203_v62 = vpop.f32.mrb[91].mxu0 }
 0xee3   :  { %v3401_v57 = vsel %vm982_vm8, %v8648_v21, -inf }
 0xee4   :  { %3402 = vmax.xlane.f32.xlu0 %v3401_v57 }
 0xf2b   :  { %v3115_v22 = vpop.f32.mrb[88].mxu1 }
 0xf2c   :  { %v8652_v16 = vadd.f32 %v7151_v9, %v3115_v22  ;;  %v6216_v44 = vpop.f32.mrb[89].mxu1 }
 0xf2e   :  { %v3404_v27 = vsel %vm969_vm7, %v8652_v16, -inf }
 0xf2f   :  { %3405 = vmax.xlane.f32.xlu1 %v3404_v27  ;;  %v3120_v26 = vpop.f32.mrb[90].mxu1 }
 0xf30   :  { %v6219_v36 = vpop.f32.mrb[91].mxu1  ;;  %v8674_v20 = vadd.f32 %v8615_v38, %v3120_v26 }
 0xf32   :  { %v3407_v11 = vsel %vm969_vm7, %v8674_v20, -inf }
 0xf33   :  { %v3125_v28 = vpop.f32.mrb[92].mxu1 }
 0xf34   :  { %v8657_v30 = vadd.f32 %v8625_v48, %v3125_v28  ;;  %v6222_v13 = vpop.f32.mrb[93].mxu1 }
 0xf36   :  { %v3410_v2 = vsel %vm969_vm7, %v8657_v30, -inf }
 0xf37   :  { %3411 = vmax.xlane.f32.xlu1 %v3410_v2  ;;  %v3130_v19 = vpop.f32.mrb[94].mxu1 }
 0xf38   :  { %v8662_v60 = vadd.f32 %v8635_v17, %v3130_v19  ;;  %v6225_v49 = vpop.f32.mrb[95].mxu1 }
 0xf3a   :  { %v3413_v7 = vsel %vm969_vm7, %v8662_v60, -inf }
 0xf3b   :  { %3414 = vmax.xlane.f32.xlu1 %v3413_v7  ;;  %v3135_v33 = vpop.f32.mrb[96].mxu1 }
 0xf3c   :  { %v8667_v8 = vadd.f32 %v8645_v31, %v3135_v33  ;;  %v6228_v46 = vpop.f32.mrb[97].mxu1 }
 0xf3e   :  { %v3416_v39 = vsel %vm982_vm8, %v8667_v8, -inf }
 0xf3f   :  { %3417 = vmax.xlane.f32.xlu1 %v3416_v39 }
 0xf41   :  { %v3240_v4 = vpop.f32.mrb[92].mxu0 }
 0xf42   :  { %v8671_v10 = vadd.f32 %v7151_v9, %v3240_v4  ;;  %v6241_v24 = vpop.f32.mrb[93].mxu0 }
 0xf43   :  { %v8726_v24 = vpop.permute.xlu0 %6882 }
 0xf44   :  { %v3419_v1 = vsel %vm969_vm7, %v8671_v10, -inf }
 0xf45   :  { %v3365_v61 = vpop.f32.mrb[98].mxu1  ;;  %3420 = vmax.xlane.f32.xlu0 %v3419_v1  ;;  %v3245_v15 = vpop.f32.mrb[94].mxu0 }
 0xf46   :  { %v8678_v56 = vadd.f32 %v7151_v9, %v3365_v61  ;;  %v6244_v25 = vpop.f32.mrb[95].mxu0  ;;  %v6266_v37 = vpop.f32.mrb[99].mxu1  ;;  %v8681_v40 = vadd.f32 %v8615_v38, %v3245_v15 }
 0xf48   :  { %v3434_v45 = vsel %vm969_vm7, %v8678_v56, -inf  ;;  %v3422_v42 = vsel %vm969_vm7, %v8681_v40, -inf }
 0xf49   :  { %3435 = vmax.xlane.f32.xlu1 %v3434_v45  ;;  %v3370_v59 = vpop.f32.mrb[100].mxu1  ;;  %3408 = vmax.xlane.f32.xlu0 %v3407_v11  ;;  %v3250_v52 = vpop.f32.mrb[96].mxu0 }
 0xf4a   :  { %v8688_v58 = vadd.f32 %v8615_v38, %v3370_v59  ;;  %v6247_v9 = vpop.f32.mrb[97].mxu0  ;;  %v6269_v5 = vpop.f32.mrb[101].mxu1  ;;  %v8691_v35 = vadd.f32 %v8625_v48, %v3250_v52 }
 0xf4c   :  { %v3437_v54 = vsel %vm969_vm7, %v8688_v58, -inf  ;;  %v3425_v26 = vsel %vm969_vm7, %v8691_v35, -inf }
 0xf4d   :  { %3438 = vmax.xlane.f32.xlu1 %v3437_v54  ;;  %v3375_v63 = vpop.f32.mrb[102].mxu1  ;;  %3423 = vmax.xlane.f32.xlu0 %v3422_v42  ;;  %v3255_v62 = vpop.f32.mrb[98].mxu0 }
 0xf4e   :  { %v8698_v57 = vadd.f32 %v8625_v48, %v3375_v63  ;;  %v6250_v38 = vpop.f32.mrb[99].mxu0  ;;  %v6272_v22 = vpop.f32.mrb[103].mxu1  ;;  %v8701_v44 = vadd.f32 %v8635_v17, %v3255_v62 }
 0xf50   :  { %v3440_v27 = vsel %vm969_vm7, %v8698_v57, -inf  ;;  %v3428_v7 = vsel %vm969_vm7, %v8701_v44, -inf }
 0xf51   :  { %3441 = vmax.xlane.f32.xlu1 %v3440_v27  ;;  %v3380_v36 = vpop.f32.mrb[104].mxu1  ;;  %3426 = vmax.xlane.f32.xlu0 %v3425_v26  ;;  %v3260_v28 = vpop.f32.mrb[100].mxu0 }
 0xf52   :  { %v8708_v13 = vadd.f32 %v8635_v17, %v3380_v36  ;;  %v6253_v48 = vpop.f32.mrb[101].mxu0  ;;  %v6275_v2 = vpop.f32.mrb[105].mxu1  ;;  %v8711_v19 = vadd.f32 %v8645_v31, %v3260_v28 }
 0xf54   :  { %v3443_v49 = vsel %vm969_vm7, %v8708_v13, -inf  ;;  %v3431_v4 = vsel %vm982_vm8, %v8711_v19, -inf }
 0xf55   :  { %3444 = vmax.xlane.f32.xlu1 %v3443_v49  ;;  %v3385_v33 = vpop.f32.mrb[106].mxu1  ;;  %3429 = vmax.xlane.f32.xlu0 %v3428_v7 }
 0xf56   :  { %v8718_v46 = vadd.f32 %v8645_v31, %v3385_v33  ;;  %v6278_v39 = vpop.f32.mrb[107].mxu1 }
 0xf58   :  { %v3446_v17 = vsel %vm982_vm8, %v8718_v46, -inf }
 0xf59   :  { %3447 = vmax.xlane.f32.xlu1 %v3446_v17  ;;  %3432 = vmax.xlane.f32.xlu0 %v3431_v4 }
 0xf61   :  { %v3391_v1 = vpop.xlane.xlu0 %3390 }
 0xf62   :  { %v3449_v61 = vsub.f32 %v8608_v50, %v3391_v1 }
 0xf64   :  { %v3469_v25 = vmul.f32 1.442695, %v3449_v61 }
 0xf65   :  { %v3394_v31 = vpop.xlane.xlu0 %3393 }
 0xf66   :  { %v3450_v37 = vsub.f32 %v8618_v53, %v3394_v31  ;;  %7031 = vpow2.f32 %v3469_v25 }
 0xf68   :  { %v3471_v11 = vmul.f32 1.442695, %v3450_v37 }
 0xf69   :  { %v3397_v15 = vpop.xlane.xlu0 %3396 }
 0xf6a   :  { %6887 = vrot.lane.b32.xlu1 %v8449_v29, %s7187_s24  ;;  %v3451_v29 = vsub.f32 %v8628_v14, %v3397_v15  ;;  %7033 = vpow2.f32 %v3471_v11 }
 0xf6c   :  { %v3473_v59 = vmul.f32 1.442695, %v3451_v29 }
 0xf6d   :  { %v3400_v45 = vpop.xlane.xlu0 %3399 }
 0xf6e   :  { %7035 = vpow2.f32 %v3473_v59 }
 0xf6f   :  { %6892 = vrot.lane.b32.xlu0 %v8459_v55, %s7187_s24  ;;  %v3452_v55 = vsub.f32 %v8638_v12, %v3400_v45 }
 0xf70   :  { %v8737_v5 = vpop.eup %7031 }
 0xf71   :  { %v3403_v52 = vpop.xlane.xlu0 %3402  ;;  %v3475_v9 = vmul.f32 1.442695, %v3452_v55  ;;  %v3509_v53 = vsel %vm969_vm7, %v8737_v5, 0.0 }
 0xf73   :  { %6897 = vrot.lane.b32.xlu0 %v8468_v43, %s7187_s24  ;;  %v3453_v43 = vsub.f32 %v8648_v21, %v3403_v52  ;;  %7037 = vpow2.f32 %v3475_v9 }
 0xf74   :  { %v8741_v54 = vpop.eup %7033 }
 0xf75   :  { %v3477_v50 = vmul.f32 1.442695, %v3453_v43  ;;  %v3512_v14 = vsel %vm969_vm7, %v8741_v54, 0.0 }
 0xf77   :  { %7039 = vpow2.f32 %v3477_v50 }
 0xf78   :  { %v8745_v12 = vpop.eup %7035 }
 0xf79   :  { %v3515_v21 = vsel %vm969_vm7, %v8745_v12, 0.0 }
 0xf7d   :  { %v8749_v42 = vpop.eup %7037 }
 0xf7e   :  { %v3518_v63 = vsel %vm969_vm7, %v8749_v42, 0.0 }
 0xf81   :  { %v8753_v62 = vpop.eup %7039 }
 0xf82   :  { %v3521_v38 = vsel %vm982_vm8, %v8753_v62, 0.0 }
 0xf92   :  { %3510 = vadd.xlane.f32.xlu0 %v3509_v53 }
 0xf96   :  { %3513 = vadd.xlane.f32.xlu0 %v3512_v14 }
 0xf9a   :  { %3516 = vadd.xlane.f32.xlu0 %v3515_v21 }
 0xf9e   :  { %3519 = vadd.xlane.f32.xlu0 %v3518_v63 }
 0xfa2   :  { %3522 = vadd.xlane.f32.xlu0 %v3521_v38 }
 0xfbc   :  { %v3406_v22 = vpop.xlane.xlu1 %3405 }
 0xfbd   :  { %v3454_v27 = vsub.f32 %v8652_v16, %v3406_v22 }
 0xfbf   :  { %v3479_v26 = vmul.f32 1.442695, %v3454_v27 }
 0xfc1   :  { %7041 = vpow2.f32 %v3479_v26 }
 0xfc4   :  { %v3412_v36 = vpop.xlane.xlu1 %3411 }
 0xfc5   :  { %v3456_v17 = vsub.f32 %v8657_v30, %v3412_v36 }
 0xfc7   :  { %v3483_v15 = vmul.f32 1.442695, %v3456_v17 }
 0xfc8   :  { %v3415_v2 = vpop.xlane.xlu1 %3414 }
 0xfc9   :  { %v3457_v31 = vsub.f32 %v8662_v60, %v3415_v2 }
 0xfcb   :  { %v8758_v28 = vpop.eup %7041  ;;  %v3485_v11 = vmul.f32 1.442695, %v3457_v31 }
 0xfcc   :  { %v3524_v48 = vsel %vm969_vm7, %v8758_v28, 0.0  ;;  %v3418_v49 = vpop.xlane.xlu1 %3417 }
 0xfcd   :  { %3525 = vadd.xlane.f32.xlu1 %v3524_v48 }
 0xfd2   :  { %v3421_v7 = vpop.xlane.xlu0 %3420 }
 0xfd3   :  { %v3459_v33 = vsub.f32 %v8671_v10, %v3421_v7  ;;  %v3458_v10 = vsub.f32 %v8667_v8, %v3418_v49 }
 0xfd5   :  { %v3489_v39 = vmul.f32 1.442695, %v3459_v33  ;;  %v3487_v52 = vmul.f32 1.442695, %v3458_v10 }
 0xfd6   :  { %v3436_v4 = vpop.xlane.xlu1 %3435  ;;  %v3409_v1 = vpop.xlane.xlu0 %3408 }
 0xfd7   :  { %7043 = vpow2.f32 %v3489_v39  ;;  %v3455_v16 = vsub.f32 %v8674_v20, %v3409_v1  ;;  %v3464_v21 = vsub.f32 %v8678_v56, %v3436_v4 }
 0xfd9   :  { %v3481_v61 = vmul.f32 1.442695, %v3455_v16  ;;  %v3499_v2 = vmul.f32 1.442695, %v3464_v21 }
 0xfda   :  { %v3439_v25 = vpop.xlane.xlu1 %3438  ;;  %v3424_v37 = vpop.xlane.xlu0 %3423 }
 0xfdb   :  { %v3460_v45 = vsub.f32 %v8681_v40, %v3424_v37  ;;  %7045 = vpow2.f32 %v3481_v61  ;;  %v3465_v56 = vsub.f32 %v8688_v58, %v3439_v25 }
 0xfdc   :  { %7047 = vpow2.f32 %v3483_v15 }
 0xfdd   :  { %v3491_v29 = vmul.f32 1.442695, %v3460_v45  ;;  %v3501_v33 = vmul.f32 1.442695, %v3465_v56 }
 0xfde   :  { %v3442_v30 = vpop.xlane.xlu1 %3441  ;;  %v3427_v59 = vpop.xlane.xlu0 %3426 }
 0xfdf   :  { %v3461_v55 = vsub.f32 %v8691_v35, %v3427_v59  ;;  %7049 = vpow2.f32 %v3491_v29  ;;  %v3466_v39 = vsub.f32 %v8698_v57, %v3442_v30 }
 0xfe0   :  { %7051 = vpow2.f32 %v3485_v11 }
 0xfe1   :  { %v8769_v20 = vpop.eup %7043  ;;  %v3493_v60 = vmul.f32 1.442695, %v3461_v55  ;;  %v3503_v1 = vmul.f32 1.442695, %v3466_v39 }
 0xfe2   :  { %v3445_v9 = vpop.xlane.xlu1 %3444  ;;  %v3430_v43 = vpop.xlane.xlu0 %3429  ;;  %v3539_v40 = vsel %vm969_vm7, %v8769_v20, 0.0 }
 0xfe3   :  { %v3462_v50 = vsub.f32 %v8701_v44, %v3430_v43  ;;  %3540 = vadd.xlane.f32.xlu1 %v3539_v40  ;;  %7053 = vpow2.f32 %v3493_v60  ;;  %v3467_v16 = vsub.f32 %v8708_v13, %v3445_v9 }
 0xfe4   :  { %7055 = vpow2.f32 %v3487_v52 }
 0xfe5   :  { %v3495_v8 = vmul.f32 1.442695, %v3462_v50  ;;  %v8774_v53 = vpop.eup %7045  ;;  %v3505_v37 = vmul.f32 1.442695, %v3467_v16 }
 0xfe6   :  { %v3448_v35 = vpop.xlane.xlu1 %3447  ;;  %v3433_v14 = vpop.xlane.xlu0 %3432  ;;  %v3527_v22 = vsel %vm969_vm7, %v8774_v53, 0.0 }
 0xfe7   :  { %v3468_v63 = vsub.f32 %v8718_v46, %v3448_v35  ;;  %v3463_v38 = vsub.f32 %v8711_v19, %v3433_v14  ;;  %v8781_v27 = vpop.eup %7047  ;;  %7057 = vpow2.f32 %v3495_v8  ;;  %3528 = vadd.xlane.f32.xlu1 %v3527_v22  ;;  %v6885_v8 = vunpack.i.h.bf16 %v8726_v24 }
 0xfe8   :  { %v3530_v19 = vsel %vm969_vm7, %v8781_v27, 0.0  ;;  %v6884_v35 = vunpack.i.l.bf16 %v8726_v24 }
 0xfe9   :  { %v3507_v44 = vmul.f32 1.442695, %v3468_v63  ;;  %v3497_v26 = vmul.f32 1.442695, %v3463_v38  ;;  %v8783_v36 = vpop.eup %7049 }
 0xfea   :  { %v8785_v48 = vpop.eup %7051  ;;  %v3542_v46 = vsel %vm969_vm7, %v8783_v36, 0.0  ;;  %v6893_v52 = vpop.permute.xlu0 %6892 }
 0xfeb   :  { %7059 = vpow2.f32 %v3507_v44  ;;  %3531 = vadd.xlane.f32.xlu1 %v3530_v19  ;;  %3543 = vadd.xlane.f32.xlu0 %v3542_v46  ;;  %v3533_v7 = vsel %vm969_vm7, %v8785_v48, 0.0  ;;  %v6895_v38 = vunpack.i.h.bf16 %v6893_v52  ;;  %v6894_v22 = vunpack.i.l.bf16 %v6893_v52 }
 0xfec   :  { %7061 = vpow2.f32 %v3497_v26 }
 0xfed   :  { %v8792_v49 = vpop.eup %7053  ;;  %7063 = vpow2.f32 %v3499_v2  ;;  %v6685_v26 = vpack.c.bf16 %v6895_v38, %v6894_v22 }
 0xfee   :  { %v3545_v58 = vsel %vm969_vm7, %v8792_v49, 0.0  ;;  %v8799_v17 = vpop.eup %7055  ;;  %7065 = vpow2.f32 %v3501_v33  ;;  %v6898_v9 = vpop.permute.xlu0 %6897 }
 0xfef   :  { %3534 = vadd.xlane.f32.xlu1 %v3533_v7  ;;  %3546 = vadd.xlane.f32.xlu0 %v3545_v58  ;;  %v3536_v57 = vsel %vm982_vm8, %v8799_v17, 0.0  ;;  %7067 = vpow2.f32 %v3503_v1  ;;  %v6900_v16 = vunpack.i.h.bf16 %v6898_v9 }
 0xff0   :  { %7069 = vpow2.f32 %v3505_v37 }
 0xff1   :  { %v8801_v4 = vpop.eup %7057 }
 0xff2   :  { %v3548_v31 = vsel %vm969_vm7, %v8801_v4, 0.0 }
 0xff3   :  { %3549 = vadd.xlane.f32.xlu1 %v3548_v31  ;;  %3537 = vadd.xlane.f32.xlu0 %v3536_v57  ;;  %v6899_v31 = vunpack.i.l.bf16 %v6898_v9 }
 0xff5   :  { %v8808_v61 = vpop.eup %7059 }
 0xff6   :  { %v8810_v15 = vpop.eup %7061  ;;  %v3566_v25 = vsel %vm982_vm8, %v8808_v61, 0.0 }
 0xff7   :  { %v3551_v13 = vsel %vm982_vm8, %v8810_v15, 0.0  ;;  %3567 = vadd.xlane.f32.xlu1 %v3566_v25  ;;  %v8816_v45 = vpop.eup %7063 }
 0xff8   :  { %3552 = vadd.xlane.f32.xlu0 %v3551_v13  ;;  %v3554_v11 = vsel %vm969_vm7, %v8816_v45, 0.0  ;;  %v8820_v29 = vpop.eup %7065 }
 0xff9   :  { %v3557_v10 = vsel %vm969_vm7, %v8820_v29, 0.0  ;;  %v8824_v30 = vpop.eup %7067 }
 0xffa   :  { %v3560_v59 = vsel %vm969_vm7, %v8824_v30, 0.0  ;;  %v8828_v55 = vpop.eup %7069 }
 0xffb   :  { %v3563_v60 = vsel %vm969_vm7, %v8828_v55, 0.0 }
 0xffc   :  { %3555 = vadd.xlane.f32.xlu0 %v3554_v11 }
0x1000   :  { %3558 = vadd.xlane.f32.xlu0 %v3557_v10 }
0x1004   :  { %3561 = vadd.xlane.f32.xlu0 %v3560_v59 }
0x1008   :  { %3564 = vadd.xlane.f32.xlu0 %v3563_v60  ;;  %3980 = vrot.lane.b32.xlu1 %v8476_v23, %s7187_s24  ;;  %v6682_v23 = vpack.c.bf16 %v6885_v8, %v6884_v35 }
0x101e   :  { %3859 = vrot.lane.b32.xlu0 %v8439_v18, %s7187_s24 }
0x101f   :  { %v3511_v43 = vpop.xlane.xlu0 %3510 }
0x1020   :  { %7071 = vrcp.f32 %v3511_v43 }
0x1023   :  { %v3514_v40 = vpop.xlane.xlu0 %3513 }
0x1024   :  { %7073 = vrcp.f32 %v3514_v40 }
0x1027   :  { %v3517_v50 = vpop.xlane.xlu0 %3516 }
0x1028   :  { %7075 = vrcp.f32 %v3517_v50 }
0x102a   :  { %v7072_v14 = vpop.eup %7071 }
0x102b   :  { %v3589_v21 = vmul.f32 %v7072_v14, %v8737_v5  ;;  %v3520_v63 = vpop.xlane.xlu0 %3519 }
0x102c   :  { %7077 = vrcp.f32 %v3520_v63 }
0x102d   :  { %6290 = vmatmul.mubr.msk.f32.vlgmr.msra.gmra.mrb[102].mxu0 %vm969_vm7, %v3589_v21 }
0x102e   :  { %v7074_v18 = vpop.eup %7073  ;;  %6683 = vmatpush3.bf16.msra.mxu0 %v6682_v23  ;;  %6292 = vmatprep.mubr.msk.f32.mxu0 %vm7181_vm0, %v7182_v6 }
0x102f   :  { %v3523_v44 = vpop.xlane.xlu0 %3522  ;;  %6684 = vmatprep.subr.bf16.mxu0 %v7180_v3  ;;  %v3590_v24 = vmul.f32 %v7074_v18, %v8741_v54 }
0x1030   :  { %7079 = vrcp.f32 %v3523_v44 }
0x1031   :  { %6293 = vmatmul.mubr.msk.f32.gmra.mrb[104].mxu0 %vm969_vm7, %v3590_v24 }
0x1032   :  { %v7076_v5 = vpop.eup %7075  ;;  %6686 = vmatpush3.bf16.msra.mxu0 %v6685_v26  ;;  %6295 = vmatprep.mubr.msk.f32.mxu0 %vm7181_vm0, %v7182_v6 }
0x1033   :  { %v3591_v2 = vmul.f32 %v7076_v5, %v8745_v12  ;;  %6337 = vmatprep.subr.mxu0 %v7182_v6  ;;  %v6888_v12 = vpop.permute.xlu1 %6887 }
0x1034   :  { %v6890_v33 = vunpack.i.h.bf16 %v6888_v12  ;;  %v6889_v39 = vunpack.i.l.bf16 %v6888_v12 }
0x1035   :  { %6296 = vmatmul.mubr.msk.f32.gmra.mrb[106].mxu0 %vm969_vm7, %v3591_v2 }
0x1036   :  { %v7078_v56 = vpop.eup %7077  ;;  %6298 = vmatprep.mubr.msk.f32.mxu0 %vm7181_vm0, %v7182_v6  ;;  %v6688_v1 = vpack.c.bf16 %v6890_v33, %v6889_v39 }
0x1037   :  { %v3592_v54 = vmul.f32 %v7078_v56, %v8749_v42 }
0x1039   :  { %6299 = vmatmul.mubr.msk.f32.gmra.mrb[108].mxu0 %vm969_vm7, %v3592_v54 }
0x103a   :  { %v7080_v19 = vpop.eup %7079  ;;  %6301 = vmatprep.mubr.msk.f32.mxu0 %vm7181_vm0, %v7182_v6 }
0x103b   :  { %v3593_v46 = vmul.f32 %v7080_v19, %v8753_v62  ;;  %v6691_v62 = vpack.c.bf16 %v6900_v16, %v6899_v31 }
0x103d   :  { %6302 = vmatmul.mubr.msk.f32.gmra.mrb[110].mxu0 %vm969_vm7, %v3593_v46 }
0x103e   :  { %6339 = vmatprep.mubr.msk.f32.mxu0 %vm7181_vm0, %v7182_v6 }
0x105a   :  { %v3526_v7 = vpop.xlane.xlu1 %3525 }
0x105b   :  { %7081 = vrcp.f32 %v3526_v7 }
0x1065   :  { %v7082_v58 = vpop.eup %7081 }
0x1066   :  { %v3594_v42 = vmul.f32 %v7082_v58, %v8758_v28 }
0x1068   :  { %6315 = vmatmul.mubr.msk.f32.vlgmr.msra.gmra.mrb[108].mxu1 %vm969_vm7, %v3594_v42 }
0x1069   :  { %6689 = vmatpush3.bf16.msra.mxu1 %v6688_v1  ;;  %6317 = vmatprep.mubr.msk.f32.mxu1 %vm7181_vm0, %v7182_v6 }
0x106a   :  { %6690 = vmatprep.subr.bf16.mxu1 %v7180_v3 }
0x106d   :  { %6692 = vmatpush3.bf16.msra.mxu1 %v6691_v62 }
0x106e   :  { %6362 = vmatprep.subr.mxu1 %v7182_v6 }
0x1070   :  { %v3541_v57 = vpop.xlane.xlu1 %3540 }
0x1074   :  { %v3529_v25 = vpop.xlane.xlu1 %3528 }
0x1075   :  { %7083 = vrcp.f32 %v3529_v25  ;;  %v5405_v25 = vld [vmem:[%s9268_s11 + $0x38] sm:$0xff] }
0x1078   :  { %v3532_v37 = vpop.xlane.xlu1 %3531  ;;  %v3544_v28 = vpop.xlane.xlu0 %3543 }
0x1079   :  { %7085 = vrcp.f32 %v3532_v37 }
0x107c   :  { %v3535_v13 = vpop.xlane.xlu1 %3534  ;;  %v3547_v11 = vpop.xlane.xlu0 %3546 }
0x107d   :  { %7087 = vrcp.f32 %v3535_v13 }
0x107f   :  { %v7084_v10 = vpop.eup %7083 }
0x1080   :  { %v3550_v59 = vpop.xlane.xlu1 %3549  ;;  %v3595_v60 = vmul.f32 %v7084_v10, %v8774_v53  ;;  %v3538_v52 = vpop.xlane.xlu0 %3537 }
0x1081   :  { %7089 = vrcp.f32 %v3538_v52 }
0x1082   :  { %6318 = vmatmul.mubr.msk.f32.gmra.mrb[110].mxu1 %vm969_vm7, %v3595_v60 }
0x1083   :  { %v7086_v9 = vpop.eup %7085  ;;  %6320 = vmatprep.mubr.msk.f32.mxu1 %vm7181_vm0, %v7182_v6 }
0x1084   :  { %v3568_v43 = vpop.xlane.xlu1 %3567  ;;  %v3596_v40 = vmul.f32 %v7086_v9, %v8781_v27 }
0x1085   :  { %v3553_v50 = vpop.xlane.xlu0 %3552 }
0x1086   :  { %6321 = vmatmul.mubr.msk.f32.gmra.mrb[112].mxu1 %vm969_vm7, %v3596_v40 }
0x1087   :  { %v7088_v8 = vpop.eup %7087  ;;  %6323 = vmatprep.mubr.msk.f32.mxu1 %vm7181_vm0, %v7182_v6 }
0x1088   :  { %v3981_v35 = vpop.permute.xlu1 %3980  ;;  %v3597_v53 = vmul.f32 %v7088_v8, %v8785_v48 }
0x1089   :  { %v3556_v14 = vpop.xlane.xlu0 %3555  ;;  %6363 = vmatpush3.msk.msra.mxu1 %vm1220_vm6, %v3981_v35 }
0x108a   :  { %7091 = vrcp.f32 %v3556_v14  ;;  %6324 = vmatmul.mubr.msk.f32.gmra.mrb[114].mxu1 %vm969_vm7, %v3597_v53  ;;  %6396 = vmatprep.subr.mxu1 %v7182_v6 }
0x108b   :  { %6326 = vmatprep.mubr.msk.f32.mxu1 %vm7181_vm0, %v7182_v6  ;;  %v7090_v27 = vpop.eup %7089  ;;  %7093 = vrcp.f32 %v3541_v57 }
0x108c   :  { %v3598_v63 = vmul.f32 %v7090_v27, %v8799_v17 }
0x108d   :  { %v3559_v21 = vpop.xlane.xlu0 %3558 }
0x108e   :  { %7095 = vrcp.f32 %v3559_v21  ;;  %6327 = vmatmul.mubr.msk.f32.gmra.mrb[116].mxu1 %vm969_vm7, %v3598_v63 }
0x108f   :  { %7097 = vrcp.f32 %v3544_v28  ;;  %6364 = vmatprep.mubr.msk.f32.mxu1 %vm7181_vm0, %v7182_v6 }
0x1091   :  { %v3562_v48 = vpop.xlane.xlu0 %3561 }
0x1092   :  { %7099 = vrcp.f32 %v3562_v48 }
0x1093   :  { %7101 = vrcp.f32 %v3547_v11 }
0x1094   :  { %v7092_v23 = vpop.eup %7091 }
0x1095   :  { %v3604_v38 = vmul.f32 %v7092_v23, %v8816_v45  ;;  %v3565_v22 = vpop.xlane.xlu0 %3564  ;;  %v7094_v18 = vpop.eup %7093  ;;  %v5402_v45 = vld [vmem:[%s9268_s11 + $0x20] sm:$0xff] }
0x1096   :  { %7103 = vrcp.f32 %v3565_v22  ;;  %v3599_v44 = vmul.f32 %v7094_v18, %v8769_v20 }
0x1097   :  { %7105 = vrcp.f32 %v3550_v59  ;;  %6365 = vmatmul.mubr.msk.f32.vlgmr.msra.gmra.mrb[118].mxu1 %vm969_vm7, %v3604_v38 }
0x1098   :  { %v7096_v17 = vpop.eup %7095  ;;  %7107 = vrcp.f32 %v3568_v43  ;;  %6367 = vmatprep.mubr.msk.f32.mxu1 %vm7181_vm0, %v7182_v6 }
0x1099   :  { %v3860_v24 = vpop.permute.xlu0 %3859  ;;  %v3605_v26 = vmul.f32 %v7096_v17, %v8820_v29  ;;  %v7098_v5 = vpop.eup %7097  ;;  %7109 = vrcp.f32 %v3553_v50 }
0x109a   :  { %6338 = vmatpush3.msk.msra.mxu0 %vm1220_vm6, %v3860_v24  ;;  %v3600_v20 = vmul.f32 %v7098_v5, %v8783_v36 }
0x109b   :  { %6340 = vmatmul.mubr.msk.f32.vlgmr.msra.gmra.mrb[112].mxu0 %vm969_vm7, %v3599_v44  ;;  %6368 = vmatmul.mubr.msk.f32.gmra.mrb[120].mxu1 %vm969_vm7, %v3605_v26 }
0x109c   :  { %v7100_v2 = vpop.eup %7099  ;;  %6342 = vmatprep.mubr.msk.f32.mxu0 %vm7181_vm0, %v7182_v6  ;;  %6370 = vmatprep.mubr.msk.f32.mxu1 %vm7181_vm0, %v7182_v6 }
0x109d   :  { %v3606_v29 = vmul.f32 %v7100_v2, %v8824_v30  ;;  %6379 = vmatprep.subr.mxu0 %v7182_v6  ;;  %v7102_v56 = vpop.eup %7101 }
0x109e   :  { %6380 = vmatpush3.msra.mxu0 %v5402_v45  ;;  %v3601_v36 = vmul.f32 %v7102_v56, %v8792_v49 }
0x109f   :  { %6343 = vmatmul.mubr.msk.f32.gmra.mrb[114].mxu0 %vm969_vm7, %v3600_v20  ;;  %6371 = vmatmul.mubr.msk.f32.gmra.mrb[122].mxu1 %vm969_vm7, %v3606_v29 }
0x10a0   :  { %v7104_v54 = vpop.eup %7103  ;;  %6345 = vmatprep.mubr.msk.f32.mxu0 %vm7181_vm0, %v7182_v6  ;;  %6373 = vmatprep.mubr.msk.f32.mxu1 %vm7181_vm0, %v7182_v6 }
0x10a1   :  { %v7106_v19 = vpop.eup %7105  ;;  %v3607_v30 = vmul.f32 %v7104_v54, %v8828_v55  ;;  %6413 = vmatprep.subr.mxu0 %v7182_v6 }
0x10a2   :  { %v7108_v46 = vpop.eup %7107  ;;  %v3602_v12 = vmul.f32 %v7106_v19, %v8801_v4  ;;  %v5403_v4 = vld [vmem:[%s9268_s11 + $0x28] sm:$0xff] }
0x10a3   :  { %6346 = vmatmul.mubr.msk.f32.gmra.mrb[116].mxu0 %vm969_vm7, %v3601_v36  ;;  %6374 = vmatmul.mubr.msk.f32.gmra.mrb[124].mxu1 %vm969_vm7, %v3607_v30  ;;  %v3608_v7 = vmul.f32 %v7108_v46, %v8808_v61  ;;  %v7110_v49 = vpop.eup %7109  ;;  %v5404_v61 = vld [vmem:[%s9268_s11 + $0x30] sm:$0xff] }
0x10a4   :  { %6348 = vmatprep.mubr.msk.f32.mxu0 %vm7181_vm0, %v7182_v6  ;;  %6376 = vmatprep.mubr.msk.f32.mxu1 %vm7181_vm0, %v7182_v6  ;;  %v3603_v55 = vmul.f32 %v7110_v49, %v8810_v15 }
0x10a5   :  { %6397 = vmatpush3.msra.mxu1 %v5403_v4 }
0x10a6   :  { %6430 = vmatprep.subr.mxu1 %v7182_v6 }
0x10a7   :  { %6349 = vmatmul.mubr.msk.f32.gmra.mrb[118].mxu0 %vm969_vm7, %v3602_v12  ;;  %6377 = vmatmul.mubr.msk.f32.gmra.mrb[126].mxu1 %vm969_vm7, %v3608_v7 }
0x10a8   :  { %6351 = vmatprep.mubr.msk.f32.mxu0 %vm7181_vm0, %v7182_v6  ;;  %6398 = vmatprep.mubr.msk.f32.mxu1 %vm7181_vm0, %v7182_v6 }
0x10ab   :  { %6352 = vmatmul.mubr.msk.f32.gmra.mrb[120].mxu0 %vm969_vm7, %v3603_v55 }
0x10ac   :  { %6381 = vmatprep.mubr.msk.f32.mxu0 %vm7181_vm0, %v7182_v6 }
0x1100   :  { %v3706_v33 = vpop.f32.mrb[102].mxu0 }
0x1101   :  { %v6291_v39 = vpop.f32.mrb[103].mxu0  ;;  %6382 = vmatmul.mubr.msk.f32.vlgmr.msra.gmra.mrb[122].mxu0 %vm478_vm4, %v3706_v33 }
0x1102   :  { %6384 = vmatprep.mubr.msk.f32.mxu0 %vm7181_vm0, %v7182_v6  ;;  %6414 = vmatpush3.msra.mxu0 %v5404_v61 }
0x1103   :  { %6693 = vmatprep.subr.bf16.mxu0 %v7180_v3 }
0x1104   :  { %v3711_v15 = vpop.f32.mrb[104].mxu0 }
0x1105   :  { %v6294_v58 = vpop.f32.mrb[105].mxu0  ;;  %6385 = vmatmul.mubr.msk.f32.gmra.mrb[124].mxu0 %vm478_vm4, %v3711_v15 }
0x1106   :  { %6387 = vmatprep.mubr.msk.f32.mxu0 %vm7181_vm0, %v7182_v6 }
0x1108   :  { %v3716_v42 = vpop.f32.mrb[106].mxu0 }
0x1109   :  { %v6297_v1 = vpop.f32.mrb[107].mxu0  ;;  %6388 = vmatmul.mubr.msk.f32.gmra.mrb[126].mxu0 %vm478_vm4, %v3716_v42 }
0x110a   :  { %6390 = vmatprep.mubr.msk.f32.mxu0 %vm7181_vm0, %v7182_v6 }
0x110c   :  { %v3721_v16 = vpop.f32.mrb[108].mxu0 }
0x110d   :  { %v6300_v31 = vpop.f32.mrb[109].mxu0  ;;  %6391 = vmatmul.mubr.msk.f32.gmra.mrb[128].mxu0 %vm478_vm4, %v3721_v16 }
0x110e   :  { %6393 = vmatprep.mubr.msk.f32.mxu0 %vm7181_vm0, %v7182_v6 }
0x1110   :  { %v3726_v62 = vpop.f32.mrb[110].mxu0 }
0x1111   :  { %v6303_v57 = vpop.f32.mrb[111].mxu0  ;;  %6394 = vmatmul.mubr.msk.f32.gmra.mrb[130].mxu0 %vm478_vm4, %v3726_v62 }
0x1112   :  { %6415 = vmatprep.mubr.msk.f32.mxu0 %vm7181_vm0, %v7182_v6 }
0x113b   :  { %v3827_v37 = vpop.f32.mrb[108].mxu1 }
0x113c   :  { %v6316_v28 = vpop.f32.mrb[109].mxu1  ;;  %6399 = vmatmul.mubr.msk.f32.vlgmr.msra.gmra.mrb[128].mxu1 %vm478_vm4, %v3827_v37 }
0x113d   :  { %6401 = vmatprep.mubr.msk.f32.mxu1 %vm7181_vm0, %v7182_v6  ;;  %6431 = vmatpush3.msra.mxu1 %v5405_v25 }
0x113e   :  { %6699 = vmatprep.subr.bf16.mxu1 %v7180_v3 }
0x1155   :  { %v3832_v13 = vpop.f32.mrb[110].mxu1 }
0x1156   :  { %v6319_v11 = vpop.f32.mrb[111].mxu1  ;;  %6402 = vmatmul.mubr.msk.f32.gmra.mrb[130].mxu1 %vm478_vm4, %v3832_v13 }
0x1157   :  { %6404 = vmatprep.mubr.msk.f32.mxu1 %vm7181_vm0, %v7182_v6 }
0x1159   :  { %v3837_v10 = vpop.f32.mrb[112].mxu1 }
0x115a   :  { %v6322_v59 = vpop.f32.mrb[113].mxu1  ;;  %6405 = vmatmul.mubr.msk.f32.gmra.mrb[132].mxu1 %vm478_vm4, %v3837_v10 }
0x115b   :  { %6407 = vmatprep.mubr.msk.f32.mxu1 %vm7181_vm0, %v7182_v6 }
0x115d   :  { %v3842_v60 = vpop.f32.mrb[114].mxu1 }
0x115e   :  { %v6325_v52 = vpop.f32.mrb[115].mxu1  ;;  %6408 = vmatmul.mubr.msk.f32.gmra.mrb[134].mxu1 %vm478_vm4, %v3842_v60 }
0x115f   :  { %6410 = vmatprep.mubr.msk.f32.mxu1 %vm7181_vm0, %v7182_v6 }
0x1161   :  { %v3847_v9 = vpop.f32.mrb[116].mxu1 }
0x1162   :  { %v6328_v43 = vpop.f32.mrb[117].mxu1  ;;  %6411 = vmatmul.mubr.msk.f32.gmra.mrb[136].mxu1 %vm478_vm4, %v3847_v9 }
0x1163   :  { %6432 = vmatprep.mubr.msk.f32.mxu1 %vm7181_vm0, %v7182_v6 }
0x116a   :  { %v4069_v40 = vpop.f32.mrb[118].mxu1 }
0x116b   :  { %v6366_v50 = vpop.f32.mrb[119].mxu1  ;;  %6433 = vmatmul.mubr.msk.f32.vlgmr.msra.gmra.mrb[138].mxu1 %vm478_vm4, %v4069_v40 }
0x116c   :  { %6435 = vmatprep.mubr.msk.f32.mxu1 %vm7181_vm0, %v7182_v6 }
0x116e   :  { %v3948_v8 = vpop.f32.mrb[112].mxu0  ;;  %v4074_v35 = vpop.f32.mrb[120].mxu1 }
0x116f   :  { %v6341_v53 = vpop.f32.mrb[113].mxu0  ;;  %v6369_v14 = vpop.f32.mrb[121].mxu1  ;;  %6416 = vmatmul.mubr.msk.f32.vlgmr.msra.gmra.mrb[132].mxu0 %vm478_vm4, %v3948_v8  ;;  %6436 = vmatmul.mubr.msk.f32.gmra.mrb[140].mxu1 %vm478_vm4, %v4074_v35 }
0x1170   :  { %6418 = vmatprep.mubr.msk.f32.mxu0 %vm7181_vm0, %v7182_v6  ;;  %6438 = vmatprep.mubr.msk.f32.mxu1 %vm7181_vm0, %v7182_v6 }
0x1172   :  { %v3953_v27 = vpop.f32.mrb[114].mxu0  ;;  %v4079_v21 = vpop.f32.mrb[122].mxu1 }
0x1173   :  { %v6344_v63 = vpop.f32.mrb[115].mxu0  ;;  %v6372_v48 = vpop.f32.mrb[123].mxu1  ;;  %6419 = vmatmul.mubr.msk.f32.gmra.mrb[134].mxu0 %vm478_vm4, %v3953_v27  ;;  %6439 = vmatmul.mubr.msk.f32.gmra.mrb[142].mxu1 %vm478_vm4, %v4079_v21 }
0x1174   :  { %6421 = vmatprep.mubr.msk.f32.mxu0 %vm7181_vm0, %v7182_v6  ;;  %6441 = vmatprep.mubr.msk.f32.mxu1 %vm7181_vm0, %v7182_v6 }
0x1176   :  { %v3958_v23 = vpop.f32.mrb[116].mxu0  ;;  %v4084_v38 = vpop.f32.mrb[124].mxu1 }
0x1177   :  { %v6347_v22 = vpop.f32.mrb[117].mxu0  ;;  %v6375_v18 = vpop.f32.mrb[125].mxu1  ;;  %6422 = vmatmul.mubr.msk.f32.gmra.mrb[136].mxu0 %vm478_vm4, %v3958_v23  ;;  %6442 = vmatmul.mubr.msk.f32.gmra.mrb[144].mxu1 %vm478_vm4, %v4084_v38 }
0x1178   :  { %6424 = vmatprep.mubr.msk.f32.mxu0 %vm7181_vm0, %v7182_v6  ;;  %6444 = vmatprep.mubr.msk.f32.mxu1 %vm7181_vm0, %v7182_v6 }
0x117a   :  { %v3963_v17 = vpop.f32.mrb[118].mxu0  ;;  %v4089_v44 = vpop.f32.mrb[126].mxu1 }
0x117b   :  { %v6350_v24 = vpop.f32.mrb[119].mxu0  ;;  %v6378_v26 = vpop.f32.mrb[127].mxu1  ;;  %6425 = vmatmul.mubr.msk.f32.gmra.mrb[138].mxu0 %vm478_vm4, %v3963_v17  ;;  %6445 = vmatmul.mubr.msk.f32.gmra.mrb[146].mxu1 %vm478_vm4, %v4089_v44  ;;  %v5427_v17 = vld [vmem:[%s9269_s12 + $0x1] ss:$0 sm:$0xff] }
0x117c   :  { %6427 = vmatprep.mubr.msk.f32.mxu0 %vm7181_vm0, %v7182_v6  ;;  %6502 = vmatprep.mubr.msk.f32.mxu1 %vm7181_vm0, %v7182_v6 }
0x117e   :  { %v3968_v5 = vpop.f32.mrb[120].mxu0 }
0x117f   :  { %v6353_v45 = vpop.f32.mrb[121].mxu0  ;;  %6428 = vmatmul.mubr.msk.f32.gmra.mrb[140].mxu0 %vm478_vm4, %v3968_v5 }
0x1180   :  { %6455 = vmatprep.mubr.msk.f32.mxu0 %vm7181_vm0, %v7182_v6 }
0x11d4   :  { %v4179_v2 = vpop.f32.mrb[122].mxu0 }
0x11d5   :  { %v6383_v20 = vpop.f32.mrb[123].mxu0  ;;  %v4518_v49 = vsel %vm192_vm2, %v4179_v2, 0.0 }
0x11d8   :  { %v4184_v29 = vpop.f32.mrb[124].mxu0 }
0x11d9   :  { %v6386_v56 = vpop.f32.mrb[125].mxu0  ;;  %v4525_v39 = vsel %vm192_vm2, %v4184_v29, 0.0 }
0x11dc   :  { %v4189_v54 = vpop.f32.mrb[126].mxu0 }
0x11dd   :  { %v6389_v19 = vpop.f32.mrb[127].mxu0  ;;  %v4532_v16 = vsel %vm192_vm2, %v4189_v54, 0.0 }
0x11e0   :  { %v4194_v36 = vpop.f32.mrb[128].mxu0 }
0x11e1   :  { %v6392_v30 = vpop.f32.mrb[129].mxu0  ;;  %v4539_v37 = vsel %vm192_vm2, %v4194_v36, 0.0 }
0x11e4   :  { %v4199_v46 = vpop.f32.mrb[130].mxu0 }
0x11e5   :  { %v6395_v12 = vpop.f32.mrb[131].mxu0  ;;  %v4546_v59 = vsel %vm205_vm3, %v4199_v46, 0.0 }
0x120f   :  { %v4284_v7 = vpop.f32.mrb[128].mxu1 }
0x1210   :  { %v4519_v55 = vsel %vm192_vm2, %v4284_v7, 0.0  ;;  %v6400_v4 = vpop.f32.mrb[129].mxu1 }
0x1211   :  { %v4520_v61 = vadd.f32 %v4519_v55, %v4518_v49 }
0x1229   :  { %v4289_v33 = vpop.f32.mrb[130].mxu1 }
0x122a   :  { %v4526_v15 = vsel %vm192_vm2, %v4289_v33, 0.0  ;;  %v6403_v58 = vpop.f32.mrb[131].mxu1 }
0x122b   :  { %v4527_v42 = vadd.f32 %v4526_v15, %v4525_v39 }
0x122d   :  { %v4294_v1 = vpop.f32.mrb[132].mxu1 }
0x122e   :  { %v4533_v31 = vsel %vm192_vm2, %v4294_v1, 0.0  ;;  %v6406_v62 = vpop.f32.mrb[133].mxu1 }
0x122f   :  { %v4534_v57 = vadd.f32 %v4533_v31, %v4532_v16 }
0x1231   :  { %v4299_v25 = vpop.f32.mrb[134].mxu1 }
0x1232   :  { %v4540_v28 = vsel %vm192_vm2, %v4299_v25, 0.0  ;;  %v6409_v13 = vpop.f32.mrb[135].mxu1 }
0x1233   :  { %v4541_v11 = vadd.f32 %v4540_v28, %v4539_v37 }
0x1235   :  { %v4304_v10 = vpop.f32.mrb[136].mxu1 }
0x1236   :  { %v4547_v60 = vsel %vm205_vm3, %v4304_v10, 0.0  ;;  %v6412_v52 = vpop.f32.mrb[137].mxu1 }
0x1237   :  { %v4548_v9 = vadd.f32 %v4547_v60, %v4546_v59 }
0x123e   :  { %v4494_v43 = vpop.f32.mrb[138].mxu1 }
0x123f   :  { %v6434_v40 = vpop.f32.mrb[139].mxu1  ;;  %v4523_v21 = vsel %vm192_vm2, %v4494_v43, 0.0 }
0x1242   :  { %v4389_v50 = vpop.f32.mrb[132].mxu0  ;;  %v4499_v8 = vpop.f32.mrb[140].mxu1 }
0x1243   :  { %v4521_v35 = vsel %vm192_vm2, %v4389_v50, 0.0  ;;  %v6417_v53 = vpop.f32.mrb[133].mxu0  ;;  %v6437_v14 = vpop.f32.mrb[141].mxu1  ;;  %v4530_v26 = vsel %vm192_vm2, %v4499_v8, 0.0 }
0x1244   :  { %v4522_v27 = vadd.f32 %v4521_v35, %v4520_v61 }
0x1246   :  { %v4524_v63 = vadd.f32 %v4523_v21, %v4522_v27  ;;  %v4394_v48 = vpop.f32.mrb[134].mxu0  ;;  %v4504_v23 = vpop.f32.mrb[142].mxu1 }
0x1247   :  { %v4528_v38 = vsel %vm192_vm2, %v4394_v48, 0.0  ;;  %v6420_v22 = vpop.f32.mrb[135].mxu0  ;;  %v6440_v18 = vpop.f32.mrb[143].mxu1 }
0x1248   :  { %v4553_v44 = vadd.f32 %v4524_v63, %v8289_v32  ;;  %v4529_v24 = vadd.f32 %v4528_v38, %v4527_v42  ;;  %v4537_v32 = vsel %vm192_vm2, %v4504_v23, 0.0 }
0x124a   :  { %v4531_v5 = vadd.f32 %v4530_v26, %v4529_v24  ;;  %v4399_v45 = vpop.f32.mrb[136].mxu0  ;;  %v4509_v2 = vpop.f32.mrb[144].mxu1  ;;  %v9020_v20 = vadd.f32 %v5427_v17, %v4553_v44 }
0x124b   :  { %v4535_v29 = vsel %vm192_vm2, %v4399_v45, 0.0  ;;  %v6423_v56 = vpop.f32.mrb[137].mxu0  ;;  %v6443_v54 = vpop.f32.mrb[145].mxu1  ;;  %v4544_v15 = vsel %vm192_vm2, %v4509_v2, 0.0  ;;  %v5432_v45 = vld [vmem:[%s9270_s13 + $0x20] sm:$0xff]  ;;  %v5433_v2 = vld [vmem:[%s9270_s13 + $0x28] sm:$0xff] }
0x124c   :  { %v4554_v19 = vadd.f32 %v4531_v5, %v8294_v51  ;;  %v4536_v36 = vadd.f32 %v4535_v29, %v4534_v57  ;;  %v4575_v30 = vsel %vm192_vm2, %v9020_v20, 0.0  ;;  %v6694_v29 = vpack.c.bf16 %v5433_v2, %v5432_v45  ;;  %v5434_v56 = vld [vmem:[%s9270_s13 + $0x30] sm:$0xff]  ;;  %v5435_v54 = vld [vmem:[%s9270_s13 + $0x38] sm:$0xff]  ;;  %v5452_v45 = vld [vmem:[%s9272_s15 + $0xc8] sm:$0xff] }
0x124d   :  { %4576 = vadd.xlane.f32.xlu0 %v4575_v30 }
0x124e   :  { %v4538_v46 = vadd.f32 %v4537_v32, %v4536_v36  ;;  %v4404_v12 = vpop.f32.mrb[138].mxu0  ;;  %v4514_v7 = vpop.f32.mrb[146].mxu1  ;;  %v9027_v49 = vadd.f32 %v5427_v17, %v4554_v19  ;;  %6695 = vmatpush3.bf16.msra.mxu0 %v6694_v29  ;;  %v6697_v19 = vpack.c.bf16 %v5435_v54, %v5434_v56  ;;  %v5453_v29 = vld [vmem:[%s9272_s15 + $0xd0] sm:$0xff]  ;;  %v5454_v56 = vld [vmem:[%s9272_s15 + $0xd8] sm:$0xff] }
0x124f   :  { %v4542_v55 = vsel %vm192_vm2, %v4404_v12, 0.0  ;;  %v6426_v4 = vpop.f32.mrb[139].mxu0  ;;  %v6446_v61 = vpop.f32.mrb[147].mxu1  ;;  %v4551_v25 = vsel %vm205_vm3, %v4514_v7, 0.0  ;;  %6696 = vmatprep.subr.bf16.mxu0 %v7180_v3  ;;  %v6715_v54 = vpack.c.bf16 %v5454_v56, %v5453_v29 }
0x1250   :  { %v4555_v33 = vadd.f32 %v4538_v46, %v8299_v34  ;;  %v4543_v39 = vadd.f32 %v4542_v55, %v4541_v11  ;;  %v4578_v51 = vsel %vm192_vm2, %v9027_v49, 0.0 }
0x1251   :  { %4579 = vadd.xlane.f32.xlu1 %v4578_v51 }
0x1252   :  { %v4545_v58 = vadd.f32 %v4544_v15, %v4543_v39  ;;  %v4409_v42 = vpop.f32.mrb[140].mxu0  ;;  %v9034_v1 = vadd.f32 %v5427_v17, %v4555_v33  ;;  %6698 = vmatpush3.bf16.msra.mxu0 %v6697_v19  ;;  %v5430_v15 = vld [vmem:[%s9264_s7 + $0x1] ss:$0 sm:$0xff] }
0x1253   :  { %v4549_v16 = vsel %vm205_vm3, %v4409_v42, 0.0  ;;  %v6429_v31 = vpop.f32.mrb[141].mxu0  ;;  %6723 = vmatprep.subr.bf16.mxu0 %v7180_v3  ;;  %v5455_v19 = vld [vmem:[%s9272_s15 + $0xe0] sm:$0xff] }
0x1254   :  { %v4556_v62 = vadd.f32 %v4545_v58, %v8304_v0  ;;  %v4550_v57 = vadd.f32 %v4549_v16, %v4548_v9  ;;  %v4581_v34 = vsel %vm192_vm2, %v9034_v1, 0.0  ;;  %v5431_v31 = vld [vmem:[%s9265_s8 + $0x1] ss:$0 sm:$0xff] }
0x1255   :  { %4582 = vadd.xlane.f32.xlu0 %v4581_v34 }
0x1256   :  { %v4552_v37 = vadd.f32 %v4551_v25, %v4550_v57  ;;  %v9041_v28 = vadd.f32 %v5427_v17, %v4556_v62 }
0x1258   :  { %v4557_v13 = vadd.f32 %v4552_v37, %v8309_v47  ;;  %v4584_v11 = vsel %vm192_vm2, %v9041_v28, 0.0 }
0x1259   :  { %4585 = vadd.xlane.f32.xlu0 %v4584_v11 }
0x125a   :  { %v9046_v10 = vadd.f32 %v5427_v17, %v4557_v13 }
0x125c   :  { %v4587_v0 = vsel %vm205_vm3, %v9046_v10, 0.0 }
0x125d   :  { %4588 = vadd.xlane.f32.xlu0 %v4587_v0 }
0x12da   :  { %v4577_v59 = vpop.xlane.xlu0 %4576 }
0x12db   :  { %v4590_v60 = vmul.f32 0.03125, %v4577_v59 }
0x12dd   :  { %v4595_v52 = vsub.f32 %v9020_v20, %v4590_v60 }
0x12de   :  { %v4580_v9 = vpop.xlane.xlu1 %4579 }
0x12df   :  { %v4591_v43 = vmul.f32 0.03125, %v4580_v9  ;;  %v4600_v40 = vmul.f32 %v4595_v52, %v4595_v52 }
0x12e1   :  { %v4596_v50 = vsub.f32 %v9027_v49, %v4591_v43  ;;  %v4605_v47 = vsel %vm192_vm2, %v4600_v40, 0.0 }
0x12e2   :  { %v4583_v8 = vpop.xlane.xlu0 %4582  ;;  %4606 = vadd.xlane.f32.xlu0 %v4605_v47 }
0x12e3   :  { %v4592_v35 = vmul.f32 0.03125, %v4583_v8  ;;  %v4601_v53 = vmul.f32 %v4596_v50, %v4596_v50 }
0x12e5   :  { %v4597_v14 = vsub.f32 %v9034_v1, %v4592_v35  ;;  %v4608_v27 = vsel %vm192_vm2, %v4601_v53, 0.0 }
0x12e6   :  { %v4586_v21 = vpop.xlane.xlu0 %4585  ;;  %4609 = vadd.xlane.f32.xlu0 %v4608_v27  ;;  %v5443_v27 = vld [vmem:[%s9272_s15 + $0x80] sm:$0xff] }
0x12e7   :  { %v4593_v63 = vmul.f32 0.03125, %v4586_v21  ;;  %v4602_v48 = vmul.f32 %v4597_v14, %v4597_v14  ;;  %v5444_v21 = vld [vmem:[%s9272_s15 + $0x88] sm:$0xff] }
0x12e9   :  { %v4598_v23 = vsub.f32 %v9041_v28, %v4593_v63  ;;  %v4611_v38 = vsel %vm192_vm2, %v4602_v48, 0.0  ;;  %v6700_v63 = vpack.c.bf16 %v5444_v21, %v5443_v27  ;;  %v5445_v48 = vld [vmem:[%s9272_s15 + $0x90] sm:$0xff] }
0x12ea   :  { %4612 = vadd.xlane.f32.xlu0 %v4611_v38  ;;  %v4589_v22 = vpop.xlane.xlu0 %4588 }
0x12eb   :  { %v4594_v18 = vmul.f32 0.03125, %v4589_v22  ;;  %v4603_v17 = vmul.f32 %v4598_v23, %v4598_v23  ;;  %6701 = vmatpush3.bf16.msra.mxu1 %v6700_v63  ;;  %v5447_v22 = vld [vmem:[%s9272_s15 + $0xa0] sm:$0xff] }
0x12ec   :  { %6702 = vmatprep.subr.bf16.mxu1 %v7180_v3 }
0x12ed   :  { %v4599_v44 = vsub.f32 %v9046_v10, %v4594_v18  ;;  %v4614_v24 = vsel %vm192_vm2, %v4603_v17, 0.0  ;;  %v5448_v18 = vld [vmem:[%s9272_s15 + $0xa8] sm:$0xff] }
0x12ee   :  { %4615 = vadd.xlane.f32.xlu1 %v4614_v24  ;;  %v6706_v17 = vpack.c.bf16 %v5448_v18, %v5447_v22  ;;  %v5450_v24 = vld [vmem:[%s9272_s15 + $0xb8] sm:$0xff] }
0x12ef   :  { %v4604_v26 = vmul.f32 %v4599_v44, %v4599_v44 }
0x12f1   :  { %v4617_v5 = vsel %vm205_vm3, %v4604_v26, 0.0 }
0x12f2   :  { %4618 = vadd.xlane.f32.xlu0 %v4617_v5  ;;  %v5451_v5 = vld [vmem:[%s9272_s15 + $0xc0] sm:$0xff] }
0x12f3   :  { %v6712_v2 = vpack.c.bf16 %v5452_v45, %v5451_v5 }
0x136f   :  { %v4607_v36 = vpop.xlane.xlu0 %4606 }
0x1370   :  { %v4620_v30 = vmul.f32 0.03125, %v4607_v36  ;;  %v5456_v36 = vld [vmem:[%s9272_s15 + $0xe8] sm:$0xff] }
0x1372   :  { %v4625_v32 = vadd.f32 1e-05, %v4620_v30  ;;  %v6718_v30 = vpack.c.bf16 %v5456_v36, %v5455_v19 }
0x1373   :  { %v4610_v46 = vpop.xlane.xlu0 %4609 }
0x1374   :  { %7111 = vrsqrt.f32 %v4625_v32  ;;  %v4621_v12 = vmul.f32 0.03125, %v4610_v46  ;;  %v5457_v32 = vld [vmem:[%s9272_s15 + $0xf0] sm:$0xff]  ;;  %v5458_v46 = vld [vmem:[%s9272_s15 + $0xf8] sm:$0xff] }
0x1376   :  { %v4626_v7 = vadd.f32 1e-05, %v4621_v12  ;;  %v6721_v12 = vpack.c.bf16 %v5458_v46, %v5457_v32 }
0x1377   :  { %v4613_v55 = vpop.xlane.xlu0 %4612 }
0x1378   :  { %7113 = vrsqrt.f32 %v4626_v7  ;;  %v4622_v4 = vmul.f32 0.03125, %v4613_v55  ;;  %v5437_v7 = vld [vmem:[%s9271_s14 + $0x1] ss:$0 sm:$0xff] }
0x137a   :  { %v4627_v61 = vadd.f32 1e-05, %v4622_v4 }
0x137b   :  { %v4616_v33 = vpop.xlane.xlu1 %4615 }
0x137c   :  { %7115 = vrsqrt.f32 %v4627_v61  ;;  %v4623_v39 = vmul.f32 0.03125, %v4616_v33 }
0x137e   :  { %v7112_v51 = vpop.eup %7111  ;;  %v4628_v58 = vadd.f32 1e-05, %v4623_v39 }
0x137f   :  { %v4635_v42 = vmul.f32 %v7112_v51, %v4595_v52  ;;  %v4619_v16 = vpop.xlane.xlu0 %4618 }
0x1380   :  { %7117 = vrsqrt.f32 %v4628_v58  ;;  %v4624_v62 = vmul.f32 0.03125, %v4619_v16 }
0x1381   :  { %v4646_v57 = vmul.f32 %v5430_v15, %v4635_v42 }
0x1382   :  { %v7114_v34 = vpop.eup %7113  ;;  %v4629_v25 = vadd.f32 1e-05, %v4624_v62 }
0x1383   :  { %v4657_v37 = vadd.f32 %v5431_v31, %v4646_v57  ;;  %v4636_v13 = vmul.f32 %v7114_v34, %v4596_v50 }
0x1384   :  { %7119 = vrsqrt.f32 %v4629_v25 }
0x1385   :  { %6456 = vmatmul.mubr.msk.f32.vlgmr.msra.gmra.mrb[142].mxu0 %vm192_vm2, %v4657_v37  ;;  %v4647_v11 = vmul.f32 %v5430_v15, %v4636_v13 }
0x1386   :  { %v7116_v0 = vpop.eup %7115  ;;  %6458 = vmatprep.mubr.msk.f32.mxu0 %vm7181_vm0, %v7182_v6 }
0x1387   :  { %v4658_v59 = vadd.f32 %v5431_v31, %v4647_v11  ;;  %v4637_v60 = vmul.f32 %v7116_v0, %v4597_v14 }
0x1389   :  { %6459 = vmatmul.mubr.msk.f32.gmra.mrb[144].mxu0 %vm192_vm2, %v4658_v59  ;;  %v4648_v52 = vmul.f32 %v5430_v15, %v4637_v60 }
0x138a   :  { %v7118_v9 = vpop.eup %7117  ;;  %6461 = vmatprep.mubr.msk.f32.mxu0 %vm7181_vm0, %v7182_v6 }
0x138b   :  { %v4659_v43 = vadd.f32 %v5431_v31, %v4648_v52  ;;  %v4638_v40 = vmul.f32 %v7118_v9, %v4598_v23  ;;  %v5446_v23 = vld [vmem:[%s9272_s15 + $0x98] sm:$0xff] }
0x138c   :  { %v6703_v38 = vpack.c.bf16 %v5446_v23, %v5445_v48 }
0x138d   :  { %6462 = vmatmul.mubr.msk.f32.gmra.mrb[146].mxu0 %vm192_vm2, %v4659_v43  ;;  %v4649_v50 = vmul.f32 %v5430_v15, %v4638_v40 }
0x138e   :  { %v7120_v47 = vpop.eup %7119  ;;  %6464 = vmatprep.mubr.msk.f32.mxu0 %vm7181_vm0, %v7182_v6  ;;  %6704 = vmatpush3.bf16.msra.mxu1 %v6703_v38 }
0x138f   :  { %v4660_v8 = vadd.f32 %v5431_v31, %v4649_v50  ;;  %v4639_v35 = vmul.f32 %v7120_v47, %v4599_v44  ;;  %6705 = vmatprep.subr.bf16.mxu1 %v7180_v3  ;;  %v5449_v44 = vld [vmem:[%s9272_s15 + $0xb0] sm:$0xff] }
0x1390   :  { %v6709_v26 = vpack.c.bf16 %v5450_v24, %v5449_v44 }
0x1391   :  { %6465 = vmatmul.mubr.msk.f32.gmra.mrb[148].mxu0 %vm192_vm2, %v4660_v8  ;;  %v4650_v53 = vmul.f32 %v5430_v15, %v4639_v35 }
0x1392   :  { %6467 = vmatprep.mubr.msk.f32.mxu0 %vm7181_vm0, %v7182_v6  ;;  %6707 = vmatpush3.bf16.msra.mxu1 %v6706_v17 }
0x1393   :  { %v4661_v14 = vadd.f32 %v5431_v31, %v4650_v53  ;;  %6708 = vmatprep.subr.bf16.mxu1 %v7180_v3 }
0x1395   :  { %6468 = vmatmul.mubr.msk.f32.gmra.mrb[150].mxu0 %vm192_vm2, %v4661_v14 }
0x1396   :  { %6527 = vmatprep.mubr.msk.f32.mxu0 %vm7181_vm0, %v7182_v6  ;;  %6710 = vmatpush3.bf16.msra.mxu1 %v6709_v26 }
0x1397   :  { %6711 = vmatprep.subr.bf16.mxu1 %v7180_v3 }
0x139a   :  { %6713 = vmatpush3.bf16.msra.mxu1 %v6712_v2 }
0x139b   :  { %6714 = vmatprep.subr.bf16.mxu1 %v7180_v3 }
0x139e   :  { %6716 = vmatpush3.bf16.msra.mxu1 %v6715_v54 }
0x139f   :  { %6717 = vmatprep.subr.bf16.mxu1 %v7180_v3 }
0x13a2   :  { %6719 = vmatpush3.bf16.msra.mxu1 %v6718_v30 }
0x13a3   :  { %6720 = vmatprep.subr.bf16.mxu1 %v7180_v3 }
0x13a6   :  { %6722 = vmatpush3.bf16.msra.mxu1 %v6721_v12 }
0x1458   :  { %v4756_v55 = vpop.f32.mrb[142].mxu0 }
0x1459   :  { %v9153_v4 = vadd.f32 %v5437_v7, %v4756_v55  ;;  %v6457_v61 = vpop.f32.mrb[143].mxu0 }
0x145b   :  { %v9156_v33 = vmul.f32 0.70710677, %v9153_v4 }
0x145c   :  { %v4761_v39 = vpop.f32.mrb[144].mxu0 }
0x145d   :  { %v4800_v51 = vand.u32 2147483647, %v9156_v33  ;;  %v9159_v15 = vadd.f32 %v5437_v7, %v4761_v39  ;;  %v6460_v58 = vpop.f32.mrb[145].mxu0  ;;  %vm4790_vm14 = vcmp.lt.f32.partialorder %v9156_v33, 0.0 }
0x145f   :  { %v4805_v42 = vmul.f32 0.3275911, %v4800_v51  ;;  %v9162_v16 = vmul.f32 0.70710677, %v9159_v15  ;;  %v4870_v50 = vsub.f32 0.0, %v4800_v51 }
0x1460   :  { %v4766_v31 = vpop.f32.mrb[146].mxu0 }
0x1461   :  { %v4810_v62 = vadd.f32 1.0, %v4805_v42  ;;  %v4801_v57 = vand.u32 2147483647, %v9162_v16  ;;  %v6463_v34 = vpop.f32.mrb[147].mxu0  ;;  %v9165_v25 = vadd.f32 %v5437_v7, %v4766_v31  ;;  %v4875_v63 = vmul.f32 %v4870_v50, %v4800_v51 }
0x1462   :  { %vm4791_vm15 = vcmp.lt.f32.partialorder %v9162_v16, 0.0 }
0x1463   :  { %7121 = vrcp.f32 %v4810_v62  ;;  %v4806_v37 = vmul.f32 0.3275911, %v4801_v57  ;;  %v9168_v13 = vmul.f32 0.70710677, %v9165_v25  ;;  %v4871_v48 = vsub.f32 0.0, %v4801_v57 }
0x1464   :  { %v4771_v11 = vpop.f32.mrb[148].mxu0  ;;  %v4880_v24 = vmul.f32 1.442695, %v4875_v63 }
0x1465   :  { %v4811_v0 = vadd.f32 1.0, %v4806_v37  ;;  %v9170_v59 = vadd.f32 %v5437_v7, %v4771_v11  ;;  %v6466_v60 = vpop.f32.mrb[149].mxu0  ;;  %v4802_v52 = vand.u32 2147483647, %v9168_v13  ;;  %v4876_v26 = vmul.f32 %v4871_v48, %v4801_v57 }
0x1466   :  { %vm4792_vm1 = vcmp.lt.f32.partialorder %v9168_v13, 0.0 }
0x1467   :  { %7123 = vrcp.f32 %v4811_v0  ;;  %v4807_v9 = vmul.f32 0.3275911, %v4802_v52  ;;  %v9174_v43 = vmul.f32 0.70710677, %v9170_v59  ;;  %v4872_v5 = vsub.f32 0.0, %v4802_v52 }
0x1468   :  { %v4776_v40 = vpop.f32.mrb[150].mxu0  ;;  %v4882_v19 = vmul.f32 1.442695, %v4876_v26 }
0x1469   :  { %v9176_v47 = vadd.f32 %v5437_v7, %v4776_v40  ;;  %v6469_v8 = vpop.f32.mrb[151].mxu0  ;;  %v4812_v35 = vadd.f32 1.0, %v4807_v9  ;;  %v4803_v53 = vand.u32 2147483647, %v9174_v43  ;;  %v4877_v36 = vmul.f32 %v4872_v5, %v4802_v52 }
0x146a   :  { %vm4793_vm4 = vcmp.lt.f32.partialorder %v9174_v43, 0.0 }
0x146b   :  { %v9180_v14 = vmul.f32 0.70710677, %v9176_v47  ;;  %7125 = vrcp.f32 %v4812_v35  ;;  %v4808_v27 = vmul.f32 0.3275911, %v4803_v53  ;;  %v4873_v46 = vsub.f32 0.0, %v4803_v53 }
0x146c   :  { %v4884_v39 = vmul.f32 1.442695, %v4877_v36 }
0x146d   :  { %v7122_v21 = vpop.eup %7121  ;;  %v4804_v23 = vand.u32 2147483647, %v9180_v14  ;;  %v4813_v22 = vadd.f32 1.0, %v4808_v27  ;;  %v4878_v62 = vmul.f32 %v4873_v46, %v4803_v53  ;;  %v4780_v46 = vmul.f32 0.5, %v9153_v4 }
0x146e   :  { %v4825_v38 = vmul.f32 1.0614054, %v7122_v21  ;;  %vm4794_vm5 = vcmp.lt.f32.partialorder %v9180_v14, 0.0 }
0x146f   :  { %v4809_v18 = vmul.f32 0.3275911, %v4804_v23  ;;  %7127 = vrcp.f32 %v4813_v22  ;;  %v4874_v51 = vsub.f32 0.0, %v4804_v23  ;;  %v4886_v8 = vmul.f32 1.442695, %v4878_v62 }
0x1470   :  { %v4830_v17 = vadd.f32 -1.4531521, %v4825_v38 }
0x1471   :  { %v7124_v44 = vpop.eup %7123  ;;  %v4814_v45 = vadd.f32 1.0, %v4809_v18  ;;  %v4879_v52 = vmul.f32 %v4874_v51, %v4804_v23 }
0x1472   :  { %v4835_v2 = vmul.f32 %v7122_v21, %v4830_v17  ;;  %v4826_v29 = vmul.f32 1.0614054, %v7124_v44 }
0x1473   :  { %7129 = vrcp.f32 %v4814_v45  ;;  %v4888_v17 = vmul.f32 1.442695, %v4879_v52  ;;  %v4797_v52 = vsel %vm4792_vm1, -1.0, %v7188_v41 }
0x1474   :  { %v4840_v56 = vadd.f32 1.4214138, %v4835_v2  ;;  %v4831_v54 = vadd.f32 -1.4531521, %v4826_v29  ;;  %7131 = vpow2.f32 %v4880_v24  ;;  %v4795_v2 = vsel %vm4790_vm14, -1.0, %v7188_v41 }
0x1475   :  { %v7126_v30 = vpop.eup %7125  ;;  %7133 = vpow2.f32 %v4882_v19 }
0x1476   :  { %v4845_v32 = vmul.f32 %v7122_v21, %v4840_v56  ;;  %v4836_v12 = vmul.f32 %v7124_v44, %v4831_v54  ;;  %v4827_v7 = vmul.f32 1.0614054, %v7126_v30  ;;  %7135 = vpow2.f32 %v4884_v39 }
0x1477   :  { %7137 = vpow2.f32 %v4886_v8 }
0x1478   :  { %v4850_v55 = vadd.f32 -0.28449672, %v4845_v32  ;;  %v4841_v61 = vadd.f32 1.4214138, %v4836_v12  ;;  %v4832_v58 = vadd.f32 -1.4531521, %v4827_v7  ;;  %7139 = vpow2.f32 %v4888_v17 }
0x1479   :  { %v7128_v42 = vpop.eup %7127 }
0x147a   :  { %v4855_v31 = vmul.f32 %v7122_v21, %v4850_v55  ;;  %v4846_v57 = vmul.f32 %v7124_v44, %v4841_v61  ;;  %v4837_v34 = vmul.f32 %v7126_v30, %v4832_v58  ;;  %v4828_v37 = vmul.f32 1.0614054, %v7128_v42 }
0x147b   :  { %v4796_v61 = vsel %vm4791_vm15, -1.0, %v7188_v41 }
0x147c   :  { %v4860_v11 = vadd.f32 0.2548296, %v4855_v31  ;;  %v4851_v0 = vadd.f32 -0.28449672, %v4846_v57  ;;  %v4842_v9 = vadd.f32 1.4214138, %v4837_v34 }
0x147d   :  { %v9183_v60 = vpop.eup %7129  ;;  %v4833_v40 = vadd.f32 -1.4531521, %v4828_v37  ;;  %v4781_v34 = vmul.f32 0.5, %v9159_v15 }
0x147e   :  { %v4865_v50 = vmul.f32 %v7122_v21, %v4860_v11  ;;  %v4856_v35 = vmul.f32 %v7124_v44, %v4851_v0  ;;  %v4829_v27 = vmul.f32 1.0614054, %v9183_v60  ;;  %v7132_v63 = vpop.eup %7131  ;;  %v4847_v48 = vmul.f32 %v7126_v30, %v4842_v9 }
0x147f   :  { %v4838_v38 = vmul.f32 %v7128_v42, %v4833_v40  ;;  %v7134_v45 = vpop.eup %7133 }
0x1480   :  { %v4890_v53 = vmul.f32 %v7132_v63, %v4865_v50  ;;  %v4861_v22 = vadd.f32 0.2548296, %v4856_v35  ;;  %v4834_v18 = vadd.f32 -1.4531521, %v4829_v27  ;;  %v4852_v24 = vadd.f32 -0.28449672, %v4847_v48  ;;  %v7136_v55 = vpop.eup %7135 }
0x1481   :  { %v4843_v26 = vadd.f32 1.4214138, %v4838_v38  ;;  %v4782_v35 = vmul.f32 0.5, %v9165_v25  ;;  %v4798_v63 = vsel %vm4793_vm4, -1.0, %v7188_v41 }
0x1482   :  { %v4895_v5 = vsub.f32 1.0, %v4890_v53  ;;  %v4866_v23 = vmul.f32 %v7124_v44, %v4861_v22  ;;  %v4839_v21 = vmul.f32 %v9183_v60, %v4834_v18  ;;  %v4857_v29 = vmul.f32 %v7126_v30, %v4852_v24 }
0x1483   :  { %v4848_v56 = vmul.f32 %v7128_v42, %v4843_v26  ;;  %v4783_v22 = vmul.f32 0.5, %v9170_v59  ;;  %v4784_v24 = vmul.f32 0.5, %v9176_v47 }
0x1484   :  { %v4900_v54 = vmul.f32 %v4895_v5, %v4795_v2  ;;  %v4891_v33 = vmul.f32 %v7134_v45, %v4866_v23  ;;  %v4844_v19 = vadd.f32 1.4214138, %v4839_v21  ;;  %v4862_v36 = vadd.f32 0.2548296, %v4857_v29 }
0x1485   :  { %v4853_v32 = vadd.f32 -0.28449672, %v4848_v56 }
0x1486   :  { %v4905_v12 = vadd.f32 1.0, %v4900_v54  ;;  %v4896_v7 = vsub.f32 1.0, %v4891_v33  ;;  %v4849_v44 = vmul.f32 %v9183_v60, %v4844_v19  ;;  %v4867_v39 = vmul.f32 %v7126_v30, %v4862_v36  ;;  %v7138_v30 = vpop.eup %7137 }
0x1487   :  { %v4858_v51 = vmul.f32 %v7128_v42, %v4853_v32  ;;  %v7140_v8 = vpop.eup %7139 }
0x1488   :  { %v4910_v58 = vmul.f32 %v4905_v12, %v4780_v46  ;;  %v4901_v31 = vmul.f32 %v4896_v7, %v4796_v61  ;;  %v4854_v62 = vadd.f32 -0.28449672, %v4849_v44  ;;  %v4892_v16 = vmul.f32 %v7136_v55, %v4867_v39 }
0x1489   :  { %v4863_v57 = vadd.f32 0.2548296, %v4858_v51 }
0x148a   :  { %6503 = vmatmul.mubr.f32.vlgmr.msra.gmra.mrb[148].mxu1 %v4910_v58  ;;  %v4906_v4 = vadd.f32 1.0, %v4901_v31  ;;  %v4859_v37 = vmul.f32 %v9183_v60, %v4854_v62  ;;  %v4897_v11 = vsub.f32 1.0, %v4892_v16 }
0x148b   :  { %6505 = vmatprep.mubr.msk.f32.mxu1 %vm7181_vm0, %v7182_v6  ;;  %v4868_v0 = vmul.f32 %v7128_v42, %v4863_v57 }
0x148c   :  { %v4911_v9 = vmul.f32 %v4906_v4, %v4781_v34  ;;  %v4864_v40 = vadd.f32 0.2548296, %v4859_v37  ;;  %v4902_v13 = vmul.f32 %v4897_v11, %v4797_v52 }
0x148d   :  { %v4893_v50 = vmul.f32 %v7138_v30, %v4868_v0 }
0x148e   :  { %6506 = vmatmul.mubr.f32.gmra.mrb[150].mxu1 %v4911_v9  ;;  %v4869_v15 = vmul.f32 %v9183_v60, %v4864_v40  ;;  %v4907_v27 = vadd.f32 1.0, %v4902_v13  ;;  %v4799_v60 = vsel %vm4794_vm5, -1.0, %v7188_v41  ;;  %v5460_v41 = vld [vmem:[%s9273_s16 + $0x1] ss:$0 sm:$0xff] }
0x148f   :  { %6508 = vmatprep.mubr.msk.f32.mxu1 %vm7181_vm0, %v7182_v6  ;;  %v4898_v42 = vsub.f32 1.0, %v4893_v50 }
0x1490   :  { %v4894_v48 = vmul.f32 %v7140_v8, %v4869_v15  ;;  %v4912_v38 = vmul.f32 %v4907_v27, %v4782_v35 }
0x1491   :  { %v4903_v43 = vmul.f32 %v4898_v42, %v4798_v63 }
0x1492   :  { %v4899_v53 = vsub.f32 1.0, %v4894_v48  ;;  %6509 = vmatmul.mubr.f32.gmra.mrb[152].mxu1 %v4912_v38 }
0x1493   :  { %v4908_v18 = vadd.f32 1.0, %v4903_v43  ;;  %6511 = vmatprep.mubr.msk.f32.mxu1 %vm7181_vm0, %v7182_v6 }
0x1494   :  { %v4904_v25 = vmul.f32 %v4899_v53, %v4799_v60 }
0x1495   :  { %v4913_v17 = vmul.f32 %v4908_v18, %v4783_v22 }
0x1496   :  { %v4909_v26 = vadd.f32 1.0, %v4904_v25 }
0x1497   :  { %6512 = vmatmul.mubr.f32.gmra.mrb[154].mxu1 %v4913_v17 }
0x1498   :  { %6514 = vmatprep.mubr.msk.f32.mxu1 %vm7181_vm0, %v7182_v6  ;;  %v4914_v14 = vmul.f32 %v4909_v26, %v4784_v24 }
0x149b   :  { %6515 = vmatmul.mubr.f32.gmra.mrb[156].mxu1 %v4914_v14 }
0x155d   :  { %v5006_v59 = vpop.f32.mrb[148].mxu1 }
0x155e   :  { %v5007_v5 = vadd.f32 %v5460_v41, %v5006_v59  ;;  %v6504_v23 = vpop.f32.mrb[149].mxu1 }
0x155f   :  { %v5461_v23 = vld [vmem:[%s9274_s17] ss:$0 sm:$0xff] }
0x1560   :  { %v5030_v21 = vadd.f32 %v5007_v5, %v9020_v20 }
0x1561   :  { %v5011_v45 = vpop.f32.mrb[150].mxu1 }
0x1562   :  { %v5012_v2 = vadd.f32 %v5460_v41, %v5011_v45  ;;  %v6507_v29 = vpop.f32.mrb[151].mxu1  ;;  %v5037_v47 = vsel %vm192_vm2, %v5030_v21, 0.0 }
0x1563   :  { %5038 = vadd.xlane.f32.xlu1 %v5037_v47 }
0x1564   :  { %v5031_v56 = vadd.f32 %v5012_v2, %v9027_v49 }
0x1565   :  { %v5016_v54 = vpop.f32.mrb[152].mxu1 }
0x1566   :  { %v5040_v33 = vsel %vm192_vm2, %v5031_v56, 0.0  ;;  %v5017_v19 = vadd.f32 %v5460_v41, %v5016_v54  ;;  %v6510_v36 = vpop.f32.mrb[153].mxu1  ;;  %v5462_v54 = vld [vmem:[%s9275_s18] ss:$0 sm:$0xff] }
0x1567   :  { %5041 = vadd.xlane.f32.xlu0 %v5040_v33 }
0x1568   :  { %v5032_v32 = vadd.f32 %v5017_v19, %v9034_v1 }
0x156a   :  { %v5021_v46 = vpop.f32.mrb[154].mxu1  ;;  %v5043_v20 = vsel %vm192_vm2, %v5032_v32, 0.0 }
0x156b   :  { %v5022_v12 = vadd.f32 %v5460_v41, %v5021_v46  ;;  %v6513_v7 = vpop.f32.mrb[155].mxu1  ;;  %5044 = vadd.xlane.f32.xlu1 %v5043_v20 }
0x156d   :  { %v5033_v44 = vadd.f32 %v5022_v12, %v9041_v28 }
0x156e   :  { %v5026_v55 = vpop.f32.mrb[156].mxu1 }
0x156f   :  { %v5027_v61 = vadd.f32 %v5460_v41, %v5026_v55  ;;  %v6516_v39 = vpop.f32.mrb[157].mxu1  ;;  %v5046_v49 = vsel %vm192_vm2, %v5033_v44, 0.0 }
0x1570   :  { %5047 = vadd.xlane.f32.xlu0 %v5046_v49 }
0x1571   :  { %v5034_v51 = vadd.f32 %v5027_v61, %v9046_v10 }
0x1573   :  { %v5049_v58 = vsel %vm205_vm3, %v5034_v51, 0.0 }
0x1574   :  { %5050 = vadd.xlane.f32.xlu1 %v5049_v58 }
0x15f0   :  { %v5039_v1 = vpop.xlane.xlu1 %5038 }
0x15f1   :  { %v5052_v31 = vmul.f32 0.03125, %v5039_v1 }
0x15f3   :  { %v5057_v62 = vsub.f32 %v5030_v21, %v5052_v31 }
0x15f4   :  { %v5042_v16 = vpop.xlane.xlu0 %5041 }
0x15f5   :  { %v5053_v57 = vmul.f32 0.03125, %v5042_v16  ;;  %v5062_v34 = vmul.f32 %v5057_v62, %v5057_v62 }
0x15f7   :  { %v5058_v4 = vsub.f32 %v5031_v56, %v5053_v57  ;;  %v5067_v28 = vsel %vm192_vm2, %v5062_v34, 0.0 }
0x15f8   :  { %5068 = vadd.xlane.f32.xlu0 %v5067_v28  ;;  %v5045_v37 = vpop.xlane.xlu1 %5044 }
0x15f9   :  { %v5063_v11 = vmul.f32 %v5058_v4, %v5058_v4  ;;  %v5054_v0 = vmul.f32 0.03125, %v5045_v37 }
0x15fb   :  { %v5070_v30 = vsel %vm192_vm2, %v5063_v11, 0.0  ;;  %v5059_v52 = vsub.f32 %v5032_v32, %v5054_v0 }
0x15fc   :  { %5071 = vadd.xlane.f32.xlu1 %v5070_v30 }
0x15fd   :  { %v5048_v10 = vpop.xlane.xlu0 %5047  ;;  %v5064_v40 = vmul.f32 %v5059_v52, %v5059_v52 }
0x15fe   :  { %v5055_v9 = vmul.f32 0.03125, %v5048_v10 }
0x15ff   :  { %v5073_v50 = vsel %vm192_vm2, %v5064_v40, 0.0 }
0x1600   :  { %v5060_v13 = vsub.f32 %v5033_v44, %v5055_v9  ;;  %5074 = vadd.xlane.f32.xlu0 %v5073_v50 }
0x1601   :  { %v5051_v15 = vpop.xlane.xlu1 %5050 }
0x1602   :  { %v5056_v8 = vmul.f32 0.03125, %v5051_v15  ;;  %v5065_v35 = vmul.f32 %v5060_v13, %v5060_v13 }
0x1604   :  { %v5061_v27 = vsub.f32 %v5034_v51, %v5056_v8  ;;  %v5076_v42 = vsel %vm192_vm2, %v5065_v35, 0.0 }
0x1605   :  { %5077 = vadd.xlane.f32.xlu1 %v5076_v42 }
0x1606   :  { %v5066_v63 = vmul.f32 %v5061_v27, %v5061_v27 }
0x1608   :  { %v5079_v48 = vsel %vm205_vm3, %v5066_v63, 0.0 }
0x1609   :  { %5080 = vadd.xlane.f32.xlu0 %v5079_v48 }
0x1685   :  { %v5069_v38 = vpop.xlane.xlu0 %5068 }
0x1686   :  { %v5082_v43 = vmul.f32 0.03125, %v5069_v38 }
0x1688   :  { %v5087_v53 = vadd.f32 1e-05, %v5082_v43 }
0x1689   :  { %v5072_v22 = vpop.xlane.xlu1 %5071 }
0x168a   :  { %7141 = vrsqrt.f32 %v5087_v53  ;;  %v5083_v60 = vmul.f32 0.03125, %v5072_v22 }
0x168c   :  { %v5088_v18 = vadd.f32 1e-05, %v5083_v60 }
0x168d   :  { %v5075_v25 = vpop.xlane.xlu0 %5074 }
0x168e   :  { %7143 = vrsqrt.f32 %v5088_v18  ;;  %v5084_v17 = vmul.f32 0.03125, %v5075_v25 }
0x1690   :  { %v5089_v24 = vadd.f32 1e-05, %v5084_v17 }
0x1692   :  { %v5078_v26 = vpop.xlane.xlu1 %5077  ;;  %7145 = vrsqrt.f32 %v5089_v24 }
0x1693   :  { %v5085_v14 = vmul.f32 0.03125, %v5078_v26 }
0x1694   :  { %v7142_v41 = vpop.eup %7141 }
0x1695   :  { %v5097_v59 = vmul.f32 %v7142_v41, %v5057_v62  ;;  %v5090_v5 = vadd.f32 1e-05, %v5085_v14  ;;  %v5124_v62 = vld [vmem:[%s9261_s4] sm:$0x3] }
0x1696   :  { %v5081_v21 = vpop.xlane.xlu0 %5080 }
0x1697   :  { %7147 = vrsqrt.f32 %v5090_v5  ;;  %v5086_v45 = vmul.f32 0.03125, %v5081_v21  ;;  %v5108_v56 = vmul.f32 %v5461_v23, %v5097_v59 }
0x1698   :  { %v7144_v2 = vpop.eup %7143 }
0x1699   :  { %v5098_v29 = vmul.f32 %v7144_v2, %v5058_v4  ;;  %v5091_v47 = vadd.f32 1e-05, %v5086_v45  ;;  %v5119_v36 = vadd.f32 %v5462_v54, %v5108_v56 }
0x169b   :  { %7149 = vrsqrt.f32 %v5091_v47  ;;  %v5109_v33 = vmul.f32 %v5461_v23, %v5098_v29 }
0x169c   :  { %v7146_v19 = vpop.eup %7145 }
0x169d   :  { %v5120_v32 = vadd.f32 %v5462_v54, %v5109_v33  ;;  %v5099_v46 = vmul.f32 %v7146_v19, %v5059_v52 }
0x169f   :  { %v6724_v12 = vpack.c.bf16 %v5120_v32, %v5119_v36  ;;  %v5110_v44 = vmul.f32 %v5461_v23, %v5099_v46 }
0x16a1   :  { %v7148_v7 = vpop.eup %7147  ;;  %6725 = vmatpush3.bf16.msra.mxu0 %v6724_v12  ;;  %v5121_v49 = vadd.f32 %v5462_v54, %v5110_v44 }
0x16a2   :  { %v5100_v20 = vmul.f32 %v7148_v7, %v5060_v13  ;;  %6726 = vmatprep.subr.bf16.mxu0 %v7180_v3 }
0x16a4   :  { %v5111_v55 = vmul.f32 %v5461_v23, %v5100_v20 }
0x16a5   :  { %v7150_v61 = vpop.eup %7149 }
0x16a6   :  { %v5101_v39 = vmul.f32 %v7150_v61, %v5061_v27  ;;  %v5122_v51 = vadd.f32 %v5462_v54, %v5111_v55 }
0x16a8   :  { %v5112_v58 = vmul.f32 %v5461_v23, %v5101_v39  ;;  %v6727_v1 = vpack.c.bf16 %v5122_v51, %v5121_v49 }
0x16aa   :  { %6728 = vmatpush3.bf16.msra.mxu0 %v6727_v1  ;;  %v5123_v31 = vadd.f32 %v5462_v54, %v5112_v58 }
0x16ab   :  { %6525 = vmatprep.subr.mxu0 %v7182_v6 }
0x16ae   :  { %6526 = vmatpush3.msk.msra.mxu0 %vm1220_vm6, %v5123_v31 }
0x16af   :  { %6528 = vmatmul.mubr.msk.f32.vlgmr.msra.gmra.mrb[152].mxu0 %vm969_vm7, %v5124_v62 }
0x1782   :  { %v5197_v3 = vpop.f32.mrb[152].mxu0 }
0x1783   :  { %5201 = vst.msk [vmem:[#allocation2] sm:$0x3] %vm205_vm3, %v5197_v3  ;;  %v6529_v16 = vpop.f32.mrb[153].mxu0 }
0x1784   :  { %7167 = shalt.err (!%p7164_p4)
}
0x1785   :  { %s7168_s23 = scalar_lea.hbm %s9276_s19, 32 }
0x1786   :  { %p7169_p5 = scmp.ne.s32.totalorder %s9276_s19, %s7168_s23  ;;  %p7172_p6 = scmp.lt.u32.totalorder %s7168_s23, %s9276_s19 }
0x1788   :  { %p7174_p7 = pnand %p7172_p6, %p7169_p5 }
0x178a   :  { %7177 = shalt.err (!%p7174_p7)
}
0x178b   :  { %5211 = dma.vmem_to_hbm [thread:$0]  %s5209_s1, 32, %s9276_s19, [#allocation3]  }
0x178c   :  { %7178 = dma.done.wait [#allocation3], 32  }
0x178d   :  { %7179 = vsyncadd [#allocation3], 4294967264 }
0x178e   :  { %5215 = vsyncpa [#allocation3], 1 }

</bundles_post_ra>
